<compile_context>
chip_gen: v7x
topology: tpu7x:2x2x1
jax: 0.10.0
libtpu: 0.0.40
codegen_flags: <defaults>
</compile_context>

<pallas_src>
import functools

import numpy as np

import jax
import jax.numpy as jnp
from jax.experimental import pallas as pl
from jax.experimental.pallas import tpu as pltpu


# ---------------------------------------------------------------------------
# Model geometry: input 56x46 -> conv3 output (120, 8, 5) -> 4800 features,
# which matches linear1(in_features=4800) of the PyTorch module.
# ---------------------------------------------------------------------------
H0, W0, C0 = 56, 46, 1
K1, C1 = 5, 6
H1, W1 = H0 - K1 + 1, W0 - K1 + 1          # 52, 42
Hp1, Wp1 = H1 // 2, W1 // 2                # 26, 21
K2, C2 = 5, 16
H2, W2 = Hp1 - K2 + 1, Wp1 - K2 + 1        # 22, 17
Hp2, Wp2 = H2 // 2, W2 // 2                # 11, 8   (17 -> 8, torch floor)
K3, C3 = 4, 120
H3, W3 = Hp2 - K3 + 1, Wp2 - K3 + 1        # 8, 5
FEAT = C3 * H3 * W3                        # 4800
HID, OUT = 84, 40


# ---------------------------------------------------------------------------
# Fused kernel (one grid step = one batch tile of `nb` images).
# Activation layout: 2-D (H*nb, W*C) slabs, row index = h*nb + image.
# ---------------------------------------------------------------------------
def _make_kernel(nb, fold_pool):
    def kernel(*refs):
        if fold_pool:
            (xs_ref, w1_ref, w2_ref, w3_ref, r1_ref, r2_ref,
             fc1_ref, fc1b_ref, fc2_ref, fc2b_ref, o_ref) = refs
            q1_ref = q2_ref = None
        else:
            (xs_ref, w1_ref, w2_ref, w3_ref, r1_ref, r2_ref, q1_ref, q2_ref,
             fc1_ref, fc1b_ref, fc2_ref, fc2b_ref, o_ref) = refs

        dot = functools.partial(jnp.dot, preferred_element_type=jnp.float32)
        bf16 = jnp.bfloat16

        # conv1 + ReLU: the K1 row taps were pre-stacked along the contraction
        # axis in the wrapper -> one deep-K MXU dot, M = H1*nb.
        a1 = jnp.maximum(dot(xs_ref[...], w1_ref[...]), 0.0).astype(bf16)

        # pool1: row averaging (r1 = kron(avg, I_nb)); column/channel averaging
        # is either an explicit dot or pre-folded into the conv2 band weights.
        p1 = dot(r1_ref[...], a1)
        if not fold_pool:
            p1 = dot(p1.astype(bf16), q1_ref[...])
        p1 = p1.astype(bf16)                              # (Hp1*nb, 126 / 252)

        # conv2 + ReLU: banded-GEMM taps, each tap operand is a contiguous
        # row slice (the interleaved layout makes per-image shifts contiguous).
        acc2 = dot(p1[0:H2 * nb, :], w2_ref[0])
        for i in range(1, K2):
            acc2 = acc2 + dot(p1[i * nb:(i + H2) * nb, :], w2_ref[i])
        a2 = jnp.maximum(acc2, 0.0).astype(bf16)          # (H2*nb, W2*C2)

        # pool2 (odd width 17 -> 8: last column dropped inside q2 / the fold).
        p2 = dot(r2_ref[...], a2)
        if not fold_pool:
            p2 = dot(p2.astype(bf16), q2_ref[...])
        p2 = p2.astype(bf16)                              # (Hp2*nb, 128 / 272)

        # conv3 + ReLU.
        acc3 = dot(p2[0:H3 * nb, :], w3_ref[0])
        for i in range(1, K3):
            acc3 = acc3 + dot(p2[i * nb:(i + H3) * nb, :], w3_ref[i])
        a3 = jnp.maximum(acc3, 0.0).astype(bf16)          # (H3*nb, W3*C3)

        # linear1 + ReLU: fc1 pre-permuted to (H3, W3*C3, HID) so no in-kernel
        # flatten is needed; every dot has M = nb (whole batch tile).
        h = dot(a3[0:nb, :], fc1_ref[0])
        for r in range(1, H3):
            h = h + dot(a3[r * nb:(r + 1) * nb, :], fc1_ref[r])
        h = jnp.maximum(h + fc1b_ref[...], 0.0).astype(bf16)

        # linear2; single whole-tile store of the (nb, OUT) logits.
        o_ref[...] = (dot(h, fc2_ref[...]) + fc2b_ref[...]).astype(o_ref.dtype)

    return kernel


def _const_spec(a):
    zeros = (0,) * a.ndim
    return pl.BlockSpec(a.shape, lambda b, _z=zeros: _z)


def _pick_batch_tile(n):
    for nb in (8, 4, 2):
        if n % nb == 0:
            return nb
    return 1


@jax.jit
def lenet_small_forward(x_nchw, prep):
    n = x_nchw.shape[0]
    fold = "q1" not in prep                     # prep dict encodes the fold
    nb = _pick_batch_tile(n)
    nblk = n // nb

    # NCHW -> channels-fastest (N, H, W*C), then interleave images inside each
    # batch tile: rows = h*nb + image  (makes per-image row shifts contiguous).
    x = x_nchw.transpose(0, 2, 3, 1).reshape(nblk, nb, H0, W0 * C0)
    x = x.transpose(0, 2, 1, 3).reshape(nblk, H0 * nb, W0 * C0)
    # Pre-stack conv1's K1 row taps along the contraction axis (pure XLA).
    xs = jnp.concatenate(
        [x[:, i * nb:(i + H1) * nb, :] for i in range(K1)], axis=2
    ).astype(jnp.bfloat16)                                # (nblk, H1*nb, K1*W0)

    # Row-averaging matrices for AvgPool2d(2) in the interleaved layout.
    r1 = jnp.asarray(np.kron(_row_pool(H1), np.eye(nb, dtype=np.float32)),
                     jnp.bfloat16)                        # (Hp1*nb, H1*nb)
    r2 = jnp.asarray(np.kron(_row_pool(H2), np.eye(nb, dtype=np.float32)),
                     jnp.bfloat16)                        # (Hp2*nb, H2*nb)

    args = [xs, prep["w1"], prep["w2"], prep["w3"], r1, r2]
    if not fold:
        args += [prep["q1"], prep["q2"]]
    args += [prep["fc1"], prep["fc1_b"], prep["fc2"], prep["fc2_b"]]

    in_specs = [pl.BlockSpec((None, H1 * nb, K1 * W0 * C0),
                             lambda b: (b, 0, 0))]
    in_specs += [_const_spec(a) for a in args[1:]]        # weights: resident

    out = pl.pallas_call(
        _make_kernel(nb, fold),
        out_shape=jax.ShapeDtypeStruct((nblk, nb, OUT), jnp.float32),
        grid=(nblk,),
        in_specs=in_specs,
        out_specs=pl.BlockSpec((None, nb, OUT), lambda b: (b, 0, 0)),
        compiler_params=pltpu.CompilerParams(
            dimension_semantics=("parallel",)),           # megacore on v7x
    )(*args)
    return out.reshape(n, OUT)


# ---------------------------------------------------------------------------
# One-time weight preprocessing (outside the kernel / the hot path).
# ---------------------------------------------------------------------------
def _band_weights(w, w_in):
    """Expand a (Cout, Cin, kh, kw) conv weight into kh banded matrices of
    shape (W_in*Cin, W_out*Cout) so that a valid stride-1 conv on a
    channels-fastest (H, W*C) image is  out = sum_i x[i:i+H_out, :] @ band[i].
    band[i][(w+j)*Cin + c, w*Cout + co] = w[co, c, i, j]."""
    cout, cin, kh, kw = w.shape
    w_out = w_in - kw + 1
    sel = np.zeros((w_in, kw, w_out), np.float32)
    for j in range(kw):
        for ww in range(w_out):
            sel[ww + j, j, ww] = 1.0
    wt = jnp.transpose(w, (2, 3, 1, 0))                  # (kh, kw, Cin, Cout)
    band = jnp.einsum("ajw,ijco->iacwo", jnp.asarray(sel), wt)
    return band.reshape(kh, w_in * cin, w_out * cout)


def _row_pool(h):
    ho = h // 2
    r = np.zeros((ho, h), np.float32)
    for p in range(ho):
        r[p, 2 * p] = 0.5
        r[p, 2 * p + 1] = 0.5
    return r


def _col_pool(w_in, c):
    """(width, channel) averaging matrix realizing the column half of
    AvgPool2d(2) on a channels-fastest (·, w_in*c) slab (torch floor)."""
    wo = w_in // 2
    q = np.zeros((w_in * c, wo * c), np.float32)
    for p in range(wo):
        for d in (0, 1):
            for ch in range(c):
                q[(2 * p + d) * c + ch, p * c + ch] = 0.5
    return jnp.asarray(q)


def _default_fold_pool():
    """Fold q1/q2 into the next conv's bands on 256-deep-MXU chips (v6e/v7x);
    keep explicit pool matmuls on 128-deep MXUs (v2-v5)."""
    try:
        kind = jax.devices()[0].device_kind.lower()
    except Exception:
        return True
    return not any(t in kind for t in ("v2", "v3", "v4", "v5"))


def prepare_params(params, fold_pool=None):
    if fold_pool is None:
        fold_pool = _default_fold_pool()
    b1 = _band_weights(params["conv1_w"], W0)            # (5,  46, 252)
    b2 = _band_weights(params["conv2_w"], Wp1)           # (5, 126, 272)
    b3 = _band_weights(params["conv3_w"], Wp2)           # (4, 128, 600)
    q1 = _col_pool(W1, C1)                               # (252, 126)
    q2 = _col_pool(W2, C2)                               # (272, 128)

    w1 = b1.reshape(K1 * W0 * C0, W1 * C1)               # conv1 taps on K
    if fold_pool:
        # Valid because q multiplies on the post-ReLU side:  (x@q)@B = x@(q@B)
        w2 = jnp.einsum("uk,iko->iuo", q1, b2)           # (5, 252, 272)
        w3 = jnp.einsum("uk,iko->iuo", q2, b3)           # (4, 272, 600)
    else:
        w2, w3 = b2, b3

    # linear1_w is (84, 4800) over torch's (C3, H3, W3) flatten order; permute
    # once to (H3, W3*C3, 84) to match the kernel's activation layout.
    fc1 = params["linear1_w"].reshape(HID, C3, H3, W3)
    fc1 = fc1.transpose(2, 3, 1, 0).reshape(H3, W3 * C3, HID)

    prep = {
        "w1": w1.astype(jnp.bfloat16),
        "w2": w2.astype(jnp.bfloat16),
        "w3": w3.astype(jnp.bfloat16),
        "fc1": fc1.astype(jnp.bfloat16),
        "fc1_b": params["linear1_b"].reshape(1, HID).astype(jnp.float32),
        "fc2": params["linear2_w"].T.astype(jnp.bfloat16),
        "fc2_b": params["linear2_b"].reshape(1, OUT).astype(jnp.float32),
    }
    if not fold_pool:
        prep["q1"] = q1.astype(jnp.bfloat16)
        prep["q2"] = q2.astype(jnp.bfloat16)
    return prep


def init_params(key):
    ks = jax.random.split(key, 7)

    def u(k, shape, fan_in):
        b = 1.0 / np.sqrt(fan_in)
        return jax.random.uniform(k, shape, jnp.float32, -b, b)

    return {
        "conv1_w": u(ks[0], (C1, C0, K1, K1), C0 * K1 * K1),
        "conv2_w": u(ks[1], (C2, C1, K2, K2), C1 * K2 * K2),
        "conv3_w": u(ks[2], (C3, C2, K3, K3), C2 * K3 * K3),
        "linear1_w": u(ks[3], (HID, FEAT), FEAT),
        "linear1_b": u(ks[4], (HID,), FEAT),
        "linear2_w": u(ks[5], (OUT, HID), HID),
        "linear2_b": u(ks[6], (OUT,), HID),
    }


# ---------------------------------------------------------------------------
# Pure-JAX reference (mirrors the PyTorch module) for a correctness check.
# ---------------------------------------------------------------------------
def _avg_pool_ref(x):
    n, c, h, w = x.shape
    x = x[:, :, : (h // 2) * 2, : (w // 2) * 2]
    return x.reshape(n, c, h // 2, 2, w // 2, 2).mean(axis=(3, 5))


def reference_forward(x, params):
    dn = ("NCHW", "OIHW", "NCHW")
    y = jax.lax.conv_general_dilated(x, params["conv1_w"], (1, 1), "VALID",
                                     dimension_numbers=dn)
    y = _avg_pool_ref(jnp.maximum(y, 0.0))
    y = jax.lax.conv_general_dilated(y, params["conv2_w"], (1, 1), "VALID",
                                     dimension_numbers=dn)
    y = _avg_pool_ref(jnp.maximum(y, 0.0))
    y = jax.lax.conv_general_dilated(y, params["conv3_w"], (1, 1), "VALID",
                                     dimension_numbers=dn)
    y = jnp.maximum(y, 0.0).reshape(x.shape[0], -1)
    y = jnp.maximum(y @ params["linear1_w"].T + params["linear1_b"], 0.0)
    return y @ params["linear2_w"].T + params["linear2_b"]


if __name__ == "__main__":
    key = jax.random.PRNGKey(0)
    k_x, k_p = jax.random.split(key)
    # Input 56x46 so conv3 output is (120, 8, 5) -> 4800 features (linear1).
    x = jax.random.normal(k_x, (2, C0, H0, W0), dtype=jnp.float32)
    params = init_params(k_p)
    ref = np.asarray(reference_forward(x, params))

    # Exercise both pool-folding variants; prepare_params(params) would pick
    # the chip-appropriate default via _default_fold_pool().
    for fold in (True, False):
        prep = prepare_params(params, fold_pool=fold)
        out = jax.block_until_ready(lenet_small_forward(x, prep))
        assert out.shape == (2, OUT) and out.dtype == jnp.float32
        np.testing.assert_allclose(np.asarray(out), ref, rtol=2e-2, atol=2e-2)
    print("KERNEL_OK")
</pallas_src>

<mosaic_0001>
module attributes {stable_mosaic.version = 11 : i64} {
  func.func @kernel(%arg0: i32, %arg1: memref<1x104x230xbf16, #tpu.memory_space<vmem>>, %arg2: memref<230x252xbf16, #tpu.memory_space<vmem>>, %arg3: memref<5x252x272xbf16, #tpu.memory_space<vmem>>, %arg4: memref<4x272x600xbf16, #tpu.memory_space<vmem>>, %arg5: memref<52x104xbf16, #tpu.memory_space<vmem>>, %arg6: memref<22x44xbf16, #tpu.memory_space<vmem>>, %arg7: memref<8x600x84xbf16, #tpu.memory_space<vmem>>, %arg8: memref<1x84xf32, #tpu.memory_space<vmem>>, %arg9: memref<84x40xbf16, #tpu.memory_space<vmem>>, %arg10: memref<1x40xf32, #tpu.memory_space<vmem>>, %arg11: memref<1x2x40xf32, #tpu.memory_space<vmem>>) attributes {dimension_semantics = [#tpu.dimension_semantics<parallel>], iteration_bounds = array<i64: 1>, scalar_prefetch = 0 : i64, scratch_operands = 0 : i64, tpu.core_type = #tpu.core_type<tc>, window_params = [{transform_indices = @transform_0, window_bounds = array<i64: 1, 104, 230>}, {pipeline_mode = #tpu.pipeline_mode<synchronous>, transform_indices = @transform_1, window_bounds = array<i64: 230, 252>}, {pipeline_mode = #tpu.pipeline_mode<synchronous>, transform_indices = @transform_2, window_bounds = array<i64: 5, 252, 272>}, {pipeline_mode = #tpu.pipeline_mode<synchronous>, transform_indices = @transform_3, window_bounds = array<i64: 4, 272, 600>}, {pipeline_mode = #tpu.pipeline_mode<synchronous>, transform_indices = @transform_4, window_bounds = array<i64: 52, 104>}, {pipeline_mode = #tpu.pipeline_mode<synchronous>, transform_indices = @transform_5, window_bounds = array<i64: 22, 44>}, {pipeline_mode = #tpu.pipeline_mode<synchronous>, transform_indices = @transform_6, window_bounds = array<i64: 8, 600, 84>}, {pipeline_mode = #tpu.pipeline_mode<synchronous>, transform_indices = @transform_7, window_bounds = array<i64: 1, 84>}, {pipeline_mode = #tpu.pipeline_mode<synchronous>, transform_indices = @transform_8, window_bounds = array<i64: 84, 40>}, {pipeline_mode = #tpu.pipeline_mode<synchronous>, transform_indices = @transform_9, window_bounds = array<i64: 1, 40>}, {transform_indices = @transform_10, window_bounds = array<i64: 1, 2, 40>}]} {
    %c0 = arith.constant 0 : index
    %c0_0 = arith.constant 0 : index
    %c0_1 = arith.constant 0 : index
    %0 = vector.load %arg1[%c0, %c0_0, %c0_1] : memref<1x104x230xbf16, #tpu.memory_space<vmem>>, vector<1x104x230xbf16>
    %1 = vector.shape_cast %0 : vector<1x104x230xbf16> to vector<104x230xbf16>
    %c0_2 = arith.constant 0 : index
    %c0_3 = arith.constant 0 : index
    %2 = vector.load %arg2[%c0_2, %c0_3] : memref<230x252xbf16, #tpu.memory_space<vmem>>, vector<230x252xbf16>
    %cst = arith.constant dense<0.000000e+00> : vector<104x252xf32>
    %3 = tpu.matmul %1, %2, %cst {dimension_numbers = #tpu.dot_dimension_numbers<[1], [0], [0], [1], [0, 0, 1, 1], [], []>} : vector<104x230xbf16>, vector<230x252xbf16>, vector<104x252xf32> -> vector<104x252xf32>
    %cst_4 = arith.constant 0.000000e+00 : f32
    %4 = vector.broadcast %cst_4 : f32 to vector<104x252xf32>
    %5 = arith.maximumf %3, %4 : vector<104x252xf32>
    %6 = arith.truncf %5 : vector<104x252xf32> to vector<104x252xbf16>
    %c0_5 = arith.constant 0 : index
    %c0_6 = arith.constant 0 : index
    %7 = vector.load %arg5[%c0_5, %c0_6] : memref<52x104xbf16, #tpu.memory_space<vmem>>, vector<52x104xbf16>
    %cst_7 = arith.constant dense<0.000000e+00> : vector<52x252xf32>
    %8 = tpu.matmul %7, %6, %cst_7 {dimension_numbers = #tpu.dot_dimension_numbers<[1], [0], [0], [1], [0, 0, 1, 1], [], []>} : vector<52x104xbf16>, vector<104x252xbf16>, vector<52x252xf32> -> vector<52x252xf32>
    %9 = arith.truncf %8 : vector<52x252xf32> to vector<52x252xbf16>
    %10 = vector.extract_strided_slice %9 {offsets = [0, 0], sizes = [44, 252], strides = [1, 1]} : vector<52x252xbf16> to vector<44x252xbf16>
    %c0_8 = arith.constant 0 : index
    %c0_9 = arith.constant 0 : index
    %c0_10 = arith.constant 0 : index
    %11 = vector.load %arg3[%c0_8, %c0_9, %c0_10] : memref<5x252x272xbf16, #tpu.memory_space<vmem>>, vector<1x252x272xbf16>
    %12 = vector.shape_cast %11 : vector<1x252x272xbf16> to vector<252x272xbf16>
    %cst_11 = arith.constant dense<0.000000e+00> : vector<44x272xf32>
    %13 = tpu.matmul %10, %12, %cst_11 {dimension_numbers = #tpu.dot_dimension_numbers<[1], [0], [0], [1], [0, 0, 1, 1], [], []>} : vector<44x252xbf16>, vector<252x272xbf16>, vector<44x272xf32> -> vector<44x272xf32>
    %14 = vector.extract_strided_slice %9 {offsets = [2, 0], sizes = [44, 252], strides = [1, 1]} : vector<52x252xbf16> to vector<44x252xbf16>
    %c1 = arith.constant 1 : index
    %c0_12 = arith.constant 0 : index
    %c0_13 = arith.constant 0 : index
    %15 = vector.load %arg3[%c1, %c0_12, %c0_13] : memref<5x252x272xbf16, #tpu.memory_space<vmem>>, vector<1x252x272xbf16>
    %16 = vector.shape_cast %15 : vector<1x252x272xbf16> to vector<252x272xbf16>
    %cst_14 = arith.constant dense<0.000000e+00> : vector<44x272xf32>
    %17 = tpu.matmul %14, %16, %cst_14 {dimension_numbers = #tpu.dot_dimension_numbers<[1], [0], [0], [1], [0, 0, 1, 1], [], []>} : vector<44x252xbf16>, vector<252x272xbf16>, vector<44x272xf32> -> vector<44x272xf32>
    %18 = arith.addf %13, %17 : vector<44x272xf32>
    %19 = vector.extract_strided_slice %9 {offsets = [4, 0], sizes = [44, 252], strides = [1, 1]} : vector<52x252xbf16> to vector<44x252xbf16>
    %c2 = arith.constant 2 : index
    %c0_15 = arith.constant 0 : index
    %c0_16 = arith.constant 0 : index
    %20 = vector.load %arg3[%c2, %c0_15, %c0_16] : memref<5x252x272xbf16, #tpu.memory_space<vmem>>, vector<1x252x272xbf16>
    %21 = vector.shape_cast %20 : vector<1x252x272xbf16> to vector<252x272xbf16>
    %cst_17 = arith.constant dense<0.000000e+00> : vector<44x272xf32>
    %22 = tpu.matmul %19, %21, %cst_17 {dimension_numbers = #tpu.dot_dimension_numbers<[1], [0], [0], [1], [0, 0, 1, 1], [], []>} : vector<44x252xbf16>, vector<252x272xbf16>, vector<44x272xf32> -> vector<44x272xf32>
    %23 = arith.addf %18, %22 : vector<44x272xf32>
    %24 = vector.extract_strided_slice %9 {offsets = [6, 0], sizes = [44, 252], strides = [1, 1]} : vector<52x252xbf16> to vector<44x252xbf16>
    %c3 = arith.constant 3 : index
    %c0_18 = arith.constant 0 : index
    %c0_19 = arith.constant 0 : index
    %25 = vector.load %arg3[%c3, %c0_18, %c0_19] : memref<5x252x272xbf16, #tpu.memory_space<vmem>>, vector<1x252x272xbf16>
    %26 = vector.shape_cast %25 : vector<1x252x272xbf16> to vector<252x272xbf16>
    %cst_20 = arith.constant dense<0.000000e+00> : vector<44x272xf32>
    %27 = tpu.matmul %24, %26, %cst_20 {dimension_numbers = #tpu.dot_dimension_numbers<[1], [0], [0], [1], [0, 0, 1, 1], [], []>} : vector<44x252xbf16>, vector<252x272xbf16>, vector<44x272xf32> -> vector<44x272xf32>
    %28 = arith.addf %23, %27 : vector<44x272xf32>
    %29 = vector.extract_strided_slice %9 {offsets = [8, 0], sizes = [44, 252], strides = [1, 1]} : vector<52x252xbf16> to vector<44x252xbf16>
    %c4 = arith.constant 4 : index
    %c0_21 = arith.constant 0 : index
    %c0_22 = arith.constant 0 : index
    %30 = vector.load %arg3[%c4, %c0_21, %c0_22] : memref<5x252x272xbf16, #tpu.memory_space<vmem>>, vector<1x252x272xbf16>
    %31 = vector.shape_cast %30 : vector<1x252x272xbf16> to vector<252x272xbf16>
    %cst_23 = arith.constant dense<0.000000e+00> : vector<44x272xf32>
    %32 = tpu.matmul %29, %31, %cst_23 {dimension_numbers = #tpu.dot_dimension_numbers<[1], [0], [0], [1], [0, 0, 1, 1], [], []>} : vector<44x252xbf16>, vector<252x272xbf16>, vector<44x272xf32> -> vector<44x272xf32>
    %33 = arith.addf %28, %32 : vector<44x272xf32>
    %cst_24 = arith.constant 0.000000e+00 : f32
    %34 = vector.broadcast %cst_24 : f32 to vector<44x272xf32>
    %35 = arith.maximumf %33, %34 : vector<44x272xf32>
    %36 = arith.truncf %35 : vector<44x272xf32> to vector<44x272xbf16>
    %c0_25 = arith.constant 0 : index
    %c0_26 = arith.constant 0 : index
    %37 = vector.load %arg6[%c0_25, %c0_26] : memref<22x44xbf16, #tpu.memory_space<vmem>>, vector<22x44xbf16>
    %cst_27 = arith.constant dense<0.000000e+00> : vector<22x272xf32>
    %38 = tpu.matmul %37, %36, %cst_27 {dimension_numbers = #tpu.dot_dimension_numbers<[1], [0], [0], [1], [0, 0, 1, 1], [], []>} : vector<22x44xbf16>, vector<44x272xbf16>, vector<22x272xf32> -> vector<22x272xf32>
    %39 = arith.truncf %38 : vector<22x272xf32> to vector<22x272xbf16>
    %40 = vector.extract_strided_slice %39 {offsets = [0, 0], sizes = [16, 272], strides = [1, 1]} : vector<22x272xbf16> to vector<16x272xbf16>
    %c0_28 = arith.constant 0 : index
    %c0_29 = arith.constant 0 : index
    %c0_30 = arith.constant 0 : index
    %41 = vector.load %arg4[%c0_28, %c0_29, %c0_30] : memref<4x272x600xbf16, #tpu.memory_space<vmem>>, vector<1x272x600xbf16>
    %42 = vector.shape_cast %41 : vector<1x272x600xbf16> to vector<272x600xbf16>
    %cst_31 = arith.constant dense<0.000000e+00> : vector<16x600xf32>
    %43 = tpu.matmul %40, %42, %cst_31 {dimension_numbers = #tpu.dot_dimension_numbers<[1], [0], [0], [1], [0, 0, 1, 1], [], []>} : vector<16x272xbf16>, vector<272x600xbf16>, vector<16x600xf32> -> vector<16x600xf32>
    %44 = vector.extract_strided_slice %39 {offsets = [2, 0], sizes = [16, 272], strides = [1, 1]} : vector<22x272xbf16> to vector<16x272xbf16>
    %c1_32 = arith.constant 1 : index
    %c0_33 = arith.constant 0 : index
    %c0_34 = arith.constant 0 : index
    %45 = vector.load %arg4[%c1_32, %c0_33, %c0_34] : memref<4x272x600xbf16, #tpu.memory_space<vmem>>, vector<1x272x600xbf16>
    %46 = vector.shape_cast %45 : vector<1x272x600xbf16> to vector<272x600xbf16>
    %cst_35 = arith.constant dense<0.000000e+00> : vector<16x600xf32>
    %47 = tpu.matmul %44, %46, %cst_35 {dimension_numbers = #tpu.dot_dimension_numbers<[1], [0], [0], [1], [0, 0, 1, 1], [], []>} : vector<16x272xbf16>, vector<272x600xbf16>, vector<16x600xf32> -> vector<16x600xf32>
    %48 = arith.addf %43, %47 : vector<16x600xf32>
    %49 = vector.extract_strided_slice %39 {offsets = [4, 0], sizes = [16, 272], strides = [1, 1]} : vector<22x272xbf16> to vector<16x272xbf16>
    %c2_36 = arith.constant 2 : index
    %c0_37 = arith.constant 0 : index
    %c0_38 = arith.constant 0 : index
    %50 = vector.load %arg4[%c2_36, %c0_37, %c0_38] : memref<4x272x600xbf16, #tpu.memory_space<vmem>>, vector<1x272x600xbf16>
    %51 = vector.shape_cast %50 : vector<1x272x600xbf16> to vector<272x600xbf16>
    %cst_39 = arith.constant dense<0.000000e+00> : vector<16x600xf32>
    %52 = tpu.matmul %49, %51, %cst_39 {dimension_numbers = #tpu.dot_dimension_numbers<[1], [0], [0], [1], [0, 0, 1, 1], [], []>} : vector<16x272xbf16>, vector<272x600xbf16>, vector<16x600xf32> -> vector<16x600xf32>
    %53 = arith.addf %48, %52 : vector<16x600xf32>
    %54 = vector.extract_strided_slice %39 {offsets = [6, 0], sizes = [16, 272], strides = [1, 1]} : vector<22x272xbf16> to vector<16x272xbf16>
    %c3_40 = arith.constant 3 : index
    %c0_41 = arith.constant 0 : index
    %c0_42 = arith.constant 0 : index
    %55 = vector.load %arg4[%c3_40, %c0_41, %c0_42] : memref<4x272x600xbf16, #tpu.memory_space<vmem>>, vector<1x272x600xbf16>
    %56 = vector.shape_cast %55 : vector<1x272x600xbf16> to vector<272x600xbf16>
    %cst_43 = arith.constant dense<0.000000e+00> : vector<16x600xf32>
    %57 = tpu.matmul %54, %56, %cst_43 {dimension_numbers = #tpu.dot_dimension_numbers<[1], [0], [0], [1], [0, 0, 1, 1], [], []>} : vector<16x272xbf16>, vector<272x600xbf16>, vector<16x600xf32> -> vector<16x600xf32>
    %58 = arith.addf %53, %57 : vector<16x600xf32>
    %cst_44 = arith.constant 0.000000e+00 : f32
    %59 = vector.broadcast %cst_44 : f32 to vector<16x600xf32>
    %60 = arith.maximumf %58, %59 : vector<16x600xf32>
    %61 = arith.truncf %60 : vector<16x600xf32> to vector<16x600xbf16>
    %62 = vector.extract_strided_slice %61 {offsets = [0, 0], sizes = [2, 600], strides = [1, 1]} : vector<16x600xbf16> to vector<2x600xbf16>
    %c0_45 = arith.constant 0 : index
    %c0_46 = arith.constant 0 : index
    %c0_47 = arith.constant 0 : index
    %63 = vector.load %arg7[%c0_45, %c0_46, %c0_47] : memref<8x600x84xbf16, #tpu.memory_space<vmem>>, vector<1x600x84xbf16>
    %64 = vector.shape_cast %63 : vector<1x600x84xbf16> to vector<600x84xbf16>
    %cst_48 = arith.constant dense<0.000000e+00> : vector<2x84xf32>
    %65 = tpu.matmul %62, %64, %cst_48 {dimension_numbers = #tpu.dot_dimension_numbers<[1], [0], [0], [1], [0, 0, 1, 1], [], []>} : vector<2x600xbf16>, vector<600x84xbf16>, vector<2x84xf32> -> vector<2x84xf32>
    %66 = vector.extract_strided_slice %61 {offsets = [2, 0], sizes = [2, 600], strides = [1, 1]} : vector<16x600xbf16> to vector<2x600xbf16>
    %c1_49 = arith.constant 1 : index
    %c0_50 = arith.constant 0 : index
    %c0_51 = arith.constant 0 : index
    %67 = vector.load %arg7[%c1_49, %c0_50, %c0_51] : memref<8x600x84xbf16, #tpu.memory_space<vmem>>, vector<1x600x84xbf16>
    %68 = vector.shape_cast %67 : vector<1x600x84xbf16> to vector<600x84xbf16>
    %cst_52 = arith.constant dense<0.000000e+00> : vector<2x84xf32>
    %69 = tpu.matmul %66, %68, %cst_52 {dimension_numbers = #tpu.dot_dimension_numbers<[1], [0], [0], [1], [0, 0, 1, 1], [], []>} : vector<2x600xbf16>, vector<600x84xbf16>, vector<2x84xf32> -> vector<2x84xf32>
    %70 = arith.addf %65, %69 : vector<2x84xf32>
    %71 = vector.extract_strided_slice %61 {offsets = [4, 0], sizes = [2, 600], strides = [1, 1]} : vector<16x600xbf16> to vector<2x600xbf16>
    %c2_53 = arith.constant 2 : index
    %c0_54 = arith.constant 0 : index
    %c0_55 = arith.constant 0 : index
    %72 = vector.load %arg7[%c2_53, %c0_54, %c0_55] : memref<8x600x84xbf16, #tpu.memory_space<vmem>>, vector<1x600x84xbf16>
    %73 = vector.shape_cast %72 : vector<1x600x84xbf16> to vector<600x84xbf16>
    %cst_56 = arith.constant dense<0.000000e+00> : vector<2x84xf32>
    %74 = tpu.matmul %71, %73, %cst_56 {dimension_numbers = #tpu.dot_dimension_numbers<[1], [0], [0], [1], [0, 0, 1, 1], [], []>} : vector<2x600xbf16>, vector<600x84xbf16>, vector<2x84xf32> -> vector<2x84xf32>
    %75 = arith.addf %70, %74 : vector<2x84xf32>
    %76 = vector.extract_strided_slice %61 {offsets = [6, 0], sizes = [2, 600], strides = [1, 1]} : vector<16x600xbf16> to vector<2x600xbf16>
    %c3_57 = arith.constant 3 : index
    %c0_58 = arith.constant 0 : index
    %c0_59 = arith.constant 0 : index
    %77 = vector.load %arg7[%c3_57, %c0_58, %c0_59] : memref<8x600x84xbf16, #tpu.memory_space<vmem>>, vector<1x600x84xbf16>
    %78 = vector.shape_cast %77 : vector<1x600x84xbf16> to vector<600x84xbf16>
    %cst_60 = arith.constant dense<0.000000e+00> : vector<2x84xf32>
    %79 = tpu.matmul %76, %78, %cst_60 {dimension_numbers = #tpu.dot_dimension_numbers<[1], [0], [0], [1], [0, 0, 1, 1], [], []>} : vector<2x600xbf16>, vector<600x84xbf16>, vector<2x84xf32> -> vector<2x84xf32>
    %80 = arith.addf %75, %79 : vector<2x84xf32>
    %81 = vector.extract_strided_slice %61 {offsets = [8, 0], sizes = [2, 600], strides = [1, 1]} : vector<16x600xbf16> to vector<2x600xbf16>
    %c4_61 = arith.constant 4 : index
    %c0_62 = arith.constant 0 : index
    %c0_63 = arith.constant 0 : index
    %82 = vector.load %arg7[%c4_61, %c0_62, %c0_63] : memref<8x600x84xbf16, #tpu.memory_space<vmem>>, vector<1x600x84xbf16>
    %83 = vector.shape_cast %82 : vector<1x600x84xbf16> to vector<600x84xbf16>
    %cst_64 = arith.constant dense<0.000000e+00> : vector<2x84xf32>
    %84 = tpu.matmul %81, %83, %cst_64 {dimension_numbers = #tpu.dot_dimension_numbers<[1], [0], [0], [1], [0, 0, 1, 1], [], []>} : vector<2x600xbf16>, vector<600x84xbf16>, vector<2x84xf32> -> vector<2x84xf32>
    %85 = arith.addf %80, %84 : vector<2x84xf32>
    %86 = vector.extract_strided_slice %61 {offsets = [10, 0], sizes = [2, 600], strides = [1, 1]} : vector<16x600xbf16> to vector<2x600xbf16>
    %c5 = arith.constant 5 : index
    %c0_65 = arith.constant 0 : index
    %c0_66 = arith.constant 0 : index
    %87 = vector.load %arg7[%c5, %c0_65, %c0_66] : memref<8x600x84xbf16, #tpu.memory_space<vmem>>, vector<1x600x84xbf16>
    %88 = vector.shape_cast %87 : vector<1x600x84xbf16> to vector<600x84xbf16>
    %cst_67 = arith.constant dense<0.000000e+00> : vector<2x84xf32>
    %89 = tpu.matmul %86, %88, %cst_67 {dimension_numbers = #tpu.dot_dimension_numbers<[1], [0], [0], [1], [0, 0, 1, 1], [], []>} : vector<2x600xbf16>, vector<600x84xbf16>, vector<2x84xf32> -> vector<2x84xf32>
    %90 = arith.addf %85, %89 : vector<2x84xf32>
    %91 = vector.extract_strided_slice %61 {offsets = [12, 0], sizes = [2, 600], strides = [1, 1]} : vector<16x600xbf16> to vector<2x600xbf16>
    %c6 = arith.constant 6 : index
    %c0_68 = arith.constant 0 : index
    %c0_69 = arith.constant 0 : index
    %92 = vector.load %arg7[%c6, %c0_68, %c0_69] : memref<8x600x84xbf16, #tpu.memory_space<vmem>>, vector<1x600x84xbf16>
    %93 = vector.shape_cast %92 : vector<1x600x84xbf16> to vector<600x84xbf16>
    %cst_70 = arith.constant dense<0.000000e+00> : vector<2x84xf32>
    %94 = tpu.matmul %91, %93, %cst_70 {dimension_numbers = #tpu.dot_dimension_numbers<[1], [0], [0], [1], [0, 0, 1, 1], [], []>} : vector<2x600xbf16>, vector<600x84xbf16>, vector<2x84xf32> -> vector<2x84xf32>
    %95 = arith.addf %90, %94 : vector<2x84xf32>
    %96 = vector.extract_strided_slice %61 {offsets = [14, 0], sizes = [2, 600], strides = [1, 1]} : vector<16x600xbf16> to vector<2x600xbf16>
    %c7 = arith.constant 7 : index
    %c0_71 = arith.constant 0 : index
    %c0_72 = arith.constant 0 : index
    %97 = vector.load %arg7[%c7, %c0_71, %c0_72] : memref<8x600x84xbf16, #tpu.memory_space<vmem>>, vector<1x600x84xbf16>
    %98 = vector.shape_cast %97 : vector<1x600x84xbf16> to vector<600x84xbf16>
    %cst_73 = arith.constant dense<0.000000e+00> : vector<2x84xf32>
    %99 = tpu.matmul %96, %98, %cst_73 {dimension_numbers = #tpu.dot_dimension_numbers<[1], [0], [0], [1], [0, 0, 1, 1], [], []>} : vector<2x600xbf16>, vector<600x84xbf16>, vector<2x84xf32> -> vector<2x84xf32>
    %100 = arith.addf %95, %99 : vector<2x84xf32>
    %c0_74 = arith.constant 0 : index
    %c0_75 = arith.constant 0 : index
    %101 = vector.load %arg8[%c0_74, %c0_75] : memref<1x84xf32, #tpu.memory_space<vmem>>, vector<1x84xf32>
    %102 = vector.broadcast %101 : vector<1x84xf32> to vector<2x84xf32>
    %103 = arith.addf %100, %102 : vector<2x84xf32>
    %cst_76 = arith.constant 0.000000e+00 : f32
    %104 = vector.broadcast %cst_76 : f32 to vector<2x84xf32>
    %105 = arith.maximumf %103, %104 : vector<2x84xf32>
    %106 = arith.truncf %105 : vector<2x84xf32> to vector<2x84xbf16>
    %c0_77 = arith.constant 0 : index
    %c0_78 = arith.constant 0 : index
    %107 = vector.load %arg9[%c0_77, %c0_78] : memref<84x40xbf16, #tpu.memory_space<vmem>>, vector<84x40xbf16>
    %cst_79 = arith.constant dense<0.000000e+00> : vector<2x40xf32>
    %108 = tpu.matmul %106, %107, %cst_79 {dimension_numbers = #tpu.dot_dimension_numbers<[1], [0], [0], [1], [0, 0, 1, 1], [], []>} : vector<2x84xbf16>, vector<84x40xbf16>, vector<2x40xf32> -> vector<2x40xf32>
    %c0_80 = arith.constant 0 : index
    %c0_81 = arith.constant 0 : index
    %109 = vector.load %arg10[%c0_80, %c0_81] : memref<1x40xf32, #tpu.memory_space<vmem>>, vector<1x40xf32>
    %110 = vector.broadcast %109 : vector<1x40xf32> to vector<2x40xf32>
    %111 = arith.addf %108, %110 : vector<2x40xf32>
    %c0_82 = arith.constant 0 : index
    %c0_83 = arith.constant 0 : index
    %c0_84 = arith.constant 0 : index
    %112 = vector.load %arg11[%c0_82, %c0_83, %c0_84] : memref<1x2x40xf32, #tpu.memory_space<vmem>>, vector<1x2x40xf32>
    %113 = vector.shape_cast %112 : vector<1x2x40xf32> to vector<2x40xf32>
    %114 = vector.shape_cast %111 : vector<2x40xf32> to vector<1x2x40xf32>
    tpu.vector_store %arg11[%c0_82, %c0_83, %c0_84], %114 {strides = array<i32>} : memref<1x2x40xf32, #tpu.memory_space<vmem>>, vector<1x2x40xf32>,
    return
  }
  func.func @transform_0(%arg0: i32) -> (i32, i32, i32) {
    %c0_i32 = arith.constant 0 : i32
    %c0_i32_0 = arith.constant 0 : i32
    %c0_i32_1 = arith.constant 0 : i32
    return %arg0, %c0_i32, %c0_i32_0 : i32, i32, i32
  }
  func.func @transform_1(%arg0: i32) -> (i32, i32) {
    %c0_i32 = arith.constant 0 : i32
    %c0_i32_0 = arith.constant 0 : i32
    %c0_i32_1 = arith.constant 0 : i32
    return %c0_i32, %c0_i32_0 : i32, i32
  }
  func.func @transform_2(%arg0: i32) -> (i32, i32, i32) {
    %c0_i32 = arith.constant 0 : i32
    %c0_i32_0 = arith.constant 0 : i32
    %c0_i32_1 = arith.constant 0 : i32
    %c0_i32_2 = arith.constant 0 : i32
    return %c0_i32, %c0_i32_0, %c0_i32_1 : i32, i32, i32
  }
  func.func @transform_3(%arg0: i32) -> (i32, i32, i32) {
    %c0_i32 = arith.constant 0 : i32
    %c0_i32_0 = arith.constant 0 : i32
    %c0_i32_1 = arith.constant 0 : i32
    %c0_i32_2 = arith.constant 0 : i32
    return %c0_i32, %c0_i32_0, %c0_i32_1 : i32, i32, i32
  }
  func.func @transform_4(%arg0: i32) -> (i32, i32) {
    %c0_i32 = arith.constant 0 : i32
    %c0_i32_0 = arith.constant 0 : i32
    %c0_i32_1 = arith.constant 0 : i32
    return %c0_i32, %c0_i32_0 : i32, i32
  }
  func.func @transform_5(%arg0: i32) -> (i32, i32) {
    %c0_i32 = arith.constant 0 : i32
    %c0_i32_0 = arith.constant 0 : i32
    %c0_i32_1 = arith.constant 0 : i32
    return %c0_i32, %c0_i32_0 : i32, i32
  }
  func.func @transform_6(%arg0: i32) -> (i32, i32, i32) {
    %c0_i32 = arith.constant 0 : i32
    %c0_i32_0 = arith.constant 0 : i32
    %c0_i32_1 = arith.constant 0 : i32
    %c0_i32_2 = arith.constant 0 : i32
    return %c0_i32, %c0_i32_0, %c0_i32_1 : i32, i32, i32
  }
  func.func @transform_7(%arg0: i32) -> (i32, i32) {
    %c0_i32 = arith.constant 0 : i32
    %c0_i32_0 = arith.constant 0 : i32
    %c0_i32_1 = arith.constant 0 : i32
    return %c0_i32, %c0_i32_0 : i32, i32
  }
  func.func @transform_8(%arg0: i32) -> (i32, i32) {
    %c0_i32 = arith.constant 0 : i32
    %c0_i32_0 = arith.constant 0 : i32
    %c0_i32_1 = arith.constant 0 : i32
    return %c0_i32, %c0_i32_0 : i32, i32
  }
  func.func @transform_9(%arg0: i32) -> (i32, i32) {
    %c0_i32 = arith.constant 0 : i32
    %c0_i32_0 = arith.constant 0 : i32
    %c0_i32_1 = arith.constant 0 : i32
    return %c0_i32, %c0_i32_0 : i32, i32
  }
  func.func @transform_10(%arg0: i32) -> (i32, i32, i32) {
    %c0_i32 = arith.constant 0 : i32
    %c0_i32_0 = arith.constant 0 : i32
    %c0_i32_1 = arith.constant 0 : i32
    return %arg0, %c0_i32, %c0_i32_0 : i32, i32, i32
  }
}

</mosaic_0001>

<bundles_post_ra>
// kernel: lenet_small_forward.1
= control target key start
LH: loop header
LB: loop body
LE: loop exit
PB: predicated region body
PF: predicated region fallthrough
CT: control target
= control target key end

     0   :  { %vm284_vm0 = vcmask 834560   ;;  %vm306_vm1 = vcmask 1042432   ;;  %v14342_v47 = vmov 0   ;;  %vm492_vm2 = vcmask 1043456   ;;  %s17769_s0 = inlined_call_operand.vmem [shape: bf16[1,104,230], index: 0, kind: input, shape index: {}]   ;;  %s17770_s1 = inlined_call_operand.vmem [shape: bf16[230,252], index: 1, kind: input, shape index: {}]   ;;  %s17771_s2 = inlined_call_operand.vmem [shape: bf16[5,252,272], index: 2, kind: input, shape index: {}]   ;;  %s17772_s3 = inlined_call_operand.vmem [shape: bf16[4,272,600], index: 3, kind: input, shape index: {}]   ;;  %s17773_s4 = inlined_call_operand.vmem [shape: bf16[52,104], index: 4, kind: input, shape index: {}]   ;;  %s17774_s5 = inlined_call_operand.vmem [shape: bf16[22,44], index: 5, kind: input, shape index: {}]   ;;  %s17775_s6 = inlined_call_operand.vmem [shape: bf16[8,600,84], index: 6, kind: input, shape index: {}]   ;;  %s17776_s7 = inlined_call_operand.vmem [shape: f32[1,84], index: 7, kind: input, shape index: {}]   ;;  %s17777_s8 = inlined_call_operand.vmem [shape: bf16[84,40], index: 8, kind: input, shape index: {}]   ;;  %s17778_s9 = inlined_call_operand.vmem [shape: f32[1,40], index: 9, kind: input, shape index: {}]   ;;  %s17779_s10 = inlined_call_operand.hbm [shape: f32[1,2,40], index: 10, kind: output, shape index: {}]  }
   0x1   :  { %v13142_v0 = vld [vmem:[%s17770_s1 + $0x4] ss:$8 sps:$4 sm:$0xff]   ;;  %v13144_v1 = vld [vmem:[%s17770_s1] ss:$8 sps:$4 sm:$0xff]   ;;  %v13145_v2 = vld [vmem:[%s17770_s1 + $0x14] ss:$8 sps:$4 sm:$0xff]   ;;  %531 = vmatprep.mubr.bf16.mxu1 %v14342_v47 }
   0x2   :  { %313 = vmatprep.subr.bf16.mxu0 %v13142_v0  ;;  %v13147_v3 = vld [vmem:[%s17770_s1 + $0x10] ss:$8 sps:$4 sm:$0xff]   ;;  %v13148_v4 = vld [vmem:[%s17770_s1 + $0x24] ss:$8 sps:$4 sm:$0xff]   ;;  %v13150_v5 = vld [vmem:[%s17770_s1 + $0x20] ss:$8 sps:$4 sm:$0xff]  }
   0x3   :  { %314 = vmatpush1.bf16.msra.mxu0 %v13144_v1  ;;  %v13151_v6 = vld [vmem:[%s17770_s1 + $0x34] ss:$8 sps:$4 sm:$0xff]   ;;  %v13153_v7 = vld [vmem:[%s17770_s1 + $0x30] ss:$8 sps:$4 sm:$0xff]   ;;  %v13154_v8 = vld [vmem:[%s17770_s1 + $0x44] ss:$8 sps:$4 sm:$0xff]  }
   0x4   :  { %315 = vmatprep.subr.bf16.mxu0 %v13145_v2  ;;  %v13156_v9 = vld [vmem:[%s17770_s1 + $0x40] ss:$8 sps:$4 sm:$0xff]   ;;  %v13157_v10 = vld [vmem:[%s17770_s1 + $0x54] ss:$8 sps:$4 sm:$0xff]   ;;  %v13159_v11 = vld [vmem:[%s17770_s1 + $0x50] ss:$8 sps:$4 sm:$0xff]  }
   0x5   :  { %v13160_v12 = vld [vmem:[%s17770_s1 + $0x64] ss:$8 sps:$4 sm:$0xff]   ;;  %v13162_v14 = vld [vmem:[%s17770_s1 + $0x60] ss:$8 sps:$4 sm:$0xff]   ;;  %v13163_v15 = vld [vmem:[%s17770_s1 + $0x74] ss:$8 sps:$4 sm:$0xff]  }
   0x6   :  { %v13188_v13 = vld [vmem:[%s17769_s0 + $0x4] ss:$8 sps:$4 sm:$0xff]   ;;  %v13165_v16 = vld [vmem:[%s17770_s1 + $0x70] ss:$8 sps:$4 sm:$0xff]   ;;  %v13168_v18 = vld [vmem:[%s17770_s1 + $0x80] ss:$8 sps:$4 sm:$0xff]  }
   0x7   :  { %316 = vmatpush1.bf16.msra.mxu0 %v13147_v3  ;;  %10086 = vmatprep.mubr.msk.bf16.mxu0 %vm284_vm0, %v13188_v13  ;;  %v13166_v17 = vld [vmem:[%s17770_s1 + $0x84] ss:$8 sps:$4 sm:$0xff]   ;;  %v13169_v19 = vld [vmem:[%s17770_s1 + $0x94] ss:$8 sps:$4 sm:$0xff]   ;;  %v13171_v20 = vld [vmem:[%s17770_s1 + $0x90] ss:$8 sps:$4 sm:$0xff]  }
   0x8   :  { %317 = vmatprep.subr.bf16.mxu0 %v13148_v4  ;;  %v13172_v21 = vld [vmem:[%s17770_s1 + $0xa4] ss:$8 sps:$4 sm:$0xff]   ;;  %v13174_v22 = vld [vmem:[%s17770_s1 + $0xa0] ss:$8 sps:$4 sm:$0xff]   ;;  %v13175_v23 = vld [vmem:[%s17770_s1 + $0xb4] ss:$8 sps:$4 sm:$0xff]  }
   0x9   :  { %v13177_v24 = vld [vmem:[%s17770_s1 + $0xb0] ss:$8 sps:$4 sm:$0xff]   ;;  %v13178_v25 = vld [vmem:[%s17770_s1 + $0xc4] ss:$8 sps:$4 sm:$0xff]   ;;  %v13180_v26 = vld [vmem:[%s17770_s1 + $0xc0] ss:$8 sps:$4 sm:$0xff]  }
   0xa   :  { %v13181_v27 = vld [vmem:[%s17770_s1 + $0xd4] ss:$8 sps:$4 sm:$0xff]   ;;  %v78_v28 = vld [vmem:[%s17770_s1 + $0xe0] sm:$0x77]  ;;  %v13183_v29 = vld [vmem:[%s17770_s1 + $0xd0] ss:$8 sps:$4 sm:$0xff]  }
   0xb   :  { %318 = vmatpush1.bf16.msra.mxu0 %v13150_v5  ;;  %v10083_v30 = vcombine.low %v78_v28, %v78_v28  ;;  %v10084_v31 = vcombine.high %v78_v28, %v78_v28  ;;  %v13186_v33 = vld [vmem:[%s17769_s0] ss:$8 sps:$4 sm:$0xff]   ;;  %v13189_v34 = vld [vmem:[%s17769_s0 + $0x14] ss:$8 sps:$4 sm:$0xff]   ;;  %v13191_v35 = vld [vmem:[%s17769_s0 + $0x10] ss:$8 sps:$4 sm:$0xff]  }
   0xc   :  { %319 = vmatprep.subr.bf16.mxu0 %v13151_v6  ;;  %v13192_v36 = vld [vmem:[%s17769_s0 + $0x24] ss:$8 sps:$4 sm:$0xff]   ;;  %v13194_v37 = vld [vmem:[%s17769_s0 + $0x20] ss:$8 sps:$4 sm:$0xff]   ;;  %v13195_v38 = vld [vmem:[%s17769_s0 + $0x34] ss:$8 sps:$4 sm:$0xff]  }
   0xd   :  { %v308_v32 = vsel %vm306_vm1, %v10083_v30, 0  ;;  %v13197_v39 = vld [vmem:[%s17769_s0 + $0x30] ss:$8 sps:$4 sm:$0xff]   ;;  %v13198_v40 = vld [vmem:[%s17769_s0 + $0x44] ss:$8 sps:$4 sm:$0xff]   ;;  %vm479_vm3 = vcmask 850944  }
   0xe   :  { %v13200_v41 = vld [vmem:[%s17769_s0 + $0x40] ss:$8 sps:$4 sm:$0xff]   ;;  %v13201_v42 = vld [vmem:[%s17769_s0 + $0x54] ss:$8 sps:$4 sm:$0xff]   ;;  %v13203_v44 = vld [vmem:[%s17769_s0 + $0x50] ss:$8 sps:$4 sm:$0xff]  }
   0xf   :  { %320 = vmatpush1.bf16.msra.mxu0 %v13153_v7  ;;  %v49_v43 = vld [vmem:[%s17769_s0 + $0x60] sm:$0xff]  ;;  %v13237_v48 = vld [vmem:[%s17771_s2 + $0x248] ss:$12 sps:$4 sm:$0xff]   ;;  %v13252_v54 = vld [vmem:[%s17771_s2 + $0x290] ss:$12 sps:$4 sm:$0xff]   ;;  %vm990_vm4 = vcmask 1045504  }
  0x10   :  { %321 = vmatprep.subr.bf16.mxu0 %v13154_v8  ;;  %v10054_v45 = vcombine.high %v49_v43, %v49_v43  ;;  %v10053_v46 = vcombine.low %v49_v43, %v49_v43  ;;  %v13238_v49 = vld [vmem:[%s17771_s2 + $0x188] ss:$12 sps:$4 sm:$0xff]   ;;  %v13242_v50 = vld [vmem:[%s17771_s2 + $0x260] ss:$12 sps:$4 sm:$0xff]   ;;  %v13247_v52 = vld [vmem:[%s17771_s2 + $0x278] ss:$12 sps:$4 sm:$0xff]  }
  0x11   :  { %v13243_v51 = vld [vmem:[%s17771_s2 + $0x1a0] ss:$12 sps:$4 sm:$0xff]   ;;  %v13248_v53 = vld [vmem:[%s17771_s2 + $0x1b8] ss:$12 sps:$4 sm:$0xff]   ;;  %v13253_v55 = vld [vmem:[%s17771_s2 + $0x1d0] ss:$12 sps:$4 sm:$0xff]  }
  0x13   :  { %322 = vmatpush1.bf16.msra.mxu0 %v13156_v9 }
  0x14   :  { %323 = vmatprep.subr.bf16.mxu0 %v13157_v10 }
  0x17   :  { %324 = vmatpush1.bf16.msra.mxu0 %v13159_v11 }
  0x18   :  { %325 = vmatprep.subr.bf16.mxu0 %v13160_v12 }
  0x1b   :  { %326 = vmatpush1.bf16.msra.mxu0 %v13162_v14 }
  0x1c   :  { %327 = vmatprep.subr.bf16.mxu0 %v13163_v15 }
  0x1f   :  { %328 = vmatpush1.bf16.msra.mxu0 %v13165_v16 }
  0x20   :  { %329 = vmatprep.subr.bf16.mxu0 %v13166_v17 }
  0x23   :  { %330 = vmatpush1.bf16.msra.mxu0 %v13168_v18 }
  0x24   :  { %331 = vmatprep.subr.bf16.mxu0 %v13169_v19 }
  0x27   :  { %332 = vmatpush1.bf16.msra.mxu0 %v13171_v20 }
  0x28   :  { %333 = vmatprep.subr.bf16.mxu0 %v13172_v21 }
  0x2b   :  { %334 = vmatpush1.bf16.msra.mxu0 %v13174_v22 }
  0x2c   :  { %335 = vmatprep.subr.bf16.mxu0 %v13175_v23 }
  0x2f   :  { %336 = vmatpush1.bf16.msra.mxu0 %v13177_v24 }
  0x30   :  { %337 = vmatprep.subr.bf16.mxu0 %v13178_v25 }
  0x33   :  { %338 = vmatpush1.bf16.msra.mxu0 %v13180_v26 }
  0x34   :  { %339 = vmatprep.subr.bf16.mxu0 %v13181_v27 }
  0x37   :  { %340 = vmatpush1.bf16.msra.mxu0 %v13183_v29 }
  0x38   :  { %10085 = vmatprep.subr.msk.bf16.mxu0 %vm306_vm1, %v10084_v31 }
  0x3b   :  { %342 = vmatpush1.bf16.msra.mxu0 %v308_v32 }
  0x3c   :  { %12144 = vmatprep.subr.bf16.mxu0 %v13237_v48 }
  0x3e   :  { %346 = vmatmul.mubr.bf16.vlgmr.msra.gmra.mrb[0].mxu0 %v13186_v33 }
  0x3f   :  { %10087 = vmatprep.mubr.msk.bf16.mxu0 %vm284_vm0, %v13189_v34  ;;  %12145 = vmatpush3.bf16.msra.mxu0 %v13238_v49 }
  0x40   :  { %12146 = vmatprep.subr.bf16.mxu0 %v13242_v50 }
  0x43   :  { %12147 = vmatpush3.bf16.msra.mxu0 %v13243_v51 }
  0x44   :  { %12148 = vmatprep.subr.bf16.mxu0 %v13247_v52 }
  0x46   :  { %356 = vmatmul.mubr.bf16.gmra.mrb[4].mxu0 %v13191_v35 }
  0x47   :  { %10088 = vmatprep.mubr.msk.bf16.mxu0 %vm284_vm0, %v13192_v36  ;;  %12149 = vmatpush3.bf16.msra.mxu0 %v13248_v53 }
  0x48   :  { %12150 = vmatprep.subr.bf16.mxu0 %v13252_v54 }
  0x4b   :  { %12151 = vmatpush3.bf16.msra.mxu0 %v13253_v55 }
  0x4e   :  { %366 = vmatmul.mubr.bf16.gmra.mrb[8].mxu0 %v13194_v37 }
  0x4f   :  { %10089 = vmatprep.mubr.msk.bf16.mxu0 %vm284_vm0, %v13195_v38 }
  0x56   :  { %376 = vmatmul.mubr.bf16.gmra.mrb[12].mxu0 %v13197_v39 }
  0x57   :  { %10090 = vmatprep.mubr.msk.bf16.mxu0 %vm284_vm0, %v13198_v40 }
  0x5e   :  { %386 = vmatmul.mubr.bf16.gmra.mrb[16].mxu0 %v13200_v41 }
  0x5f   :  { %10091 = vmatprep.mubr.msk.bf16.mxu0 %vm284_vm0, %v13201_v42 }
  0x66   :  { %396 = vmatmul.mubr.bf16.gmra.mrb[20].mxu0 %v13203_v44 }
  0x67   :  { %10092 = vmatprep.mubr.msk.bf16.mxu0 %vm284_vm0, %v10054_v45 }
  0x6e   :  { %406 = vmatmul.mubr.bf16.gmra.mrb[24].mxu0 %v10053_v46 }
 0x111   :  { %v347_v56 = vpop.f32.mrb[0].mxu0 }
 0x112   :  { %v349_v57 = vpop.f32.mrb[1].mxu0  ;;  %v414_v58 = vmax.f32 %v347_v56, 0.0 }
 0x113   :  { %v351_v59 = vpop.f32.mrb[2].mxu0  ;;  %v415_v62 = vmax.f32 %v349_v57, 0.0 }
 0x114   :  { %v416_v60 = vmax.f32 %v351_v59, 0.0  ;;  %v353_v61 = vpop.f32.mrb[3].mxu0 }
 0x115   :  { %v417_v63 = vmax.f32 %v353_v61, 0.0 }
 0x116   :  { %v440_v0 = vpack.c.bf16 %v416_v60, %v414_v58  ;;  %v13212_v58 = vld [vmem:[%s17771_s2 + $0x184] ss:$12 sps:$4 sm:$0xff]  }
 0x117   :  { %v441_v1 = vpack.c.bf16 %v417_v63, %v415_v62  ;;  %v13206_v62 = vld [vmem:[%s17773_s4] sm:$0xff]  }
 0x119   :  { %v357_v2 = vpop.f32.mrb[4].mxu0  ;;  %499 = vmatprep.subr.bf16.mxu1 %v441_v1  ;;  %v13215_v1 = vld [vmem:[%s17771_s2 + $0x19c] ss:$12 sps:$4 sm:$0xff]  }
 0x11a   :  { %v359_v3 = vpop.f32.mrb[5].mxu0  ;;  %500 = vmatpush1.bf16.msra.mxu1 %v440_v0  ;;  %v418_v4 = vmax.f32 %v357_v2, 0.0  ;;  %v13210_v0 = vld [vmem:[%s17771_s2 + $0x180] ss:$12 sps:$4 sm:$0xff]   ;;  %v13213_v2 = vld [vmem:[%s17771_s2 + $0x198] ss:$12 sps:$4 sm:$0xff]  }
 0x11b   :  { %v361_v5 = vpop.f32.mrb[6].mxu0  ;;  %v419_v8 = vmax.f32 %v359_v3, 0.0  ;;  %v13218_v3 = vld [vmem:[%s17771_s2 + $0x1b4] ss:$12 sps:$4 sm:$0xff]  }
 0x11c   :  { %v420_v6 = vmax.f32 %v361_v5, 0.0  ;;  %v363_v7 = vpop.f32.mrb[7].mxu0  ;;  %v13216_v5 = vld [vmem:[%s17771_s2 + $0x1b0] ss:$12 sps:$4 sm:$0xff]  }
 0x11d   :  { %v421_v9 = vmax.f32 %v363_v7, 0.0  ;;  %v13219_v7 = vld [vmem:[%s17771_s2 + $0x1c8] ss:$12 sps:$4 sm:$0xff]  }
 0x11e   :  { %v442_v10 = vpack.c.bf16 %v420_v6, %v418_v4  ;;  %v13207_v4 = vld [vmem:[%s17773_s4 + $0x8] sm:$0xff]  }
 0x11f   :  { %v443_v11 = vpack.c.bf16 %v421_v9, %v419_v8  ;;  %v13221_v6 = vld [vmem:[%s17771_s2 + $0x1cc] ss:$12 sps:$4 sm:$0xff]   ;;  %v13224_v8 = vld [vmem:[%s17771_s2 + $0x1e4] ss:$12 sps:$4 sm:$0xff]  }
 0x120   :  { %v13208_v9 = vld [vmem:[%s17773_s4 + $0x10] sm:$0xff]  }
 0x121   :  { %v367_v12 = vpop.f32.mrb[8].mxu0  ;;  %501 = vmatprep.subr.bf16.mxu1 %v443_v11  ;;  %v13227_v11 = vld [vmem:[%s17771_s2 + $0x1fc] ss:$12 sps:$4 sm:$0xff]  }
 0x122   :  { %v369_v13 = vpop.f32.mrb[9].mxu0  ;;  %502 = vmatpush1.bf16.msra.mxu1 %v442_v10  ;;  %v422_v14 = vmax.f32 %v367_v12, 0.0  ;;  %v13222_v10 = vld [vmem:[%s17771_s2 + $0x1e0] ss:$12 sps:$4 sm:$0xff]   ;;  %v13225_v12 = vld [vmem:[%s17771_s2 + $0x1f8] ss:$12 sps:$4 sm:$0xff]  }
 0x123   :  { %v371_v15 = vpop.f32.mrb[10].mxu0  ;;  %v423_v18 = vmax.f32 %v369_v13, 0.0  ;;  %v13230_v13 = vld [vmem:[%s17771_s2 + $0x214] ss:$12 sps:$4 sm:$0xff]  }
 0x124   :  { %v424_v16 = vmax.f32 %v371_v15, 0.0  ;;  %v373_v17 = vpop.f32.mrb[11].mxu0  ;;  %v13228_v15 = vld [vmem:[%s17771_s2 + $0x210] ss:$12 sps:$4 sm:$0xff]  }
 0x125   :  { %v425_v19 = vmax.f32 %v373_v17, 0.0  ;;  %v13231_v17 = vld [vmem:[%s17771_s2 + $0x228] ss:$12 sps:$4 sm:$0xff]  }
 0x126   :  { %v444_v20 = vpack.c.bf16 %v424_v16, %v422_v14  ;;  %v13209_v14 = vld [vmem:[%s17773_s4 + $0x18] ss:$0 sps:$4 sm:$0x33]  }
 0x127   :  { %v445_v21 = vpack.c.bf16 %v425_v19, %v423_v18  ;;  %v13233_v16 = vld [vmem:[%s17771_s2 + $0x22c] ss:$12 sps:$4 sm:$0xff]   ;;  %v13236_v18 = vld [vmem:[%s17771_s2 + $0x244] ss:$12 sps:$4 sm:$0xff]  }
 0x128   :  { %v13234_v19 = vld [vmem:[%s17771_s2 + $0x240] ss:$12 sps:$4 sm:$0xff]  }
 0x129   :  { %v377_v22 = vpop.f32.mrb[12].mxu0  ;;  %503 = vmatprep.subr.bf16.mxu1 %v445_v21  ;;  %v13239_v21 = vld [vmem:[%s17771_s2 + $0x258] ss:$12 sps:$4 sm:$0xff]  }
 0x12a   :  { %v379_v23 = vpop.f32.mrb[13].mxu0  ;;  %504 = vmatpush1.bf16.msra.mxu1 %v444_v20  ;;  %v426_v24 = vmax.f32 %v377_v22, 0.0  ;;  %v13241_v20 = vld [vmem:[%s17771_s2 + $0x25c] ss:$12 sps:$4 sm:$0xff]   ;;  %v13246_v22 = vld [vmem:[%s17771_s2 + $0x274] ss:$12 sps:$4 sm:$0xff]  }
 0x12b   :  { %v381_v25 = vpop.f32.mrb[14].mxu0  ;;  %v427_v28 = vmax.f32 %v379_v23, 0.0  ;;  %v13244_v23 = vld [vmem:[%s17771_s2 + $0x270] ss:$12 sps:$4 sm:$0xff]  }
 0x12c   :  { %v428_v26 = vmax.f32 %v381_v25, 0.0  ;;  %v383_v27 = vpop.f32.mrb[15].mxu0  ;;  %v13249_v25 = vld [vmem:[%s17771_s2 + $0x288] ss:$12 sps:$4 sm:$0xff]  }
 0x12d   :  { %v429_v29 = vmax.f32 %v383_v27, 0.0  ;;  %v13257_v27 = vld [vmem:[%s17771_s2 + $0x2a8] ss:$12 sps:$4 sm:$0xff]  }
 0x12e   :  { %v446_v30 = vpack.c.bf16 %v428_v26, %v426_v24  ;;  %v13251_v24 = vld [vmem:[%s17771_s2 + $0x28c] ss:$12 sps:$4 sm:$0xff]   ;;  %v13256_v26 = vld [vmem:[%s17771_s2 + $0x2a4] ss:$12 sps:$4 sm:$0xff]   ;;  %12152 = vmatprep.subr.bf16.mxu0 %v13257_v27 }
 0x12f   :  { %v447_v31 = vpack.c.bf16 %v429_v29, %v427_v28  ;;  %v13254_v28 = vld [vmem:[%s17771_s2 + $0x2a0] ss:$12 sps:$4 sm:$0xff]   ;;  %v13258_v29 = vld [vmem:[%s17771_s2 + $0x1e8] ss:$12 sps:$4 sm:$0xff]  }
 0x130   :  { %12153 = vmatpush3.bf16.msra.mxu0 %v13258_v29 }
 0x131   :  { %v387_v32 = vpop.f32.mrb[16].mxu0  ;;  %505 = vmatprep.subr.bf16.mxu1 %v447_v31  ;;  %v13262_v31 = vld [vmem:[%s17771_s2 + $0x2c0] ss:$12 sps:$4 sm:$0xff]  }
 0x132   :  { %v389_v33 = vpop.f32.mrb[17].mxu0  ;;  %506 = vmatpush1.bf16.msra.mxu1 %v446_v30  ;;  %v430_v34 = vmax.f32 %v387_v32, 0.0  ;;  %v13261_v30 = vld [vmem:[%s17771_s2 + $0x2bc] ss:$12 sps:$4 sm:$0xff]   ;;  %v13259_v32 = vld [vmem:[%s17771_s2 + $0x2b8] ss:$12 sps:$4 sm:$0xff]   ;;  %12154 = vmatprep.subr.bf16.mxu0 %v13262_v31 }
 0x133   :  { %v391_v35 = vpop.f32.mrb[18].mxu0  ;;  %v431_v38 = vmax.f32 %v389_v33, 0.0  ;;  %v13263_v33 = vld [vmem:[%s17771_s2 + $0x200] ss:$12 sps:$4 sm:$0xff]  }
 0x134   :  { %v432_v36 = vmax.f32 %v391_v35, 0.0  ;;  %v393_v37 = vpop.f32.mrb[19].mxu0  ;;  %12155 = vmatpush3.bf16.msra.mxu0 %v13263_v33  ;;  %v13267_v35 = vld [vmem:[%s17771_s2 + $0x2d8] ss:$12 sps:$4 sm:$0xff]  }
 0x135   :  { %v433_v39 = vmax.f32 %v393_v37, 0.0  ;;  %v13268_v37 = vld [vmem:[%s17771_s2 + $0x218] ss:$12 sps:$4 sm:$0xff]   ;;  %12156 = vmatprep.subr.bf16.mxu0 %v13267_v35 }
 0x136   :  { %v448_v40 = vpack.c.bf16 %v432_v36, %v430_v34  ;;  %v13266_v34 = vld [vmem:[%s17771_s2 + $0x2d4] ss:$12 sps:$4 sm:$0xff]   ;;  %v13264_v36 = vld [vmem:[%s17771_s2 + $0x2d0] ss:$12 sps:$4 sm:$0xff]  }
 0x137   :  { %v449_v41 = vpack.c.bf16 %v433_v39, %v431_v38  ;;  %v13269_v38 = vld [vmem:[%s17771_s2 + $0x2ec] ss:$12 sps:$4 sm:$0x3f]   ;;  %v13271_v39 = vld [vmem:[%s17771_s2 + $0x2f0] ss:$12 sps:$4 sm:$0x3f]  }
 0x138   :  { %12157 = vmatpush3.bf16.msra.mxu0 %v13268_v37 }
 0x139   :  { %v397_v42 = vpop.f32.mrb[20].mxu0  ;;  %507 = vmatprep.subr.bf16.mxu1 %v449_v41  ;;  %v13273_v41 = vld [vmem:[%s17771_s2 + $0x230] ss:$12 sps:$4 sm:$0xff]   ;;  %13132 = vmatprep.subr.msk.bf16.mxu0 %vm990_vm4, %v13271_v39 }
 0x13a   :  { %v399_v43 = vpop.f32.mrb[21].mxu0  ;;  %508 = vmatpush1.bf16.msra.mxu1 %v448_v40  ;;  %v434_v44 = vmax.f32 %v397_v42, 0.0  ;;  %v13272_v40 = vld [vmem:[%s17771_s2 + $0x2e8] ss:$12 sps:$4 sm:$0x3f]  }
 0x13b   :  { %v401_v45 = vpop.f32.mrb[22].mxu0  ;;  %v435_v49 = vmax.f32 %v399_v43, 0.0  ;;  %v992_v42 = vsel %vm990_vm4, %v13272_v40, 0  ;;  %v13276_v43 = vld [vmem:[%s17771_s2 + $0x4] ss:$12 sps:$4 sm:$0xff]  }
 0x13c   :  { %v436_v46 = vmax.f32 %v401_v45, 0.0  ;;  %v403_v48 = vpop.f32.mrb[23].mxu0  ;;  %12159 = vmatpush3.bf16.msra.mxu0 %v13273_v41 }
 0x13d   :  { %v437_v50 = vmax.f32 %v403_v48, 0.0 }
 0x13e   :  { %v450_v51 = vpack.c.bf16 %v436_v46, %v434_v44  ;;  %v13277_v44 = vld [vmem:[%s17771_s2 + $0xc8] ss:$12 sps:$4 sm:$0xff]  }
 0x13f   :  { %v451_v52 = vpack.c.bf16 %v437_v50, %v435_v49  ;;  %12178 = vmatprep.subr.bf16.mxu0 %v13277_v44 }
 0x141   :  { %v407_v53 = vpop.f32.mrb[24].mxu0  ;;  %509 = vmatprep.subr.bf16.mxu1 %v451_v52 }
 0x142   :  { %v438_v54 = vmax.f32 %v407_v53, 0.0  ;;  %v409_v55 = vpop.f32.mrb[25].mxu0  ;;  %510 = vmatpush1.bf16.msra.mxu1 %v450_v51 }
 0x143   :  { %v439_v56 = vmax.f32 %v409_v55, 0.0  ;;  %v411_v57 = vpop.f32.mrb[26].mxu0 }
 0x144   :  { %v452_v59 = vpack.c.bf16 %v438_v54, %v438_v54  ;;  %v412_v60 = vpop.f32.mrb[27].mxu0 }
 0x145   :  { %v453_v61 = vpack.c.bf16 %v439_v56, %v439_v56 }
 0x146   :  { %v494_v63 = vsel %vm492_vm2, %v452_v59, 0 }
 0x147   :  { %10097 = vmatprep.subr.msk.bf16.mxu1 %vm492_vm2, %v453_v61 }
 0x148   :  { %512 = vmatpush1.bf16.msra.mxu1 %v494_v63 }
 0x149   :  { %1000 = vmatprep.subr.bf16.mxu1 %v13212_v58 }
 0x14b   :  { %10098 = vmatmul.mubr.msk.bf16.vlgmr.msra.gmra.mrb[0].mxu1 %vm479_vm3, %v13206_v62 }
 0x14c   :  { %541 = vmatprep.mubr.bf16.mxu1 %v14342_v47  ;;  %1001 = vmatpush1.bf16.msra.mxu1 %v13210_v0 }
 0x14d   :  { %1002 = vmatprep.subr.bf16.mxu1 %v13215_v1 }
 0x150   :  { %1003 = vmatpush1.bf16.msra.mxu1 %v13213_v2 }
 0x151   :  { %1004 = vmatprep.subr.bf16.mxu1 %v13218_v3 }
 0x153   :  { %10099 = vmatmul.mubr.msk.bf16.gmra.mrb[4].mxu1 %vm479_vm3, %v13207_v4 }
 0x154   :  { %551 = vmatprep.mubr.bf16.mxu1 %v14342_v47  ;;  %1005 = vmatpush1.bf16.msra.mxu1 %v13216_v5 }
 0x155   :  { %1006 = vmatprep.subr.bf16.mxu1 %v13221_v6 }
 0x158   :  { %1007 = vmatpush1.bf16.msra.mxu1 %v13219_v7 }
 0x159   :  { %1008 = vmatprep.subr.bf16.mxu1 %v13224_v8 }
 0x15b   :  { %10100 = vmatmul.mubr.msk.bf16.gmra.mrb[8].mxu1 %vm479_vm3, %v13208_v9 }
 0x15c   :  { %561 = vmatprep.mubr.bf16.mxu1 %v14342_v47  ;;  %1009 = vmatpush1.bf16.msra.mxu1 %v13222_v10 }
 0x15d   :  { %1010 = vmatprep.subr.bf16.mxu1 %v13227_v11 }
 0x160   :  { %1011 = vmatpush1.bf16.msra.mxu1 %v13225_v12 }
 0x161   :  { %1012 = vmatprep.subr.bf16.mxu1 %v13230_v13 }
 0x163   :  { %10101 = vmatmul.mubr.msk.bf16.gmra.mrb[12].mxu1 %vm479_vm3, %v13209_v14 }
 0x164   :  { %1013 = vmatpush1.bf16.msra.mxu1 %v13228_v15 }
 0x165   :  { %1014 = vmatprep.subr.bf16.mxu1 %v13233_v16 }
 0x168   :  { %1015 = vmatpush1.bf16.msra.mxu1 %v13231_v17 }
 0x169   :  { %1016 = vmatprep.subr.bf16.mxu1 %v13236_v18 }
 0x16c   :  { %1017 = vmatpush1.bf16.msra.mxu1 %v13234_v19 }
 0x16d   :  { %1018 = vmatprep.subr.bf16.mxu1 %v13241_v20 }
 0x170   :  { %1019 = vmatpush1.bf16.msra.mxu1 %v13239_v21 }
 0x171   :  { %1020 = vmatprep.subr.bf16.mxu1 %v13246_v22 }
 0x174   :  { %1021 = vmatpush1.bf16.msra.mxu1 %v13244_v23 }
 0x175   :  { %1022 = vmatprep.subr.bf16.mxu1 %v13251_v24 }
 0x178   :  { %1023 = vmatpush1.bf16.msra.mxu1 %v13249_v25 }
 0x179   :  { %1024 = vmatprep.subr.bf16.mxu1 %v13256_v26 }
 0x17c   :  { %1025 = vmatpush1.bf16.msra.mxu1 %v13254_v28 }
 0x17d   :  { %1026 = vmatprep.subr.bf16.mxu1 %v13261_v30 }
 0x180   :  { %1027 = vmatpush1.bf16.msra.mxu1 %v13259_v32 }
 0x181   :  { %1028 = vmatprep.subr.bf16.mxu1 %v13266_v34 }
 0x184   :  { %1029 = vmatpush1.bf16.msra.mxu1 %v13264_v36 }
 0x185   :  { %10214 = vmatprep.subr.msk.bf16.mxu1 %vm990_vm4, %v13269_v38 }
 0x188   :  { %1031 = vmatpush1.bf16.msra.mxu1 %v992_v42 }
 0x189   :  { %1391 = vmatprep.subr.bf16.mxu1 %v13276_v43 }
 0x21e   :  { %v533_v45 = vpop.f32.mrb[0].mxu1 }
 0x21f   :  { %v535_v46 = vpop.f32.mrb[1].mxu1 }
 0x220   :  { %v537_v48 = vpop.f32.mrb[2].mxu1 }
 0x221   :  { %v14709_v49 = vpack.c.bf16 %v537_v48, %v533_v45  ;;  %v539_v50 = vpop.f32.mrb[3].mxu1 }
 0x222   :  { %v14711_v51 = vpack.c.bf16 %v539_v50, %v535_v46 }
 0x226   :  { %v543_v52 = vpop.f32.mrb[4].mxu1 }
 0x227   :  { %v545_v53 = vpop.f32.mrb[5].mxu1 }
 0x228   :  { %v547_v54 = vpop.f32.mrb[6].mxu1 }
 0x229   :  { %v14713_v55 = vpack.c.bf16 %v547_v54, %v543_v52  ;;  %v549_v56 = vpop.f32.mrb[7].mxu1 }
 0x22a   :  { %v14715_v57 = vpack.c.bf16 %v549_v56, %v545_v53 }
 0x22b   :  { %15 = vsyncpa [#allocation3], 0  ;;  %vm713_vm5 = vcmask 1046528   ;;  %v715_v58 = vrot.slane %v14713_v55, 1  ;;  %v717_v59 = vrot.slane %v14711_v51, 1  ;;  %vm980_vm6 = vcmask 1014784  }
 0x22c   :  { %v718_v60 = vrot.slane %v14715_v57, 1  ;;  %v13274_v61 = vld [vmem:[%s17771_s2] ss:$12 sps:$4 sm:$0xff]   ;;  %v714_v62 = vrot.slane %v14709_v49, 1  ;;  %v13278_v63 = vld [vmem:[%s17771_s2 + $0x8] ss:$12 sps:$4 sm:$0xff]  }
 0x22d   :  { %v13281_v2 = vld [vmem:[%s17771_s2 + $0x1c] ss:$12 sps:$4 sm:$0xff]   ;;  %v13282_v3 = vld [vmem:[%s17771_s2 + $0xe0] ss:$12 sps:$4 sm:$0xff]   ;;  %v13279_v9 = vld [vmem:[%s17771_s2 + $0x18] ss:$12 sps:$4 sm:$0xff]  }
 0x22e   :  { %v553_v0 = vpop.f32.mrb[8].mxu1  ;;  %v719_v1 = vsel %vm713_vm5, %v717_v59, %v718_v60  ;;  %v716_v5 = vsel %vm713_vm5, %v714_v62, %v715_v58  ;;  %v13283_v10 = vld [vmem:[%s17771_s2 + $0x20] ss:$12 sps:$4 sm:$0xff]   ;;  %v13287_v13 = vld [vmem:[%s17771_s2 + $0xf8] ss:$12 sps:$4 sm:$0xff]   ;;  %vm2066_vm7 = vcmask 1044480  }
 0x22f   :  { %v555_v4 = vpop.f32.mrb[9].mxu1  ;;  %10215 = vmatprep.mubr.msk.bf16.mxu1 %vm980_vm6, %v719_v1  ;;  %10218 = vmatprep.mubr.msk.bf16.mxu0 %vm980_vm6, %v719_v1  ;;  %v13286_v12 = vld [vmem:[%s17771_s2 + $0x34] ss:$12 sps:$4 sm:$0xff]   ;;  %v13284_v16 = vld [vmem:[%s17771_s2 + $0x30] ss:$12 sps:$4 sm:$0xff]   ;;  %vm3023_vm8 = vcmask 359424  }
 0x230   :  { %v557_v6 = vpop.f32.mrb[10].mxu1  ;;  %1033 = vmatmul.mubr.bf16.vlgmr.msra.gmra.mrb[16].mxu1 %v716_v5  ;;  %1096 = vmatmul.mubr.bf16.vlgmr.msra.gmra.mrb[28].mxu0 %v716_v5  ;;  %v13288_v17 = vld [vmem:[%s17771_s2 + $0x38] ss:$12 sps:$4 sm:$0xff]   ;;  %v13292_v20 = vld [vmem:[%s17771_s2 + $0x110] ss:$12 sps:$4 sm:$0xff]   ;;  %vm3808_vm9 = vcmask 130048  }
 0x231   :  { %v14737_v7 = vpack.c.bf16 %v557_v6, %v553_v0  ;;  %1392 = vmatpush1.bf16.msra.mxu1 %v13274_v61  ;;  %12179 = vmatpush3.bf16.msra.mxu0 %v13278_v63  ;;  %v559_v8 = vpop.f32.mrb[11].mxu1  ;;  %v13291_v19 = vld [vmem:[%s17771_s2 + $0x4c] ss:$12 sps:$4 sm:$0xff]   ;;  %v13289_v25 = vld [vmem:[%s17771_s2 + $0x48] ss:$12 sps:$4 sm:$0xff]   ;;  %v1580_v6 = vrot.slane %v14711_v51, 2 }
 0x232   :  { %v14745_v11 = vpack.c.bf16 %v559_v8, %v555_v4  ;;  %1393 = vmatprep.subr.bf16.mxu1 %v13281_v2  ;;  %12180 = vmatprep.subr.bf16.mxu0 %v13282_v3  ;;  %v13293_v26 = vld [vmem:[%s17771_s2 + $0x50] ss:$12 sps:$4 sm:$0xff]   ;;  %v13297_v28 = vld [vmem:[%s17771_s2 + $0x128] ss:$12 sps:$4 sm:$0xff]   ;;  %v13294_v30 = vld [vmem:[%s17771_s2 + $0x60] ss:$12 sps:$4 sm:$0xff]  }
 0x233   :  { %v720_v14 = vrot.slane %v14737_v7, 1  ;;  %v13296_v27 = vld [vmem:[%s17771_s2 + $0x64] ss:$12 sps:$4 sm:$0xff]   ;;  %v13298_v31 = vld [vmem:[%s17771_s2 + $0x68] ss:$12 sps:$4 sm:$0xff]   ;;  %v1581_v3 = vrot.slane %v14715_v57, 2 }
 0x234   :  { %v722_v15 = vrot.slane %v14745_v11, 1  ;;  %v13301_v32 = vld [vmem:[%s17771_s2 + $0x7c] ss:$12 sps:$4 sm:$0xff]   ;;  %v13302_v33 = vld [vmem:[%s17771_s2 + $0x140] ss:$12 sps:$4 sm:$0xff]   ;;  %vm14344_vm10 = vmmov 0  }
 0x235   :  { %1394 = vmatpush1.bf16.msra.mxu1 %v13279_v9  ;;  %12181 = vmatpush3.bf16.msra.mxu0 %v13283_v10  ;;  %v721_v22 = vsel %vm713_vm5, %v715_v58, %v720_v14  ;;  %v13299_v34 = vld [vmem:[%s17771_s2 + $0x78] ss:$12 sps:$4 sm:$0xff]   ;;  %v13303_v35 = vld [vmem:[%s17771_s2 + $0x80] ss:$12 sps:$4 sm:$0xff]   ;;  %v13304_v38 = vld [vmem:[%s17771_s2 + $0x90] ss:$12 sps:$4 sm:$0xff]   ;;  %v14912_v10 = vsel %vm990_vm4, %v1580_v6, %v1581_v3 }
 0x236   :  { %v723_v18 = vsel %vm713_vm5, %v718_v60, %v722_v15  ;;  %1395 = vmatprep.subr.bf16.mxu1 %v13286_v12  ;;  %12182 = vmatprep.subr.bf16.mxu0 %v13287_v13  ;;  %v14768_v21 = vpop.f32.mrb[12].mxu1  ;;  %v13306_v36 = vld [vmem:[%s17771_s2 + $0x94] ss:$12 sps:$4 sm:$0xff]   ;;  %v13307_v37 = vld [vmem:[%s17771_s2 + $0x158] ss:$12 sps:$4 sm:$0xff]   ;;  %vm6816_vm11 = vcmask 719872  }
 0x237   :  { %10216 = vmatprep.mubr.msk.bf16.mxu1 %vm980_vm6, %v723_v18  ;;  %10219 = vmatprep.mubr.msk.bf16.mxu0 %vm980_vm6, %v723_v18  ;;  %v14773_v23 = vpop.f32.mrb[13].mxu1  ;;  %v13308_v39 = vld [vmem:[%s17771_s2 + $0x98] ss:$12 sps:$4 sm:$0xff]   ;;  %v13312_v41 = vld [vmem:[%s17771_s2 + $0x170] ss:$12 sps:$4 sm:$0x3f]  }
 0x238   :  { %1043 = vmatmul.mubr.bf16.gmra.mrb[20].mxu1 %v721_v22  ;;  %1104 = vmatmul.mubr.bf16.gmra.mrb[32].mxu0 %v721_v22  ;;  %v567_v24 = vpop.f32.mrb[14].mxu1  ;;  %v13311_v40 = vld [vmem:[%s17771_s2 + $0xac] ss:$12 sps:$4 sm:$0xff]   ;;  %v13309_v42 = vld [vmem:[%s17771_s2 + $0xa8] ss:$12 sps:$4 sm:$0xff]   ;;  %vm9981_vm12 = vcmask 1041408  }
 0x239   :  { %1396 = vmatpush1.bf16.msra.mxu1 %v13284_v16  ;;  %12183 = vmatpush3.bf16.msra.mxu0 %v13288_v17  ;;  %v568_v29 = vpop.f32.mrb[15].mxu1  ;;  %v13313_v43 = vld [vmem:[%s17771_s2 + $0xb0] ss:$12 sps:$4 sm:$0xff]   ;;  %v13317_v45 = vld [vmem:[%s17771_s2 + $0x3c8] ss:$12 sps:$4 sm:$0xff]   ;;  %vm9977_vm13 = vcmask 687104  }
 0x23a   :  { %1397 = vmatprep.subr.bf16.mxu1 %v13291_v19  ;;  %12184 = vmatprep.subr.bf16.mxu0 %v13292_v20  ;;  %v13316_v44 = vld [vmem:[%s17771_s2 + $0xc4] ss:$12 sps:$4 sm:$0xff]   ;;  %v13314_v46 = vld [vmem:[%s17771_s2 + $0xc0] ss:$12 sps:$4 sm:$0xff]   ;;  %v13318_v48 = vld [vmem:[%s17771_s2 + $0x308] ss:$12 sps:$4 sm:$0xff]  }
 0x23b   :  { %10217 = vmatprep.mubr.msk.bf16.mxu1 %vm980_vm6, %v722_v15  ;;  %10220 = vmatprep.mubr.msk.bf16.mxu0 %vm980_vm6, %v722_v15  ;;  %v13321_v50 = vld [vmem:[%s17771_s2 + $0xdc] ss:$12 sps:$4 sm:$0xff]   ;;  %v13322_v52 = vld [vmem:[%s17771_s2 + $0x3e0] ss:$12 sps:$4 sm:$0xff]   ;;  %v13319_v53 = vld [vmem:[%s17771_s2 + $0xd8] ss:$12 sps:$4 sm:$0xff]  }
 0x23c   :  { %v13323_v54 = vld [vmem:[%s17771_s2 + $0x320] ss:$12 sps:$4 sm:$0xff]   ;;  %v13327_v58 = vld [vmem:[%s17771_s2 + $0x3f8] ss:$12 sps:$4 sm:$0xff]   ;;  %v13324_v59 = vld [vmem:[%s17771_s2 + $0xf0] ss:$12 sps:$4 sm:$0xff]  }
 0x23d   :  { %1398 = vmatpush1.bf16.msra.mxu1 %v13289_v25  ;;  %12185 = vmatpush3.bf16.msra.mxu0 %v13293_v26  ;;  %v13326_v56 = vld [vmem:[%s17771_s2 + $0xf4] ss:$12 sps:$4 sm:$0xff]   ;;  %v13328_v60 = vld [vmem:[%s17771_s2 + $0x338] ss:$12 sps:$4 sm:$0xff]   ;;  %v13332_v62 = vld [vmem:[%s17771_s2 + $0x410] ss:$12 sps:$4 sm:$0xff]  }
 0x23e   :  { %1399 = vmatprep.subr.bf16.mxu1 %v13296_v27  ;;  %12186 = vmatprep.subr.bf16.mxu0 %v13297_v28  ;;  %v13331_v61 = vld [vmem:[%s17771_s2 + $0x10c] ss:$12 sps:$4 sm:$0xff]   ;;  %v13329_v63 = vld [vmem:[%s17771_s2 + $0x108] ss:$12 sps:$4 sm:$0xff]   ;;  %v13333_v0 = vld [vmem:[%s17771_s2 + $0x350] ss:$12 sps:$4 sm:$0xff]  }
 0x23f   :  { %v13336_v1 = vld [vmem:[%s17771_s2 + $0x124] ss:$12 sps:$4 sm:$0xff]   ;;  %v13337_v2 = vld [vmem:[%s17771_s2 + $0x428] ss:$12 sps:$4 sm:$0xff]   ;;  %v13334_v4 = vld [vmem:[%s17771_s2 + $0x120] ss:$12 sps:$4 sm:$0xff]  }
 0x240   :  { %1053 = vmatmul.mubr.bf16.gmra.mrb[24].mxu1 %v720_v14  ;;  %1112 = vmatmul.mubr.bf16.gmra.mrb[36].mxu0 %v720_v14  ;;  %v13338_v5 = vld [vmem:[%s17771_s2 + $0x368] ss:$12 sps:$4 sm:$0xff]   ;;  %v13342_v9 = vld [vmem:[%s17771_s2 + $0x440] ss:$12 sps:$4 sm:$0xff]   ;;  %v13339_v12 = vld [vmem:[%s17771_s2 + $0x138] ss:$12 sps:$4 sm:$0xff]  }
 0x241   :  { %1400 = vmatpush1.bf16.msra.mxu1 %v13294_v30  ;;  %12187 = vmatpush3.bf16.msra.mxu0 %v13298_v31  ;;  %v13341_v8 = vld [vmem:[%s17771_s2 + $0x13c] ss:$12 sps:$4 sm:$0xff]   ;;  %v13343_v13 = vld [vmem:[%s17771_s2 + $0x380] ss:$12 sps:$4 sm:$0xff]   ;;  %v13347_v15 = vld [vmem:[%s17771_s2 + $0x458] ss:$12 sps:$4 sm:$0xff]  }
 0x242   :  { %10270 = vmatprep.mubr.msk.bf16.mxu1 %vm980_vm6, %v14711_v51  ;;  %10273 = vmatprep.mubr.msk.bf16.mxu0 %vm980_vm6, %v14711_v51  ;;  %v13346_v14 = vld [vmem:[%s17771_s2 + $0x154] ss:$12 sps:$4 sm:$0xff]   ;;  %v13344_v16 = vld [vmem:[%s17771_s2 + $0x150] ss:$12 sps:$4 sm:$0xff]   ;;  %v13348_v17 = vld [vmem:[%s17771_s2 + $0x398] ss:$12 sps:$4 sm:$0xff]  }
 0x243   :  { %1401 = vmatprep.subr.bf16.mxu1 %v13301_v32  ;;  %12188 = vmatprep.subr.bf16.mxu0 %v13302_v33  ;;  %v13349_v18 = vld [vmem:[%s17771_s2 + $0x16c] ss:$12 sps:$4 sm:$0x3f]   ;;  %v13352_v19 = vld [vmem:[%s17771_s2 + $0x168] ss:$12 sps:$4 sm:$0x3f]  }
 0x244   :  { %v13351_v20 = vld [vmem:[%s17771_s2 + $0x470] ss:$12 sps:$4 sm:$0x3f]   ;;  %v1383_v22 = vsel %vm990_vm4, %v13352_v19, 0  ;;  %v13357_v26 = vld [vmem:[%s17771_s2 + $0x548] ss:$12 sps:$4 sm:$0xff]  }
 0x245   :  { %1402 = vmatpush1.bf16.msra.mxu1 %v13299_v34  ;;  %12189 = vmatpush3.bf16.msra.mxu0 %v13303_v35  ;;  %v13353_v24 = vld [vmem:[%s17771_s2 + $0x3b0] ss:$12 sps:$4 sm:$0xff]   ;;  %v1578_v27 = vrot.slane %v14713_v55, 2  ;;  %v14957_v28 = vrot.slane %v14745_v11, 2  ;;  %v13354_v29 = vld [vmem:[%s17771_s2 + $0x300] ss:$12 sps:$4 sm:$0xff]  }
 0x246   :  { %1403 = vmatprep.subr.bf16.mxu1 %v13306_v36  ;;  %12190 = vmatprep.subr.bf16.mxu0 %v13307_v37  ;;  %v13356_v25 = vld [vmem:[%s17771_s2 + $0x304] ss:$12 sps:$4 sm:$0xff]   ;;  %v1577_v30 = vrot.slane %v14709_v49, 2  ;;  %v13358_v31 = vld [vmem:[%s17771_s2 + $0x488] ss:$12 sps:$4 sm:$0xff]   ;;  %s14345_s28 = smov [#allocation2]  }
 0x247   :  { %v13361_v32 = vld [vmem:[%s17771_s2 + $0x31c] ss:$12 sps:$4 sm:$0xff]   ;;  %v13362_v34 = vld [vmem:[%s17771_s2 + $0x560] ss:$12 sps:$4 sm:$0xff]   ;;  %v14981_v35 = vsel %vm990_vm4, %v1581_v3, %v14957_v28  ;;  %v13359_v36 = vld [vmem:[%s17771_s2 + $0x318] ss:$12 sps:$4 sm:$0xff]  }
 0x248   :  { %v14971_v33 = vsel %vm990_vm4, %v1577_v30, %v1578_v27  ;;  %v13363_v37 = vld [vmem:[%s17771_s2 + $0x4a0] ss:$12 sps:$4 sm:$0xff]   ;;  %v13388_v3 = vld [vmem:[%s17771_s2 + $0x518] ss:$12 sps:$4 sm:$0xff]   ;;  %v13389_v6 = vld [vmem:[%s17771_s2 + $0x3a8] ss:$12 sps:$4 sm:$0xff]  }
 0x249   :  { %1404 = vmatpush1.bf16.msra.mxu1 %v13304_v38  ;;  %12191 = vmatpush3.bf16.msra.mxu0 %v13308_v39  ;;  %v13366_v38 = vld [vmem:[%s17771_s2 + $0x334] ss:$12 sps:$4 sm:$0xff]   ;;  %v14995_v39 = vrot.slane %v14737_v7, 2  ;;  %v13404_v30 = vld [vmem:[%s17771_s2 + $0x3f0] ss:$12 sps:$4 sm:$0xff]   ;;  %s10033_s29 = sshll.u32 %s14345_s28, 4  ;;  %s10034_s29 = int_to_ptr.vmem [resolvable:$true] %s10033_s29 }
 0x24a   :  { %1405 = vmatprep.subr.bf16.mxu1 %v13311_v40  ;;  %13133 = vmatprep.subr.msk.bf16.mxu0 %vm990_vm4, %v13312_v41  ;;  %v13367_v40 = vld [vmem:[%s17771_s2 + $0x578] ss:$12 sps:$4 sm:$0xff]   ;;  %v13364_v41 = vld [vmem:[%s17771_s2 + $0x330] ss:$12 sps:$4 sm:$0xff]   ;;  %vm10025_vm14 = vcmask 320512   ;;  %p14323_p1 = scmp.lt.s32.totalorder %s10034_s29, %s10034_s29 }
 0x24d   :  { %1406 = vmatpush1.bf16.msra.mxu1 %v13309_v42  ;;  %12193 = vmatpush3.bf16.msra.mxu0 %v13313_v43  ;;  %v13368_v42 = vld [vmem:[%s17771_s2 + $0x4b8] ss:$12 sps:$4 sm:$0xff]  }
 0x24e   :  { %1407 = vmatprep.subr.bf16.mxu1 %v13316_v44  ;;  %12212 = vmatprep.subr.bf16.mxu0 %v13317_v45  ;;  %v13371_v43 = vld [vmem:[%s17771_s2 + $0x34c] ss:$12 sps:$4 sm:$0xff]   ;;  %v15012_v44 = vsel %vm990_vm4, %v1578_v27, %v14995_v39  ;;  %v13372_v45 = vld [vmem:[%s17771_s2 + $0x590] ss:$12 sps:$4 sm:$0xff]   ;;  %v2073_v27 = vrot.slane %v14737_v7, 3 }
 0x250   :  { %1487 = vmatmul.mubr.bf16.vlgmr.msra.gmra.mrb[40].mxu0 %v14709_v49 }
 0x251   :  { %1408 = vmatpush1.bf16.msra.mxu1 %v13314_v46  ;;  %10274 = vmatprep.mubr.msk.bf16.mxu0 %vm980_vm6, %v14715_v57  ;;  %v13369_v46 = vld [vmem:[%s17771_s2 + $0x348] ss:$12 sps:$4 sm:$0xff]  }
 0x252   :  { %12213 = vmatpush3.bf16.msra.mxu0 %v13318_v48  ;;  %1409 = vmatprep.subr.bf16.mxu1 %v13321_v50  ;;  %v13373_v48 = vld [vmem:[%s17771_s2 + $0x4d0] ss:$12 sps:$4 sm:$0xff]  }
 0x253   :  { %12214 = vmatprep.subr.bf16.mxu0 %v13322_v52  ;;  %v13376_v50 = vld [vmem:[%s17771_s2 + $0x364] ss:$12 sps:$4 sm:$0xff]   ;;  %v13377_v52 = vld [vmem:[%s17771_s2 + $0x5a8] ss:$12 sps:$4 sm:$0xff]  }
 0x255   :  { %1410 = vmatpush1.bf16.msra.mxu1 %v13319_v53  ;;  %v2071_v53 = vrot.slane %v14715_v57, 3 }
 0x256   :  { %12215 = vmatpush3.bf16.msra.mxu0 %v13323_v54  ;;  %1411 = vmatprep.subr.bf16.mxu1 %v13326_v56  ;;  %v13374_v54 = vld [vmem:[%s17771_s2 + $0x360] ss:$12 sps:$4 sm:$0xff]   ;;  %v13378_v56 = vld [vmem:[%s17771_s2 + $0x4e8] ss:$12 sps:$4 sm:$0xff]  }
 0x257   :  { %12216 = vmatprep.subr.bf16.mxu0 %v13327_v58  ;;  %v2070_v58 = vrot.slane %v14711_v51, 3 }
 0x258   :  { %1495 = vmatmul.mubr.bf16.gmra.mrb[44].mxu0 %v14713_v55 }
 0x259   :  { %1412 = vmatpush1.bf16.msra.mxu1 %v13324_v59  ;;  %10275 = vmatprep.mubr.msk.bf16.mxu0 %vm980_vm6, %v14745_v11  ;;  %v13381_v59 = vld [vmem:[%s17771_s2 + $0x37c] ss:$12 sps:$4 sm:$0xff]  }
 0x25a   :  { %12217 = vmatpush3.bf16.msra.mxu0 %v13328_v60  ;;  %1413 = vmatprep.subr.bf16.mxu1 %v13331_v61  ;;  %v13382_v60 = vld [vmem:[%s17771_s2 + $0x5c0] ss:$12 sps:$4 sm:$0xff]   ;;  %v15053_v61 = vsel %vm2066_vm7, %v2070_v58, %v2071_v53 }
 0x25b   :  { %12218 = vmatprep.subr.bf16.mxu0 %v13332_v62  ;;  %v13379_v62 = vld [vmem:[%s17771_s2 + $0x378] ss:$12 sps:$4 sm:$0xff]   ;;  %v13426_v58 = vld [vmem:[%s17771_s2 + $0x454] ss:$12 sps:$4 sm:$0xff]  }
 0x25d   :  { %1414 = vmatpush1.bf16.msra.mxu1 %v13329_v63  ;;  %v13383_v63 = vld [vmem:[%s17771_s2 + $0x500] ss:$12 sps:$4 sm:$0xff]  }
 0x25e   :  { %12219 = vmatpush3.bf16.msra.mxu0 %v13333_v0  ;;  %1415 = vmatprep.subr.bf16.mxu1 %v13336_v1  ;;  %v13386_v0 = vld [vmem:[%s17771_s2 + $0x394] ss:$12 sps:$4 sm:$0xff]   ;;  %v13387_v1 = vld [vmem:[%s17771_s2 + $0x5d8] ss:$12 sps:$4 sm:$0xff]  }
 0x25f   :  { %12220 = vmatprep.subr.bf16.mxu0 %v13337_v2  ;;  %v13384_v2 = vld [vmem:[%s17771_s2 + $0x390] ss:$12 sps:$4 sm:$0xff]  }
 0x260   :  { %1503 = vmatmul.mubr.bf16.gmra.mrb[48].mxu0 %v14737_v7 }
 0x261   :  { %1416 = vmatpush1.bf16.msra.mxu1 %v13334_v4  ;;  %10392 = vmatprep.mubr.msk.bf16.mxu0 %vm980_vm6, %v14912_v10  ;;  %v13391_v4 = vld [vmem:[%s17771_s2 + $0x3ac] ss:$12 sps:$4 sm:$0xff]  }
 0x262   :  { %12221 = vmatpush3.bf16.msra.mxu0 %v13338_v5  ;;  %1417 = vmatprep.subr.bf16.mxu1 %v13341_v8  ;;  %v13392_v5 = vld [vmem:[%s17771_s2 + $0x5f0] ss:$12 sps:$4 sm:$0x3f]  }
 0x263   :  { %12222 = vmatprep.subr.bf16.mxu0 %v13342_v9  ;;  %v13393_v8 = vld [vmem:[%s17771_s2 + $0x530] ss:$12 sps:$4 sm:$0xff]  }
 0x264   :  { %v13396_v9 = vld [vmem:[%s17771_s2 + $0x3c4] ss:$12 sps:$4 sm:$0xff]  }
 0x265   :  { %1418 = vmatpush1.bf16.msra.mxu1 %v13339_v12  ;;  %v2068_v12 = vrot.slane %v14713_v55, 3 }
 0x266   :  { %12223 = vmatpush3.bf16.msra.mxu0 %v13343_v13  ;;  %1419 = vmatprep.subr.bf16.mxu1 %v13346_v14  ;;  %v13394_v13 = vld [vmem:[%s17771_s2 + $0x3c0] ss:$12 sps:$4 sm:$0xff]   ;;  %v2075_v14 = vrot.slane %v14745_v11, 3 }
 0x267   :  { %12224 = vmatprep.subr.bf16.mxu0 %v13347_v15  ;;  %v2067_v15 = vrot.slane %v14709_v49, 3 }
 0x269   :  { %1420 = vmatpush1.bf16.msra.mxu1 %v13344_v16  ;;  %v13398_v16 = vld [vmem:[%s17771_s2 + $0x608] ss:$12 sps:$4 sm:$0xff]   ;;  %v15110_v19 = vsel %vm2066_vm7, %v2067_v15, %v2068_v12 }
 0x26a   :  { %12225 = vmatpush3.bf16.msra.mxu0 %v13348_v17  ;;  %10269 = vmatprep.subr.msk.bf16.mxu1 %vm990_vm4, %v13349_v18  ;;  %v13401_v17 = vld [vmem:[%s17771_s2 + $0x3dc] ss:$12 sps:$4 sm:$0xff]   ;;  %v13402_v18 = vld [vmem:[%s17771_s2 + $0x6e0] ss:$12 sps:$4 sm:$0xff]  }
 0x26b   :  { %13134 = vmatprep.subr.msk.bf16.mxu0 %vm990_vm4, %v13351_v20  ;;  %v15114_v20 = vpack.c.bf16 %v14773_v23, %v14773_v23  ;;  %v13406_v23 = vld [vmem:[%s17771_s2 + $0x3f4] ss:$12 sps:$4 sm:$0xff]  }
 0x26d   :  { %1422 = vmatpush1.bf16.msra.mxu1 %v1383_v22  ;;  %v15118_v22 = vsel %vm2066_vm7, %v2071_v53, %v2075_v14  ;;  %v13422_v53 = vld [vmem:[%s17771_s2 + $0x740] ss:$12 sps:$4 sm:$0xff]  }
 0x26e   :  { %12227 = vmatpush3.bf16.msra.mxu0 %v13353_v24  ;;  %1861 = vmatprep.subr.bf16.mxu1 %v13356_v25  ;;  %v13399_v24 = vld [vmem:[%s17771_s2 + $0x3d8] ss:$12 sps:$4 sm:$0xff]   ;;  %v13403_v25 = vld [vmem:[%s17771_s2 + $0x620] ss:$12 sps:$4 sm:$0xff]  }
 0x26f   :  { %12246 = vmatprep.subr.bf16.mxu0 %v13357_v26  ;;  %v13407_v26 = vld [vmem:[%s17771_s2 + $0x6f8] ss:$12 sps:$4 sm:$0xff]  }
 0x270   :  { %1424 = vmatmul.mubr.bf16.vlgmr.msra.gmra.mrb[16].mxu1 %v14709_v49 }
 0x271   :  { %1957 = vmatmul.mubr.bf16.vlgmr.msra.gmra.mrb[52].mxu0 %v14971_v33  ;;  %10271 = vmatprep.mubr.msk.bf16.mxu1 %vm980_vm6, %v14715_v57 }
 0x272   :  { %1862 = vmatpush1.bf16.msra.mxu1 %v13354_v29  ;;  %10393 = vmatprep.mubr.msk.bf16.mxu0 %vm980_vm6, %v14981_v35  ;;  %v2079_v29 = vrot.slane %v15114_v20, 3 }
 0x273   :  { %12247 = vmatpush3.bf16.msra.mxu0 %v13358_v31  ;;  %1863 = vmatprep.subr.bf16.mxu1 %v13361_v32  ;;  %v13408_v31 = vld [vmem:[%s17771_s2 + $0x638] ss:$12 sps:$4 sm:$0xff]  }
 0x274   :  { %12248 = vmatprep.subr.bf16.mxu0 %v13362_v34  ;;  %v13411_v32 = vld [vmem:[%s17771_s2 + $0x40c] ss:$12 sps:$4 sm:$0xff]   ;;  %v13412_v34 = vld [vmem:[%s17771_s2 + $0x710] ss:$12 sps:$4 sm:$0xff]  }
 0x276   :  { %1864 = vmatpush1.bf16.msra.mxu1 %v13359_v36  ;;  %v15150_v36 = vpack.c.bf16 %v14768_v21, %v14768_v21  ;;  %v13413_v21 = vld [vmem:[%s17771_s2 + $0x650] ss:$12 sps:$4 sm:$0xff]  }
 0x277   :  { %12249 = vmatpush3.bf16.msra.mxu0 %v13363_v37  ;;  %1865 = vmatprep.subr.bf16.mxu1 %v13366_v38  ;;  %v15153_v37 = vsel %vm2066_vm7, %v2068_v12, %v2073_v27  ;;  %v15157_v38 = vsel %vm2066_vm7, %v2075_v14, %v2079_v29  ;;  %v13445_v14 = vld [vmem:[%s17771_s2 + $0x4cc] ss:$12 sps:$4 sm:$0xff]   ;;  %v13463_v29 = vld [vmem:[%s17771_s2 + $0x55c] ss:$12 sps:$4 sm:$0xff]  }
 0x278   :  { %1434 = vmatmul.mubr.bf16.gmra.mrb[20].mxu1 %v14713_v55  ;;  %12250 = vmatprep.subr.bf16.mxu0 %v13367_v40  ;;  %v13409_v40 = vld [vmem:[%s17771_s2 + $0x408] ss:$12 sps:$4 sm:$0xff]  }
 0x279   :  { %1965 = vmatmul.mubr.bf16.gmra.mrb[56].mxu0 %v15012_v44  ;;  %10272 = vmatprep.mubr.msk.bf16.mxu1 %vm980_vm6, %v14745_v11 }
 0x27a   :  { %1866 = vmatpush1.bf16.msra.mxu1 %v13364_v41  ;;  %10394 = vmatprep.mubr.msk.bf16.mxu0 %vm980_vm6, %v14957_v28  ;;  %v13416_v41 = vld [vmem:[%s17771_s2 + $0x424] ss:$12 sps:$4 sm:$0xff]  }
 0x27b   :  { %12251 = vmatpush3.bf16.msra.mxu0 %v13368_v42  ;;  %1867 = vmatprep.subr.bf16.mxu1 %v13371_v43  ;;  %v13417_v42 = vld [vmem:[%s17771_s2 + $0x728] ss:$12 sps:$4 sm:$0xff]   ;;  %v2077_v43 = vrot.slane %v15150_v36, 3 }
 0x27c   :  { %12252 = vmatprep.subr.bf16.mxu0 %v13372_v45  ;;  %v13414_v45 = vld [vmem:[%s17771_s2 + $0x420] ss:$12 sps:$4 sm:$0xff]  }
 0x27e   :  { %1868 = vmatpush1.bf16.msra.mxu1 %v13369_v46  ;;  %v2563_v46 = vrot.slane %v14715_v57, 4 }
 0x27f   :  { %12253 = vmatpush3.bf16.msra.mxu0 %v13373_v48  ;;  %1869 = vmatprep.subr.bf16.mxu1 %v13376_v50  ;;  %v13418_v48 = vld [vmem:[%s17771_s2 + $0x668] ss:$12 sps:$4 sm:$0xff]   ;;  %v2562_v50 = vrot.slane %v14711_v51, 4  ;;  %v13419_v51 = vld [vmem:[%s17771_s2 + $0x438] ss:$12 sps:$4 sm:$0xff]  }
 0x280   :  { %1444 = vmatmul.mubr.bf16.gmra.mrb[24].mxu1 %v14737_v7  ;;  %12254 = vmatprep.subr.bf16.mxu0 %v13377_v52  ;;  %v13421_v52 = vld [vmem:[%s17771_s2 + $0x43c] ss:$12 sps:$4 sm:$0xff]  }
 0x281   :  { %1973 = vmatmul.mubr.bf16.gmra.mrb[60].mxu0 %v14995_v39  ;;  %10389 = vmatprep.mubr.msk.bf16.mxu1 %vm980_vm6, %v14912_v10  ;;  %v13397_v10 = vld [vmem:[%s17771_s2 + $0x6c8] ss:$12 sps:$4 sm:$0xff]   ;;  %v15193_v57 = vsel %vm492_vm2, %v2562_v50, %v2563_v46 }
 0x282   :  { %1870 = vmatpush1.bf16.msra.mxu1 %v13374_v54  ;;  %10511 = vmatprep.mubr.msk.bf16.mxu0 %vm980_vm6, %v15053_v61  ;;  %v15189_v54 = vsel %vm2066_vm7, %v2073_v27, %v2077_v43  ;;  %v13458_v27 = vld [vmem:[%s17771_s2 + $0x540] ss:$12 sps:$4 sm:$0xff]  }
 0x283   :  { %12255 = vmatpush3.bf16.msra.mxu0 %v13378_v56  ;;  %1871 = vmatprep.subr.bf16.mxu1 %v13381_v59  ;;  %v13423_v56 = vld [vmem:[%s17771_s2 + $0x680] ss:$12 sps:$4 sm:$0xff]   ;;  %v13427_v59 = vld [vmem:[%s17771_s2 + $0x758] ss:$12 sps:$4 sm:$0xff]  }
 0x284   :  { %12256 = vmatprep.subr.bf16.mxu0 %v13382_v60  ;;  %v13424_v60 = vld [vmem:[%s17771_s2 + $0x450] ss:$12 sps:$4 sm:$0xff]   ;;  %v13478_v43 = vld [vmem:[%s17771_s2 + $0x5d4] ss:$12 sps:$4 sm:$0xff]  }
 0x286   :  { %1872 = vmatpush1.bf16.msra.mxu1 %v13379_v62  ;;  %v13428_v62 = vld [vmem:[%s17771_s2 + $0x698] ss:$12 sps:$4 sm:$0xff]  }
 0x287   :  { %12257 = vmatpush3.bf16.msra.mxu0 %v13383_v63  ;;  %1873 = vmatprep.subr.bf16.mxu1 %v13386_v0  ;;  %v13429_v63 = vld [vmem:[%s17771_s2 + $0x46c] ss:$12 sps:$4 sm:$0x3f]   ;;  %v13432_v0 = vld [vmem:[%s17771_s2 + $0x468] ss:$12 sps:$4 sm:$0x3f]  }
 0x288   :  { %12258 = vmatprep.subr.bf16.mxu0 %v13387_v1  ;;  %v13431_v1 = vld [vmem:[%s17771_s2 + $0x770] ss:$12 sps:$4 sm:$0x3f]  }
 0x28a   :  { %1874 = vmatpush1.bf16.msra.mxu1 %v13384_v2  ;;  %v1853_v2 = vsel %vm990_vm4, %v13432_v0, 0 }
 0x28b   :  { %12259 = vmatpush3.bf16.msra.mxu0 %v13388_v3  ;;  %1875 = vmatprep.subr.bf16.mxu1 %v13391_v4  ;;  %v13433_v3 = vld [vmem:[%s17771_s2 + $0x6b0] ss:$12 sps:$4 sm:$0xff]  }
 0x28c   :  { %13135 = vmatprep.subr.msk.bf16.mxu0 %vm990_vm4, %v13392_v5  ;;  %v13436_v4 = vld [vmem:[%s17771_s2 + $0x484] ss:$12 sps:$4 sm:$0xff]   ;;  %v2560_v5 = vrot.slane %v14713_v55, 4 }
 0x28e   :  { %1876 = vmatpush1.bf16.msra.mxu1 %v13389_v6  ;;  %v2567_v6 = vrot.slane %v14745_v11, 4  ;;  %v13442_v11 = vld [vmem:[%s17771_s2 + $0x4b4] ss:$12 sps:$4 sm:$0xff]  }
 0x28f   :  { %12261 = vmatpush3.bf16.msra.mxu0 %v13393_v8  ;;  %1877 = vmatprep.subr.bf16.mxu1 %v13396_v9  ;;  %v13434_v8 = vld [vmem:[%s17771_s2 + $0x480] ss:$12 sps:$4 sm:$0xff]   ;;  %v2559_v9 = vrot.slane %v14709_v49, 4  ;;  %v13437_v49 = vld [vmem:[%s17771_s2 + $0x498] ss:$12 sps:$4 sm:$0xff]  }
 0x290   :  { %12280 = vmatprep.subr.bf16.mxu0 %v13397_v10  ;;  %v13439_v10 = vld [vmem:[%s17771_s2 + $0x49c] ss:$12 sps:$4 sm:$0xff]   ;;  %v15250_v55 = vsel %vm492_vm2, %v2563_v46, %v2567_v6  ;;  %v13479_v46 = vld [vmem:[%s17771_s2 + $0x5ec] ss:$12 sps:$4 sm:$0x3f]  }
 0x291   :  { %v15244_v12 = vsel %vm492_vm2, %v2559_v9, %v2560_v5 }
 0x292   :  { %2451 = vmatmul.mubr.bf16.vlgmr.msra.gmra.mrb[64].mxu0 %v15110_v19  ;;  %1878 = vmatpush1.bf16.msra.mxu1 %v13394_v13  ;;  %v13440_v13 = vld [vmem:[%s17771_s2 + $0x4b0] ss:$12 sps:$4 sm:$0xff]  }
 0x293   :  { %10512 = vmatprep.mubr.msk.bf16.mxu0 %vm980_vm6, %v15118_v22  ;;  %12281 = vmatpush3.bf16.msra.mxu0 %v13398_v16  ;;  %v13443_v16 = vld [vmem:[%s17771_s2 + $0x4c8] ss:$12 sps:$4 sm:$0xff]  }
 0x294   :  { %1879 = vmatprep.subr.bf16.mxu1 %v13401_v17  ;;  %12282 = vmatprep.subr.bf16.mxu0 %v13402_v18  ;;  %v2569_v17 = vrot.slane %v15150_v36, 4  ;;  %v13451_v18 = vld [vmem:[%s17771_s2 + $0x4fc] ss:$12 sps:$4 sm:$0xff]  }
 0x295   :  { %v13467_v36 = vld [vmem:[%s17771_s2 + $0x588] ss:$12 sps:$4 sm:$0xff]  }
 0x296   :  { %1880 = vmatpush1.bf16.msra.mxu1 %v13399_v24  ;;  %v13449_v24 = vld [vmem:[%s17771_s2 + $0x4f8] ss:$12 sps:$4 sm:$0xff]  }
 0x297   :  { %12283 = vmatpush3.bf16.msra.mxu0 %v13403_v25  ;;  %1881 = vmatprep.subr.bf16.mxu1 %v13406_v23  ;;  %v13452_v25 = vld [vmem:[%s17771_s2 + $0x510] ss:$12 sps:$4 sm:$0xff]   ;;  %v13455_v23 = vld [vmem:[%s17771_s2 + $0x528] ss:$12 sps:$4 sm:$0xff]  }
 0x298   :  { %12284 = vmatprep.subr.bf16.mxu0 %v13407_v26  ;;  %v13460_v26 = vld [vmem:[%s17771_s2 + $0x544] ss:$12 sps:$4 sm:$0xff]  }
 0x29a   :  { %2459 = vmatmul.mubr.bf16.gmra.mrb[68].mxu0 %v15153_v37  ;;  %1882 = vmatpush1.bf16.msra.mxu1 %v13404_v30  ;;  %v13461_v30 = vld [vmem:[%s17771_s2 + $0x558] ss:$12 sps:$4 sm:$0xff]  }
 0x29b   :  { %10513 = vmatprep.mubr.msk.bf16.mxu0 %vm980_vm6, %v15157_v38  ;;  %12285 = vmatpush3.bf16.msra.mxu0 %v13408_v31  ;;  %v13466_v31 = vld [vmem:[%s17771_s2 + $0x574] ss:$12 sps:$4 sm:$0xff]  }
 0x29c   :  { %1883 = vmatprep.subr.bf16.mxu1 %v13411_v32  ;;  %12286 = vmatprep.subr.bf16.mxu0 %v13412_v34  ;;  %v13464_v32 = vld [vmem:[%s17771_s2 + $0x570] ss:$12 sps:$4 sm:$0xff]   ;;  %v13469_v34 = vld [vmem:[%s17771_s2 + $0x58c] ss:$12 sps:$4 sm:$0xff]  }
 0x29e   :  { %1884 = vmatpush1.bf16.msra.mxu1 %v13409_v40  ;;  %v13472_v40 = vld [vmem:[%s17771_s2 + $0x5a4] ss:$12 sps:$4 sm:$0xff]  }
 0x29f   :  { %12287 = vmatpush3.bf16.msra.mxu0 %v13413_v21  ;;  %1885 = vmatprep.subr.bf16.mxu1 %v13416_v41  ;;  %v13470_v21 = vld [vmem:[%s17771_s2 + $0x5a0] ss:$12 sps:$4 sm:$0xff]   ;;  %v13475_v41 = vld [vmem:[%s17771_s2 + $0x5bc] ss:$12 sps:$4 sm:$0xff]  }
 0x2a0   :  { %12288 = vmatprep.subr.bf16.mxu0 %v13417_v42  ;;  %v13473_v42 = vld [vmem:[%s17771_s2 + $0x5b8] ss:$12 sps:$4 sm:$0xff]  }
 0x2a2   :  { %2467 = vmatmul.mubr.bf16.gmra.mrb[72].mxu0 %v15189_v54  ;;  %1886 = vmatpush1.bf16.msra.mxu1 %v13414_v45  ;;  %v13476_v45 = vld [vmem:[%s17771_s2 + $0x5d0] ss:$12 sps:$4 sm:$0xff]  }
 0x2a3   :  { %12289 = vmatpush3.bf16.msra.mxu0 %v13418_v48  ;;  %10630 = vmatprep.mubr.msk.bf16.mxu0 %vm980_vm6, %v15193_v57  ;;  %v13481_v48 = vld [vmem:[%s17771_s2 + $0x5e8] ss:$12 sps:$4 sm:$0x3f]  }
 0x2a4   :  { %1887 = vmatprep.subr.bf16.mxu1 %v13421_v52  ;;  %12290 = vmatprep.subr.bf16.mxu0 %v13422_v53  ;;  %v2347_v50 = vsel %vm990_vm4, %v13481_v48, 0  ;;  %v13484_v52 = vld [vmem:[%s17771_s2 + $0x604] ss:$12 sps:$4 sm:$0xff]   ;;  %v13482_v53 = vld [vmem:[%s17771_s2 + $0x600] ss:$12 sps:$4 sm:$0xff]  }
 0x2a5   :  { %v13529_v48 = vld [vmem:[%s17771_s2 + $0x768] ss:$12 sps:$4 sm:$0x3f]  }
 0x2a6   :  { %1888 = vmatpush1.bf16.msra.mxu1 %v13419_v51  ;;  %v13487_v51 = vld [vmem:[%s17771_s2 + $0x61c] ss:$12 sps:$4 sm:$0xff]  }
 0x2a7   :  { %12291 = vmatpush3.bf16.msra.mxu0 %v13423_v56  ;;  %1889 = vmatprep.subr.bf16.mxu1 %v13426_v58  ;;  %v13485_v56 = vld [vmem:[%s17771_s2 + $0x618] ss:$12 sps:$4 sm:$0xff]   ;;  %v13490_v58 = vld [vmem:[%s17771_s2 + $0x634] ss:$12 sps:$4 sm:$0xff]  }
 0x2a8   :  { %12292 = vmatprep.subr.bf16.mxu0 %v13427_v59  ;;  %v13488_v59 = vld [vmem:[%s17771_s2 + $0x630] ss:$12 sps:$4 sm:$0xff]  }
 0x2aa   :  { %1890 = vmatpush1.bf16.msra.mxu1 %v13424_v60  ;;  %v13496_v60 = vld [vmem:[%s17771_s2 + $0x664] ss:$12 sps:$4 sm:$0xff]  }
 0x2ab   :  { %12293 = vmatpush3.bf16.msra.mxu0 %v13428_v62  ;;  %10388 = vmatprep.subr.msk.bf16.mxu1 %vm990_vm4, %v13429_v63  ;;  %v13494_v62 = vld [vmem:[%s17771_s2 + $0x660] ss:$12 sps:$4 sm:$0xff]   ;;  %v13497_v63 = vld [vmem:[%s17771_s2 + $0x678] ss:$12 sps:$4 sm:$0xff]  }
 0x2ac   :  { %13136 = vmatprep.subr.msk.bf16.mxu0 %vm990_vm4, %v13431_v1  ;;  %v13502_v1 = vld [vmem:[%s17771_s2 + $0x694] ss:$12 sps:$4 sm:$0xff]  }
 0x2ae   :  { %1892 = vmatpush1.bf16.msra.mxu1 %v1853_v2 }
 0x2af   :  { %12295 = vmatpush3.bf16.msra.mxu0 %v13433_v3  ;;  %2355 = vmatprep.subr.bf16.mxu1 %v13436_v4 }
 0x2b1   :  { %1894 = vmatmul.mubr.bf16.vlgmr.msra.gmra.mrb[16].mxu1 %v14971_v33  ;;  %v2565_v33 = vrot.slane %v14737_v7, 4 }
 0x2b2   :  { %2943 = vmatmul.mubr.bf16.vlgmr.msra.gmra.mrb[76].mxu0 %v15244_v12  ;;  %10390 = vmatprep.mubr.msk.bf16.mxu1 %vm980_vm6, %v14981_v35  ;;  %v2571_v35 = vrot.slane %v15114_v20, 4 }
 0x2b3   :  { %2356 = vmatpush1.bf16.msra.mxu1 %v13434_v8  ;;  %10631 = vmatprep.mubr.msk.bf16.mxu0 %vm980_vm6, %v15250_v55  ;;  %v15270_v15 = vsel %vm492_vm2, %v2560_v5, %v2565_v33  ;;  %v15295_v20 = vsel %vm492_vm2, %v2565_v33, %v2569_v17  ;;  %v13505_v5 = vld [vmem:[%s17771_s2 + $0x6ac] ss:$12 sps:$4 sm:$0xff]   ;;  %v13503_v8 = vld [vmem:[%s17771_s2 + $0x6a8] ss:$12 sps:$4 sm:$0xff]  }
 0x2b4   :  { %2357 = vmatprep.subr.bf16.mxu1 %v13439_v10  ;;  %v15276_v7 = vsel %vm492_vm2, %v2567_v6, %v2571_v35  ;;  %v13508_v10 = vld [vmem:[%s17771_s2 + $0x6c4] ss:$12 sps:$4 sm:$0xff]   ;;  %v13514_v17 = vld [vmem:[%s17771_s2 + $0x6f4] ss:$12 sps:$4 sm:$0xff]  }
 0x2b7   :  { %2358 = vmatpush1.bf16.msra.mxu1 %v13437_v49 }
 0x2b8   :  { %2359 = vmatprep.subr.bf16.mxu1 %v13442_v11 }
 0x2b9   :  { %1904 = vmatmul.mubr.bf16.gmra.mrb[20].mxu1 %v15012_v44  ;;  %v13448_v44 = vld [vmem:[%s17771_s2 + $0x4e4] ss:$12 sps:$4 sm:$0xff]  }
 0x2ba   :  { %2951 = vmatmul.mubr.bf16.gmra.mrb[80].mxu0 %v15270_v15  ;;  %10391 = vmatprep.mubr.msk.bf16.mxu1 %vm980_vm6, %v14957_v28  ;;  %v13446_v28 = vld [vmem:[%s17771_s2 + $0x4e0] ss:$12 sps:$4 sm:$0xff]  }
 0x2bb   :  { %2360 = vmatpush1.bf16.msra.mxu1 %v13440_v13  ;;  %10632 = vmatprep.mubr.msk.bf16.mxu0 %vm980_vm6, %v15276_v7  ;;  %v13506_v13 = vld [vmem:[%s17771_s2 + $0x6c0] ss:$12 sps:$4 sm:$0xff]  }
 0x2bc   :  { %2361 = vmatprep.subr.bf16.mxu1 %v13445_v14  ;;  %v13511_v14 = vld [vmem:[%s17771_s2 + $0x6dc] ss:$12 sps:$4 sm:$0xff]  }
 0x2bf   :  { %2362 = vmatpush1.bf16.msra.mxu1 %v13443_v16  ;;  %v13509_v16 = vld [vmem:[%s17771_s2 + $0x6d8] ss:$12 sps:$4 sm:$0xff]  }
 0x2c0   :  { %2363 = vmatprep.subr.bf16.mxu1 %v13448_v44 }
 0x2c1   :  { %1914 = vmatmul.mubr.bf16.gmra.mrb[24].mxu1 %v14995_v39  ;;  %v13454_v39 = vld [vmem:[%s17771_s2 + $0x514] ss:$12 sps:$4 sm:$0xff]  }
 0x2c2   :  { %2959 = vmatmul.mubr.bf16.gmra.mrb[84].mxu0 %v15295_v20  ;;  %10508 = vmatprep.mubr.msk.bf16.mxu1 %vm980_vm6, %v15053_v61  ;;  %v13457_v61 = vld [vmem:[%s17771_s2 + $0x52c] ss:$12 sps:$4 sm:$0xff]  }
 0x2c3   :  { %2364 = vmatpush1.bf16.msra.mxu1 %v13446_v28  ;;  %3071 = vmatprep.mubr.bf16.mxu0 %v14342_v47 }
 0x2c4   :  { %2365 = vmatprep.subr.bf16.mxu1 %v13451_v18 }
 0x2c7   :  { %2366 = vmatpush1.bf16.msra.mxu1 %v13449_v24 }
 0x2c8   :  { %2367 = vmatprep.subr.bf16.mxu1 %v13454_v39 }
 0x2cb   :  { %2368 = vmatpush1.bf16.msra.mxu1 %v13452_v25  ;;  %v13512_v25 = vld [vmem:[%s17771_s2 + $0x6f0] ss:$12 sps:$4 sm:$0xff]  }
 0x2cc   :  { %2369 = vmatprep.subr.bf16.mxu1 %v13457_v61 }
 0x2cf   :  { %2370 = vmatpush1.bf16.msra.mxu1 %v13455_v23  ;;  %v13517_v23 = vld [vmem:[%s17771_s2 + $0x70c] ss:$12 sps:$4 sm:$0xff]  }
 0x2d0   :  { %2371 = vmatprep.subr.bf16.mxu1 %v13460_v26  ;;  %v13515_v26 = vld [vmem:[%s17771_s2 + $0x708] ss:$12 sps:$4 sm:$0xff]  }
 0x2d3   :  { %2372 = vmatpush1.bf16.msra.mxu1 %v13458_v27  ;;  %v13520_v27 = vld [vmem:[%s17771_s2 + $0x724] ss:$12 sps:$4 sm:$0xff]  }
 0x2d4   :  { %2373 = vmatprep.subr.bf16.mxu1 %v13463_v29  ;;  %v13518_v29 = vld [vmem:[%s17771_s2 + $0x720] ss:$12 sps:$4 sm:$0xff]  }
 0x2d7   :  { %2374 = vmatpush1.bf16.msra.mxu1 %v13461_v30  ;;  %v13523_v30 = vld [vmem:[%s17771_s2 + $0x73c] ss:$12 sps:$4 sm:$0xff]  }
 0x2d8   :  { %2375 = vmatprep.subr.bf16.mxu1 %v13466_v31 }
 0x2db   :  { %2376 = vmatpush1.bf16.msra.mxu1 %v13464_v32  ;;  %v13521_v32 = vld [vmem:[%s17771_s2 + $0x738] ss:$12 sps:$4 sm:$0xff]  }
 0x2dc   :  { %2377 = vmatprep.subr.bf16.mxu1 %v13469_v34 }
 0x2df   :  { %2378 = vmatpush1.bf16.msra.mxu1 %v13467_v36  ;;  %v13526_v36 = vld [vmem:[%s17771_s2 + $0x754] ss:$12 sps:$4 sm:$0xff]  }
 0x2e0   :  { %2379 = vmatprep.subr.bf16.mxu1 %v13472_v40 }
 0x2e3   :  { %2380 = vmatpush1.bf16.msra.mxu1 %v13470_v21 }
 0x2e4   :  { %2381 = vmatprep.subr.bf16.mxu1 %v13475_v41 }
 0x2e7   :  { %2382 = vmatpush1.bf16.msra.mxu1 %v13473_v42 }
 0x2e8   :  { %2383 = vmatprep.subr.bf16.mxu1 %v13478_v43 }
 0x2eb   :  { %2384 = vmatpush1.bf16.msra.mxu1 %v13476_v45  ;;  %v13524_v45 = vld [vmem:[%s17771_s2 + $0x750] ss:$12 sps:$4 sm:$0xff]  }
 0x2ec   :  { %10507 = vmatprep.subr.msk.bf16.mxu1 %vm990_vm4, %v13479_v46  ;;  %v13527_v46 = vld [vmem:[%s17771_s2 + $0x76c] ss:$12 sps:$4 sm:$0x3f]  }
 0x2ef   :  { %2386 = vmatpush1.bf16.msra.mxu1 %v2347_v50 }
 0x2f0   :  { %2847 = vmatprep.subr.bf16.mxu1 %v13484_v52 }
 0x2f2   :  { %2388 = vmatmul.mubr.bf16.vlgmr.msra.gmra.mrb[16].mxu1 %v15110_v19  ;;  %v13493_v19 = vld [vmem:[%s17771_s2 + $0x64c] ss:$12 sps:$4 sm:$0xff]  }
 0x2f3   :  { %10509 = vmatprep.mubr.msk.bf16.mxu1 %vm980_vm6, %v15118_v22  ;;  %2848 = vmatpush1.bf16.msra.mxu1 %v13482_v53  ;;  %v13491_v22 = vld [vmem:[%s17771_s2 + $0x648] ss:$12 sps:$4 sm:$0xff]  }
 0x2f4   :  { %2849 = vmatprep.subr.bf16.mxu1 %v13487_v51  ;;  %v2839_v51 = vsel %vm990_vm4, %v13529_v48, 0 }
 0x2f7   :  { %2850 = vmatpush1.bf16.msra.mxu1 %v13485_v56 }
 0x2f8   :  { %2851 = vmatprep.subr.bf16.mxu1 %v13490_v58 }
 0x2fa   :  { %2398 = vmatmul.mubr.bf16.gmra.mrb[20].mxu1 %v15153_v37  ;;  %v13499_v37 = vld [vmem:[%s17771_s2 + $0x67c] ss:$12 sps:$4 sm:$0xff]  }
 0x2fb   :  { %10510 = vmatprep.mubr.msk.bf16.mxu1 %vm980_vm6, %v15157_v38  ;;  %2852 = vmatpush1.bf16.msra.mxu1 %v13488_v59 }
 0x2fc   :  { %2853 = vmatprep.subr.bf16.mxu1 %v13493_v19 }
 0x2ff   :  { %2854 = vmatpush1.bf16.msra.mxu1 %v13491_v22 }
 0x300   :  { %2855 = vmatprep.subr.bf16.mxu1 %v13496_v60 }
 0x302   :  { %2408 = vmatmul.mubr.bf16.gmra.mrb[24].mxu1 %v15189_v54 }
 0x303   :  { %2856 = vmatpush1.bf16.msra.mxu1 %v13494_v62  ;;  %10627 = vmatprep.mubr.msk.bf16.mxu1 %vm980_vm6, %v15193_v57  ;;  %v12160_v38 = vpop.f32.mrb[28].mxu0  ;;  %v13500_v57 = vld [vmem:[%s17771_s2 + $0x690] ss:$12 sps:$4 sm:$0xff]  }
 0x304   :  { %2857 = vmatprep.subr.bf16.mxu1 %v13499_v37  ;;  %v12161_v0 = vpop.f32.mrb[29].mxu0 }
 0x305   :  { %v12162_v2 = vadd.f32 %v12161_v0, %v12160_v38  ;;  %v12163_v3 = vpop.f32.mrb[30].mxu0 }
 0x306   :  { %v12164_v4 = vpop.f32.mrb[31].mxu0 }
 0x307   :  { %2858 = vmatpush1.bf16.msra.mxu1 %v13497_v63  ;;  %v12165_v54 = vadd.f32 %v12164_v4, %v12163_v3 }
 0x308   :  { %2859 = vmatprep.subr.bf16.mxu1 %v13502_v1 }
 0x30b   :  { %2860 = vmatpush1.bf16.msra.mxu1 %v13500_v57  ;;  %v12166_v6 = vpop.f32.mrb[32].mxu0 }
 0x30c   :  { %2861 = vmatprep.subr.bf16.mxu1 %v13505_v5  ;;  %v12167_v9 = vpop.f32.mrb[33].mxu0 }
 0x30d   :  { %v12168_v49 = vadd.f32 %v12167_v9, %v12166_v6  ;;  %v12169_v11 = vpop.f32.mrb[34].mxu0 }
 0x30e   :  { %v12170_v33 = vpop.f32.mrb[35].mxu0 }
 0x30f   :  { %2862 = vmatpush1.bf16.msra.mxu1 %v13503_v8  ;;  %v12171_v35 = vadd.f32 %v12170_v33, %v12169_v11 }
 0x310   :  { %2863 = vmatprep.subr.bf16.mxu1 %v13508_v10 }
 0x313   :  { %2864 = vmatpush1.bf16.msra.mxu1 %v13506_v13  ;;  %v12172_v44 = vpop.f32.mrb[36].mxu0 }
 0x314   :  { %2865 = vmatprep.subr.bf16.mxu1 %v13511_v14  ;;  %v12173_v28 = vpop.f32.mrb[37].mxu0 }
 0x315   :  { %v12174_v18 = vadd.f32 %v12173_v28, %v12172_v44  ;;  %v12175_v24 = vpop.f32.mrb[38].mxu0 }
 0x316   :  { %v12176_v39 = vpop.f32.mrb[39].mxu0 }
 0x317   :  { %2866 = vmatpush1.bf16.msra.mxu1 %v13509_v16  ;;  %v12177_v61 = vadd.f32 %v12176_v39, %v12175_v24 }
 0x318   :  { %2867 = vmatprep.subr.bf16.mxu1 %v13514_v17 }
 0x31b   :  { %2868 = vmatpush1.bf16.msra.mxu1 %v13512_v25 }
 0x31c   :  { %2869 = vmatprep.subr.bf16.mxu1 %v13517_v23 }
 0x31f   :  { %2870 = vmatpush1.bf16.msra.mxu1 %v13515_v26 }
 0x320   :  { %2871 = vmatprep.subr.bf16.mxu1 %v13520_v27 }
 0x323   :  { %2872 = vmatpush1.bf16.msra.mxu1 %v13518_v29  ;;  %v12194_v31 = vpop.f32.mrb[40].mxu0 }
 0x324   :  { %v12195_v34 = vpop.f32.mrb[41].mxu0  ;;  %2873 = vmatprep.subr.bf16.mxu1 %v13523_v30 }
 0x325   :  { %v12196_v40 = vadd.f32 %v12195_v34, %v12194_v31  ;;  %v12197_v21 = vpop.f32.mrb[42].mxu0 }
 0x326   :  { %v12198_v41 = vpop.f32.mrb[43].mxu0 }
 0x327   :  { %v1489_v42 = vadd.f32 %v12196_v40, %v12162_v2  ;;  %2874 = vmatpush1.bf16.msra.mxu1 %v13521_v32  ;;  %v12199_v43 = vadd.f32 %v12198_v41, %v12197_v21 }
 0x328   :  { %2875 = vmatprep.subr.bf16.mxu1 %v13526_v36 }
 0x329   :  { %v1492_v50 = vadd.f32 %v12199_v43, %v12165_v54 }
 0x32b   :  { %2876 = vmatpush1.bf16.msra.mxu1 %v13524_v45  ;;  %v12200_v52 = vpop.f32.mrb[44].mxu0 }
 0x32c   :  { %v12201_v53 = vpop.f32.mrb[45].mxu0  ;;  %10626 = vmatprep.subr.msk.bf16.mxu1 %vm990_vm4, %v13527_v46 }
 0x32d   :  { %v12202_v56 = vadd.f32 %v12201_v53, %v12200_v52  ;;  %v12203_v58 = vpop.f32.mrb[46].mxu0 }
 0x32e   :  { %v12204_v59 = vpop.f32.mrb[47].mxu0 }
 0x32f   :  { %v1497_v19 = vadd.f32 %v12202_v56, %v12168_v49  ;;  %2878 = vmatpush1.bf16.msra.mxu1 %v2839_v51  ;;  %v12205_v22 = vadd.f32 %v12204_v59, %v12203_v58 }
 0x331   :  { %v1500_v60 = vadd.f32 %v12205_v22, %v12171_v35 }
 0x332   :  { %2880 = vmatmul.mubr.bf16.vlgmr.msra.gmra.mrb[16].mxu1 %v15244_v12 }
 0x333   :  { %10628 = vmatprep.mubr.msk.bf16.mxu1 %vm980_vm6, %v15250_v55  ;;  %v12206_v62 = vpop.f32.mrb[48].mxu0 }
 0x334   :  { %v12207_v37 = vpop.f32.mrb[49].mxu0 }
 0x335   :  { %v12208_v38 = vadd.f32 %v12207_v37, %v12206_v62  ;;  %v12209_v63 = vpop.f32.mrb[50].mxu0 }
 0x336   :  { %v12210_v0 = vpop.f32.mrb[51].mxu0 }
 0x337   :  { %v1505_v1 = vadd.f32 %v12208_v38, %v12174_v18  ;;  %v12211_v2 = vadd.f32 %v12210_v0, %v12209_v63 }
 0x339   :  { %v1508_v3 = vadd.f32 %v12211_v2, %v12177_v61 }
 0x33a   :  { %2890 = vmatmul.mubr.bf16.gmra.mrb[20].mxu1 %v15270_v15 }
 0x33b   :  { %10629 = vmatprep.mubr.msk.bf16.mxu1 %vm980_vm6, %v15276_v7 }
 0x342   :  { %2900 = vmatmul.mubr.bf16.gmra.mrb[24].mxu1 %v15295_v20 }
 0x344   :  { %v12228_v4 = vpop.f32.mrb[52].mxu0 }
 0x345   :  { %v12229_v12 = vpop.f32.mrb[53].mxu0 }
 0x346   :  { %v12230_v54 = vadd.f32 %v12229_v12, %v12228_v4  ;;  %v12231_v57 = vpop.f32.mrb[54].mxu0 }
 0x347   :  { %v12232_v55 = vpop.f32.mrb[55].mxu0 }
 0x348   :  { %v1983_v5 = vadd.f32 %v12230_v54, %v1489_v42  ;;  %v12233_v6 = vadd.f32 %v12232_v55, %v12231_v57 }
 0x34a   :  { %v1986_v8 = vadd.f32 %v12233_v6, %v1492_v50 }
 0x34c   :  { %v12234_v9 = vpop.f32.mrb[56].mxu0 }
 0x34d   :  { %v12235_v10 = vpop.f32.mrb[57].mxu0 }
 0x34e   :  { %v12236_v49 = vadd.f32 %v12235_v10, %v12234_v9  ;;  %v12237_v11 = vpop.f32.mrb[58].mxu0 }
 0x34f   :  { %v12238_v33 = vpop.f32.mrb[59].mxu0 }
 0x350   :  { %v1989_v35 = vadd.f32 %v12236_v49, %v1497_v19  ;;  %v12239_v15 = vadd.f32 %v12238_v33, %v12237_v11 }
 0x352   :  { %v1992_v13 = vadd.f32 %v12239_v15, %v1500_v60 }
 0x354   :  { %v12240_v14 = vpop.f32.mrb[60].mxu0 }
 0x355   :  { %v12241_v7 = vpop.f32.mrb[61].mxu0 }
 0x356   :  { %v12242_v16 = vadd.f32 %v12241_v7, %v12240_v14  ;;  %v12243_v20 = vpop.f32.mrb[62].mxu0 }
 0x357   :  { %v12244_v44 = vpop.f32.mrb[63].mxu0 }
 0x358   :  { %v1995_v17 = vadd.f32 %v12242_v16, %v1505_v1  ;;  %v12245_v28 = vadd.f32 %v12244_v44, %v12243_v20  ;;  %v13535_v16 = vld [vmem:[%s17772_s3 + $0x2b0] ss:$20 sps:$4 sm:$0xff]   ;;  %v13537_v20 = vld [vmem:[%s17772_s3 + $0x2b4] ss:$20 sps:$4 sm:$0xff]  }
 0x359   :  { %v13543_v44 = vld [vmem:[%s17772_s3 + $0x2dc] ss:$20 sps:$4 sm:$0xff]   ;;  %3898 = vmatprep.subr.bf16.mxu1 %v13537_v20 }
 0x35a   :  { %v1998_v18 = vadd.f32 %v12245_v28, %v1508_v3  ;;  %3899 = vmatpush1.bf16.msra.mxu1 %v13535_v16  ;;  %v13549_v28 = vld [vmem:[%s17772_s3 + $0x304] ss:$20 sps:$4 sm:$0xff]   ;;  %v13540_v16 = vld [vmem:[%s17772_s3 + $0x2d4] ss:$20 sps:$4 sm:$0xff]  }
 0x35b   :  { %3900 = vmatprep.subr.bf16.mxu1 %v13543_v44  ;;  %v13538_v20 = vld [vmem:[%s17772_s3 + $0x2d0] ss:$20 sps:$4 sm:$0xff]   ;;  %v13544_v44 = vld [vmem:[%s17772_s3 + $0x2f8] ss:$20 sps:$4 sm:$0xff]  }
 0x365   :  { %v12262_v24 = vpop.f32.mrb[64].mxu0 }
 0x366   :  { %v12263_v39 = vpop.f32.mrb[65].mxu0 }
 0x367   :  { %v12264_v25 = vadd.f32 %v12263_v39, %v12262_v24  ;;  %v12265_v61 = vpop.f32.mrb[66].mxu0  ;;  %v13555_v24 = vld [vmem:[%s17772_s3 + $0x32c] ss:$20 sps:$4 sm:$0xff]   ;;  %v13553_v39 = vld [vmem:[%s17772_s3 + $0x328] ss:$20 sps:$4 sm:$0xff]  }
 0x368   :  { %v12266_v23 = vpop.f32.mrb[67].mxu0 }
 0x369   :  { %v2477_v26 = vadd.f32 %v12264_v25, %v1983_v5  ;;  %v12267_v27 = vadd.f32 %v12266_v23, %v12265_v61  ;;  %v13561_v25 = vld [vmem:[%s17772_s3 + $0x354] ss:$20 sps:$4 sm:$0xff]   ;;  %v13559_v61 = vld [vmem:[%s17772_s3 + $0x350] ss:$20 sps:$4 sm:$0xff]  }
 0x36a   :  { %v13567_v23 = vld [vmem:[%s17772_s3 + $0x37c] ss:$20 sps:$4 sm:$0xff]  }
 0x36b   :  { %v2480_v29 = vadd.f32 %v12267_v27, %v1986_v8  ;;  %v13573_v27 = vld [vmem:[%s17772_s3 + $0x3a4] ss:$20 sps:$4 sm:$0xff]  }
 0x36d   :  { %v12268_v30 = vpop.f32.mrb[68].mxu0 }
 0x36e   :  { %v12269_v31 = vpop.f32.mrb[69].mxu0 }
 0x36f   :  { %v12270_v32 = vadd.f32 %v12269_v31, %v12268_v30  ;;  %v12271_v34 = vpop.f32.mrb[70].mxu0  ;;  %v13579_v30 = vld [vmem:[%s17772_s3 + $0x3cc] ss:$20 sps:$4 sm:$0xff]   ;;  %v13577_v31 = vld [vmem:[%s17772_s3 + $0x3c8] ss:$20 sps:$4 sm:$0xff]  }
 0x370   :  { %v12272_v36 = vpop.f32.mrb[71].mxu0 }
 0x371   :  { %v2483_v40 = vadd.f32 %v12270_v32, %v1989_v35  ;;  %v12273_v21 = vadd.f32 %v12272_v36, %v12271_v34  ;;  %v13585_v32 = vld [vmem:[%s17772_s3 + $0x3f4] ss:$20 sps:$4 sm:$0xff]   ;;  %v13583_v34 = vld [vmem:[%s17772_s3 + $0x3f0] ss:$20 sps:$4 sm:$0xff]  }
 0x372   :  { %v13591_v36 = vld [vmem:[%s17772_s3 + $0x41c] ss:$20 sps:$4 sm:$0xff]  }
 0x373   :  { %v2486_v41 = vadd.f32 %v12273_v21, %v1992_v13  ;;  %v13597_v21 = vld [vmem:[%s17772_s3 + $0x444] ss:$20 sps:$4 sm:$0xff]  }
 0x375   :  { %v12274_v42 = vpop.f32.mrb[72].mxu0 }
 0x376   :  { %v12275_v43 = vpop.f32.mrb[73].mxu0 }
 0x377   :  { %v12276_v45 = vadd.f32 %v12275_v43, %v12274_v42  ;;  %v12277_v46 = vpop.f32.mrb[74].mxu0  ;;  %v13603_v42 = vld [vmem:[%s17772_s3 + $0x46c] ss:$20 sps:$4 sm:$0xff]   ;;  %v13601_v43 = vld [vmem:[%s17772_s3 + $0x468] ss:$20 sps:$4 sm:$0xff]  }
 0x378   :  { %v12278_v48 = vpop.f32.mrb[75].mxu0 }
 0x379   :  { %v2489_v50 = vadd.f32 %v12276_v45, %v1995_v17  ;;  %v12279_v52 = vadd.f32 %v12278_v48, %v12277_v46  ;;  %v13541_v17 = vld [vmem:[%s17772_s3 + $0x2d8] ss:$20 sps:$4 sm:$0xff]   ;;  %v13609_v45 = vld [vmem:[%s17772_s3 + $0x494] ss:$20 sps:$4 sm:$0xff]   ;;  %v13607_v46 = vld [vmem:[%s17772_s3 + $0x490] ss:$20 sps:$4 sm:$0xff]  }
 0x37a   :  { %3901 = vmatpush1.bf16.msra.mxu1 %v13541_v17  ;;  %v13552_v17 = vld [vmem:[%s17772_s3 + $0x324] ss:$20 sps:$4 sm:$0xff]  }
 0x37b   :  { %v2492_v53 = vadd.f32 %v12279_v52, %v1998_v18  ;;  %v13547_v18 = vld [vmem:[%s17772_s3 + $0x300] ss:$20 sps:$4 sm:$0xff]   ;;  %3902 = vmatprep.subr.bf16.mxu1 %v13549_v28 }
 0x37c   :  { %v13550_v28 = vld [vmem:[%s17772_s3 + $0x320] ss:$20 sps:$4 sm:$0xff]  }
 0x37e   :  { %3903 = vmatpush1.bf16.msra.mxu1 %v13547_v18  ;;  %v13558_v18 = vld [vmem:[%s17772_s3 + $0x34c] ss:$20 sps:$4 sm:$0xff]  }
 0x37f   :  { %3904 = vmatprep.subr.bf16.mxu1 %v13555_v24  ;;  %v13556_v24 = vld [vmem:[%s17772_s3 + $0x348] ss:$20 sps:$4 sm:$0xff]  }
 0x382   :  { %3905 = vmatpush1.bf16.msra.mxu1 %v13553_v39  ;;  %v13564_v39 = vld [vmem:[%s17772_s3 + $0x374] ss:$20 sps:$4 sm:$0xff]  }
 0x383   :  { %3906 = vmatprep.subr.bf16.mxu1 %v13561_v25  ;;  %v13562_v25 = vld [vmem:[%s17772_s3 + $0x370] ss:$20 sps:$4 sm:$0xff]  }
 0x385   :  { %v12296_v51 = vpop.f32.mrb[76].mxu0 }
 0x386   :  { %v12297_v56 = vpop.f32.mrb[77].mxu0  ;;  %3907 = vmatpush1.bf16.msra.mxu1 %v13559_v61  ;;  %v13570_v61 = vld [vmem:[%s17772_s3 + $0x39c] ss:$20 sps:$4 sm:$0xff]  }
 0x387   :  { %v12298_v58 = vadd.f32 %v12297_v56, %v12296_v51  ;;  %v12299_v59 = vpop.f32.mrb[78].mxu0  ;;  %3908 = vmatprep.subr.bf16.mxu1 %v13567_v23  ;;  %v13568_v23 = vld [vmem:[%s17772_s3 + $0x398] ss:$20 sps:$4 sm:$0xff]  }
 0x388   :  { %v12300_v19 = vpop.f32.mrb[79].mxu0 }
 0x389   :  { %v2969_v22 = vadd.f32 %v12298_v58, %v2477_v26  ;;  %v12301_v60 = vadd.f32 %v12300_v19, %v12299_v59  ;;  %v13565_v26 = vld [vmem:[%s17772_s3 + $0x378] ss:$20 sps:$4 sm:$0xff]  }
 0x38a   :  { %3909 = vmatpush1.bf16.msra.mxu1 %v13565_v26  ;;  %v13576_v26 = vld [vmem:[%s17772_s3 + $0x3c4] ss:$20 sps:$4 sm:$0xff]  }
 0x38b   :  { %v2972_v62 = vadd.f32 %v12301_v60, %v2480_v29  ;;  %v2987_v37 = vmax.f32 %v2969_v22, 0.0  ;;  %v13571_v29 = vld [vmem:[%s17772_s3 + $0x3a0] ss:$20 sps:$4 sm:$0xff]   ;;  %3910 = vmatprep.subr.bf16.mxu1 %v13573_v27 }
 0x38c   :  { %v13574_v27 = vld [vmem:[%s17772_s3 + $0x3c0] ss:$20 sps:$4 sm:$0xff]  }
 0x38d   :  { %v2990_v38 = vmax.f32 %v2972_v62, 0.0  ;;  %v12302_v63 = vpop.f32.mrb[80].mxu0 }
 0x38e   :  { %v12303_v0 = vpop.f32.mrb[81].mxu0  ;;  %3911 = vmatpush1.bf16.msra.mxu1 %v13571_v29  ;;  %v13582_v29 = vld [vmem:[%s17772_s3 + $0x3ec] ss:$20 sps:$4 sm:$0xff]  }
 0x38f   :  { %v12304_v1 = vadd.f32 %v12303_v0, %v12302_v63  ;;  %v12305_v2 = vpop.f32.mrb[82].mxu0  ;;  %v15480_v3 = vpack.c.bf16 %v2990_v38, %v2987_v37  ;;  %3912 = vmatprep.subr.bf16.mxu1 %v13579_v30  ;;  %v13580_v30 = vld [vmem:[%s17772_s3 + $0x3e8] ss:$20 sps:$4 sm:$0xff]  }
 0x390   :  { %v12306_v4 = vpop.f32.mrb[83].mxu0 }
 0x391   :  { %v2975_v12 = vadd.f32 %v12304_v1, %v2483_v40  ;;  %v12307_v54 = vadd.f32 %v12306_v4, %v12305_v2  ;;  %v13589_v40 = vld [vmem:[%s17772_s3 + $0x418] ss:$20 sps:$4 sm:$0xff]  }
 0x392   :  { %3913 = vmatpush1.bf16.msra.mxu1 %v13577_v31  ;;  %v13588_v31 = vld [vmem:[%s17772_s3 + $0x414] ss:$20 sps:$4 sm:$0xff]  }
 0x393   :  { %v2978_v57 = vadd.f32 %v12307_v54, %v2486_v41  ;;  %v2993_v55 = vmax.f32 %v2975_v12, 0.0  ;;  %3914 = vmatprep.subr.bf16.mxu1 %v13585_v32  ;;  %v13595_v41 = vld [vmem:[%s17772_s3 + $0x440] ss:$20 sps:$4 sm:$0xff]   ;;  %v13586_v32 = vld [vmem:[%s17772_s3 + $0x410] ss:$20 sps:$4 sm:$0xff]  }
 0x395   :  { %v2996_v5 = vmax.f32 %v2978_v57, 0.0  ;;  %v12308_v6 = vpop.f32.mrb[84].mxu0 }
 0x396   :  { %v12309_v8 = vpop.f32.mrb[85].mxu0  ;;  %3915 = vmatpush1.bf16.msra.mxu1 %v13583_v34  ;;  %v13594_v34 = vld [vmem:[%s17772_s3 + $0x43c] ss:$20 sps:$4 sm:$0xff]  }
 0x397   :  { %v12310_v9 = vadd.f32 %v12309_v8, %v12308_v6  ;;  %v12311_v10 = vpop.f32.mrb[86].mxu0  ;;  %v15482_v49 = vpack.c.bf16 %v2996_v5, %v2993_v55  ;;  %3916 = vmatprep.subr.bf16.mxu1 %v13591_v36  ;;  %v13592_v36 = vld [vmem:[%s17772_s3 + $0x438] ss:$20 sps:$4 sm:$0xff]  }
 0x398   :  { %v12312_v11 = vpop.f32.mrb[87].mxu0 }
 0x399   :  { %v2981_v33 = vadd.f32 %v12310_v9, %v2489_v50  ;;  %v12313_v35 = vadd.f32 %v12312_v11, %v12311_v10 }
 0x39a   :  { %3917 = vmatpush1.bf16.msra.mxu1 %v13589_v40  ;;  %v13600_v40 = vld [vmem:[%s17772_s3 + $0x464] ss:$20 sps:$4 sm:$0xff]  }
 0x39b   :  { %v2984_v15 = vadd.f32 %v12313_v35, %v2492_v53  ;;  %v2999_v13 = vmax.f32 %v2981_v33, 0.0  ;;  %3918 = vmatprep.subr.bf16.mxu1 %v13597_v21  ;;  %v13598_v21 = vld [vmem:[%s17772_s3 + $0x460] ss:$20 sps:$4 sm:$0xff]  }
 0x39d   :  { %v3002_v14 = vmax.f32 %v2984_v15, 0.0  ;;  %v13530_v15 = vld [vmem:[%s17774_s5] sm:$0xff]  }
 0x39e   :  { %3919 = vmatpush1.bf16.msra.mxu1 %v13595_v41  ;;  %v13606_v41 = vld [vmem:[%s17772_s3 + $0x48c] ss:$20 sps:$4 sm:$0xff]  }
 0x39f   :  { %v15484_v7 = vpack.c.bf16 %v3002_v14, %v2999_v13  ;;  %3920 = vmatprep.subr.bf16.mxu1 %v13603_v42  ;;  %v13531_v13 = vld [vmem:[%s17774_s5 + $0x8] ss:$0 sps:$4 sm:$0x77]   ;;  %v13534_v14 = vld [vmem:[%s17772_s3 + $0x2ac] ss:$20 sps:$4 sm:$0xff]  }
 0x3a0   :  { %v13604_v42 = vld [vmem:[%s17772_s3 + $0x488] ss:$20 sps:$4 sm:$0xff]  }
 0x3a2   :  { %3921 = vmatpush1.bf16.msra.mxu1 %v13601_v43  ;;  %v13612_v43 = vld [vmem:[%s17772_s3 + $0x4b4] ss:$20 sps:$4 sm:$0xff]  }
 0x3a3   :  { %3922 = vmatprep.subr.bf16.mxu1 %v13609_v45  ;;  %v13615_v45 = vld [vmem:[%s17772_s3 + $0x4bc] ss:$20 sps:$4 sm:$0xff]  }
 0x3a6   :  { %3923 = vmatpush1.bf16.msra.mxu1 %v13607_v46  ;;  %v13610_v46 = vld [vmem:[%s17772_s3 + $0x4b0] ss:$20 sps:$4 sm:$0xff]  }
 0x3a7   :  { %3924 = vmatprep.subr.bf16.mxu1 %v13615_v45  ;;  %v13662_v45 = vld [vmem:[%s17772_s3 + $0xd4] ss:$20 sps:$4 sm:$0xff]  }
 0x405   :  { %v2881_v48 = vpop.f32.mrb[16].mxu1 }
 0x406   :  { %v2883_v50 = vpop.f32.mrb[17].mxu1  ;;  %v2985_v53 = vmax.f32 %v2881_v48, 0.0  ;;  %v13613_v48 = vld [vmem:[%s17772_s3 + $0x4b8] ss:$20 sps:$4 sm:$0xff]  }
 0x407   :  { %v2885_v52 = vpop.f32.mrb[18].mxu1  ;;  %v2986_v58 = vmax.f32 %v2883_v50, 0.0  ;;  %3925 = vmatpush1.bf16.msra.mxu1 %v13613_v48  ;;  %v13618_v50 = vld [vmem:[%s17772_s3 + $0x4dc] ss:$20 sps:$4 sm:$0xff]   ;;  %v13663_v48 = vld [vmem:[%s17772_s3 + $0x380] ss:$20 sps:$4 sm:$0xff]  }
 0x408   :  { %v2988_v51 = vmax.f32 %v2885_v52, 0.0  ;;  %v2887_v56 = vpop.f32.mrb[19].mxu1  ;;  %v13621_v52 = vld [vmem:[%s17772_s3 + $0x4e4] ss:$20 sps:$4 sm:$0xff]  }
 0x409   :  { %v2989_v59 = vmax.f32 %v2887_v56, 0.0  ;;  %3926 = vmatprep.subr.bf16.mxu1 %v13621_v52  ;;  %v13624_v56 = vld [vmem:[%s17772_s3 + $0x504] ss:$20 sps:$4 sm:$0xff]   ;;  %v13667_v52 = vld [vmem:[%s17772_s3 + $0xfc] ss:$20 sps:$4 sm:$0xff]  }
 0x40a   :  { %v3003_v19 = vpack.c.bf16 %v2988_v51, %v2985_v53  ;;  %v13616_v53 = vld [vmem:[%s17772_s3 + $0x4d8] ss:$20 sps:$4 sm:$0xff]   ;;  %v13619_v51 = vld [vmem:[%s17772_s3 + $0x4e0] ss:$20 sps:$4 sm:$0xff]  }
 0x40b   :  { %v3004_v22 = vpack.c.bf16 %v2989_v59, %v2986_v58  ;;  %3927 = vmatpush1.bf16.msra.mxu1 %v13619_v51  ;;  %v13627_v58 = vld [vmem:[%s17772_s3 + $0x50c] ss:$20 sps:$4 sm:$0xff]   ;;  %v13668_v51 = vld [vmem:[%s17772_s3 + $0x3a8] ss:$20 sps:$4 sm:$0xff]  }
 0x40c   :  { %v13622_v59 = vld [vmem:[%s17772_s3 + $0x500] ss:$20 sps:$4 sm:$0xff]   ;;  %3928 = vmatprep.subr.bf16.mxu1 %v13627_v58  ;;  %v13672_v58 = vld [vmem:[%s17772_s3 + $0x124] ss:$20 sps:$4 sm:$0xff]  }
 0x40d   :  { %v2891_v60 = vpop.f32.mrb[20].mxu1  ;;  %3039 = vmatprep.subr.bf16.mxu0 %v3004_v22  ;;  %v13630_v22 = vld [vmem:[%s17772_s3 + $0x52c] ss:$20 sps:$4 sm:$0xff]  }
 0x40e   :  { %v2893_v62 = vpop.f32.mrb[21].mxu1  ;;  %3040 = vmatpush1.bf16.msra.mxu0 %v3003_v19  ;;  %v2991_v38 = vmax.f32 %v2891_v60, 0.0  ;;  %v13625_v19 = vld [vmem:[%s17772_s3 + $0x508] ss:$20 sps:$4 sm:$0xff]  }
 0x40f   :  { %v2895_v37 = vpop.f32.mrb[22].mxu1  ;;  %v2992_v1 = vmax.f32 %v2893_v62, 0.0  ;;  %3929 = vmatpush1.bf16.msra.mxu1 %v13625_v19  ;;  %v13633_v60 = vld [vmem:[%s17772_s3 + $0x534] ss:$20 sps:$4 sm:$0xff]   ;;  %v13673_v19 = vld [vmem:[%s17772_s3 + $0x3d0] ss:$20 sps:$4 sm:$0xff]  }
 0x410   :  { %v2994_v63 = vmax.f32 %v2895_v37, 0.0  ;;  %v2897_v0 = vpop.f32.mrb[23].mxu1  ;;  %3941 = vmatprep.subr.bf16.mxu1 %v13633_v60  ;;  %v13674_v60 = vld [vmem:[%s17772_s3 + $0x148] ss:$20 sps:$4 sm:$0xff]  }
 0x411   :  { %v2995_v2 = vmax.f32 %v2897_v0, 0.0 }
 0x412   :  { %v3006_v4 = vpack.c.bf16 %v2994_v63, %v2991_v38 }
 0x413   :  { %v3007_v12 = vpack.c.bf16 %v2995_v2, %v2992_v1 }
 0x415   :  { %v2901_v54 = vpop.f32.mrb[24].mxu1  ;;  %3041 = vmatprep.subr.bf16.mxu0 %v3007_v12 }
 0x416   :  { %v2903_v57 = vpop.f32.mrb[25].mxu1  ;;  %3042 = vmatpush1.bf16.msra.mxu0 %v3006_v4  ;;  %v2997_v5 = vmax.f32 %v2901_v54, 0.0 }
 0x417   :  { %v2905_v55 = vpop.f32.mrb[26].mxu1  ;;  %v2998_v9 = vmax.f32 %v2903_v57, 0.0 }
 0x418   :  { %v3000_v6 = vmax.f32 %v2905_v55, 0.0  ;;  %v2907_v8 = vpop.f32.mrb[27].mxu1 }
 0x419   :  { %v3001_v10 = vmax.f32 %v2907_v8, 0.0 }
 0x41a   :  { %v3009_v11 = vpack.c.bf16 %v3000_v6, %v2997_v5 }
 0x41b   :  { %v3010_v33 = vpack.c.bf16 %v3001_v10, %v2998_v9  ;;  %v13628_v10 = vld [vmem:[%s17772_s3 + $0x528] ss:$20 sps:$4 sm:$0xff]  }
 0x41c   :  { %v3031_v35 = vsel %vm990_vm4, %v3009_v11, 0  ;;  %v13631_v11 = vld [vmem:[%s17772_s3 + $0x530] ss:$20 sps:$4 sm:$0xff]  }
 0x41d   :  { %10635 = vmatprep.subr.msk.bf16.mxu0 %vm990_vm4, %v3010_v33 }
 0x41e   :  { %3044 = vmatpush1.bf16.msra.mxu0 %v3031_v35 }
 0x41f   :  { %12830 = vmatprep.subr.bf16.mxu0 %v15480_v3 }
 0x421   :  { %10636 = vmatmul.mubr.msk.bf16.vlgmr.msra.gmra.mrb[88].mxu0 %vm3023_vm8, %v13530_v15 }
 0x422   :  { %12831 = vmatpush3.bf16.msra.mxu0 %v15480_v3  ;;  %3081 = vmatprep.mubr.bf16.mxu0 %v14342_v47  ;;  %v3037_v3 = vsel %vm990_vm4, %v15484_v7, 0 }
 0x423   :  { %12832 = vmatprep.subr.bf16.mxu0 %v15482_v49 }
 0x426   :  { %12833 = vmatpush3.bf16.msra.mxu0 %v15482_v49  ;;  %v13532_v49 = vld [vmem:[%s17772_s3 + $0x2a8] ss:$20 sps:$4 sm:$0xff]  }
 0x427   :  { %13137 = vmatprep.subr.msk.bf16.mxu0 %vm990_vm4, %v15484_v7  ;;  %v13546_v7 = vld [vmem:[%s17772_s3 + $0x2fc] ss:$20 sps:$4 sm:$0xff]  }
 0x429   :  { %10637 = vmatmul.mubr.msk.bf16.gmra.mrb[92].mxu0 %vm3023_vm8, %v13531_v13 }
 0x42a   :  { %12835 = vmatpush3.bf16.msra.mxu0 %v3037_v3  ;;  %12836 = vmatprep.mubr.msk.bf16.mxu0 %vm3023_vm8, %v13530_v15  ;;  %v13634_v15 = vld [vmem:[%s17772_s3 + $0x3f8] ss:$20 sps:$4 sm:$0xff]  }
 0x42b   :  { %3812 = vmatprep.subr.bf16.mxu0 %v13534_v14 }
 0x431   :  { %12837 = vmatmul.mubr.msk.bf16.vlgmr.msra.gmra.mrb[96].mxu0 %vm3023_vm8, %v13531_v13  ;;  %v13637_v13 = vld [vmem:[%s17772_s3 + $0xc] ss:$20 sps:$4 sm:$0xff]  }
 0x432   :  { %3813 = vmatpush1.bf16.msra.mxu0 %v13532_v49 }
 0x433   :  { %3814 = vmatprep.subr.bf16.mxu0 %v13540_v16 }
 0x436   :  { %3815 = vmatpush1.bf16.msra.mxu0 %v13538_v20 }
 0x437   :  { %3816 = vmatprep.subr.bf16.mxu0 %v13546_v7 }
 0x43a   :  { %3817 = vmatpush1.bf16.msra.mxu0 %v13544_v44 }
 0x43b   :  { %3818 = vmatprep.subr.bf16.mxu0 %v13552_v17 }
 0x43e   :  { %3819 = vmatpush1.bf16.msra.mxu0 %v13550_v28  ;;  %v13635_v28 = vld [vmem:[%s17772_s3 + $0x8] ss:$20 sps:$4 sm:$0xff]  }
 0x43f   :  { %3820 = vmatprep.subr.bf16.mxu0 %v13558_v18  ;;  %v13638_v18 = vld [vmem:[%s17772_s3 + $0x2b8] ss:$20 sps:$4 sm:$0xff]  }
 0x442   :  { %3821 = vmatpush1.bf16.msra.mxu0 %v13556_v24 }
 0x443   :  { %3822 = vmatprep.subr.bf16.mxu0 %v13564_v39  ;;  %v13639_v39 = vld [vmem:[%s17772_s3 + $0x420] ss:$20 sps:$4 sm:$0xff]  }
 0x446   :  { %3823 = vmatpush1.bf16.msra.mxu0 %v13562_v25  ;;  %v13642_v25 = vld [vmem:[%s17772_s3 + $0x34] ss:$20 sps:$4 sm:$0xff]  }
 0x447   :  { %3824 = vmatprep.subr.bf16.mxu0 %v13570_v61  ;;  %v13640_v61 = vld [vmem:[%s17772_s3 + $0x30] ss:$20 sps:$4 sm:$0xff]  }
 0x44a   :  { %3825 = vmatpush1.bf16.msra.mxu0 %v13568_v23  ;;  %v13643_v23 = vld [vmem:[%s17772_s3 + $0x2e0] ss:$20 sps:$4 sm:$0xff]  }
 0x44b   :  { %3826 = vmatprep.subr.bf16.mxu0 %v13576_v26  ;;  %v13644_v26 = vld [vmem:[%s17772_s3 + $0x448] ss:$20 sps:$4 sm:$0xff]  }
 0x44e   :  { %3827 = vmatpush1.bf16.msra.mxu0 %v13574_v27  ;;  %v13647_v27 = vld [vmem:[%s17772_s3 + $0x5c] ss:$20 sps:$4 sm:$0xff]  }
 0x44f   :  { %3828 = vmatprep.subr.bf16.mxu0 %v13582_v29  ;;  %v13645_v29 = vld [vmem:[%s17772_s3 + $0x58] ss:$20 sps:$4 sm:$0xff]  }
 0x452   :  { %3829 = vmatpush1.bf16.msra.mxu0 %v13580_v30  ;;  %v13648_v30 = vld [vmem:[%s17772_s3 + $0x308] ss:$20 sps:$4 sm:$0xff]  }
 0x453   :  { %3830 = vmatprep.subr.bf16.mxu0 %v13588_v31  ;;  %v13649_v31 = vld [vmem:[%s17772_s3 + $0x470] ss:$20 sps:$4 sm:$0xff]  }
 0x456   :  { %3831 = vmatpush1.bf16.msra.mxu0 %v13586_v32  ;;  %v13652_v32 = vld [vmem:[%s17772_s3 + $0x84] ss:$20 sps:$4 sm:$0xff]  }
 0x457   :  { %3832 = vmatprep.subr.bf16.mxu0 %v13594_v34  ;;  %v13650_v34 = vld [vmem:[%s17772_s3 + $0x80] ss:$20 sps:$4 sm:$0xff]  }
 0x45a   :  { %3833 = vmatpush1.bf16.msra.mxu0 %v13592_v36  ;;  %v13653_v36 = vld [vmem:[%s17772_s3 + $0x330] ss:$20 sps:$4 sm:$0xff]  }
 0x45b   :  { %3834 = vmatprep.subr.bf16.mxu0 %v13600_v40  ;;  %v13654_v40 = vld [vmem:[%s17772_s3 + $0x498] ss:$20 sps:$4 sm:$0xff]  }
 0x45e   :  { %3835 = vmatpush1.bf16.msra.mxu0 %v13598_v21  ;;  %v13657_v21 = vld [vmem:[%s17772_s3 + $0xac] ss:$20 sps:$4 sm:$0xff]  }
 0x45f   :  { %3836 = vmatprep.subr.bf16.mxu0 %v13606_v41  ;;  %v13655_v41 = vld [vmem:[%s17772_s3 + $0xa8] ss:$20 sps:$4 sm:$0xff]  }
 0x462   :  { %3837 = vmatpush1.bf16.msra.mxu0 %v13604_v42  ;;  %v13658_v42 = vld [vmem:[%s17772_s3 + $0x358] ss:$20 sps:$4 sm:$0xff]  }
 0x463   :  { %3838 = vmatprep.subr.bf16.mxu0 %v13612_v43  ;;  %v13659_v43 = vld [vmem:[%s17772_s3 + $0x4c0] ss:$20 sps:$4 sm:$0xff]  }
 0x466   :  { %3839 = vmatpush1.bf16.msra.mxu0 %v13610_v46  ;;  %v13660_v46 = vld [vmem:[%s17772_s3 + $0xd0] ss:$20 sps:$4 sm:$0xff]  }
 0x467   :  { %3840 = vmatprep.subr.bf16.mxu0 %v13618_v50  ;;  %v13664_v50 = vld [vmem:[%s17772_s3 + $0x4e8] ss:$20 sps:$4 sm:$0xff]  }
 0x46a   :  { %3841 = vmatpush1.bf16.msra.mxu0 %v13616_v53  ;;  %v13665_v53 = vld [vmem:[%s17772_s3 + $0xf8] ss:$20 sps:$4 sm:$0xff]  }
 0x46b   :  { %3842 = vmatprep.subr.bf16.mxu0 %v13624_v56  ;;  %v13669_v56 = vld [vmem:[%s17772_s3 + $0x510] ss:$20 sps:$4 sm:$0xff]  }
 0x46e   :  { %3843 = vmatpush1.bf16.msra.mxu0 %v13622_v59  ;;  %v13670_v59 = vld [vmem:[%s17772_s3 + $0x120] ss:$20 sps:$4 sm:$0xff]  }
 0x46f   :  { %3855 = vmatprep.subr.bf16.mxu0 %v13630_v22  ;;  %v13676_v22 = vld [vmem:[%s17772_s3 + $0x14c] ss:$20 sps:$4 sm:$0xff]  }
 0x4f4   :  { %v3073_v62 = vpop.f32.mrb[88].mxu0 }
 0x4f5   :  { %v3075_v37 = vpop.f32.mrb[89].mxu0 }
 0x4f6   :  { %v3077_v38 = vpop.f32.mrb[90].mxu0 }
 0x4f7   :  { %v15705_v63 = vpack.c.bf16 %v3077_v38, %v3073_v62  ;;  %v3079_v0 = vpop.f32.mrb[91].mxu0  ;;  %v13677_v62 = vld [vmem:[%s17772_s3 + $0x538] ss:$20 sps:$4 sm:$0xff]   ;;  %v13680_v38 = vld [vmem:[%s17772_s3 + $0x174] ss:$20 sps:$4 sm:$0xff]  }
 0x4f8   :  { %v15707_v1 = vpack.c.bf16 %v3079_v0, %v3075_v37  ;;  %v14343_v37 = vmov 0.0   ;;  %v13683_v0 = vld [vmem:[%s17772_s3 + $0x4] ss:$20 sps:$4 sm:$0xff]  }
 0x4f9   :  { %v3355_v9 = vrot.slane %v15705_v63, 1 }
 0x4fa   :  { %v3358_v8 = vrot.slane %v15707_v1, 1 }
 0x4fc   :  { %v3083_v2 = vpop.f32.mrb[92].mxu0 }
 0x4fd   :  { %v15709_v4 = vpack.c.bf16 %v3083_v2, %v3083_v2  ;;  %v3085_v12 = vpop.f32.mrb[93].mxu0  ;;  %v13678_v2 = vld [vmem:[%s17772_s3 + $0x170] ss:$20 sps:$4 sm:$0xff]  }
 0x4fe   :  { %v15711_v54 = vpack.c.bf16 %v3085_v12, %v3085_v12  ;;  %v3087_v57 = vpop.f32.mrb[94].mxu0  ;;  %v13686_v12 = vld [vmem:[%s17772_s3 + $0x19c] ss:$20 sps:$4 sm:$0xff]  }
 0x4ff   :  { %v3356_v55 = vrot.slane %v15709_v4, 1  ;;  %v3088_v5 = vpop.f32.mrb[95].mxu0  ;;  %v13681_v57 = vld [vmem:[%s17772_s3] ss:$20 sps:$4 sm:$0xff]  }
 0x500   :  { %v3359_v6 = vrot.slane %v15711_v54, 1  ;;  %v13689_v5 = vld [vmem:[%s17772_s3 + $0x2c] ss:$20 sps:$4 sm:$0xff]  }
 0x501   :  { %v15725_v35 = vsel %vm713_vm5, %v3355_v9, %v3356_v55  ;;  %v13684_v55 = vld [vmem:[%s17772_s3 + $0x198] ss:$20 sps:$4 sm:$0xff]   ;;  %v13690_v9 = vld [vmem:[%s17772_s3 + $0x1c0] ss:$20 sps:$4 sm:$0xff]  }
 0x502   :  { %v3360_v33 = vsel %vm713_vm5, %v3358_v8, %v3359_v6  ;;  %v13692_v6 = vld [vmem:[%s17772_s3 + $0x1c4] ss:$20 sps:$4 sm:$0xff]   ;;  %v13687_v8 = vld [vmem:[%s17772_s3 + $0x28] ss:$20 sps:$4 sm:$0xff]  }
 0x503   :  { %3844 = vmatprep.mubr.bf16.mxu0 %v3360_v33  ;;  %3930 = vmatprep.mubr.bf16.mxu1 %v3360_v33 }
 0x504   :  { %3845 = vmatmul.mubr.bf16.vlgmr.msra.gmra.mrb[100].mxu0 %v15725_v35  ;;  %3931 = vmatmul.mubr.bf16.vlgmr.msra.gmra.mrb[28].mxu1 %v15725_v35  ;;  %v12838_v14 = vpop.f32.mrb[96].mxu0 }
 0x505   :  { %v3124_v3 = vpop.f32.mrb[97].mxu0  ;;  %3856 = vmatpush1.bf16.msra.mxu0 %v13628_v10  ;;  %3942 = vmatpush1.bf16.msra.mxu1 %v13631_v11  ;;  %v15737_v16 = vpack.c.bf16 %v12838_v14, %v12838_v14  ;;  %v13695_v10 = vld [vmem:[%s17772_s3 + $0x54] ss:$20 sps:$4 sm:$0xff]   ;;  %v13698_v11 = vld [vmem:[%s17772_s3 + $0x1ec] ss:$20 sps:$4 sm:$0xff]  }
 0x506   :  { %v12839_v49 = vpop.f32.mrb[98].mxu0  ;;  %3887 = vmatprep.mubr.bf16.mxu0 %v14342_v47  ;;  %3973 = vmatprep.mubr.bf16.mxu1 %v14342_v47  ;;  %v13699_v14 = vld [vmem:[%s17772_s3 + $0x78] ss:$20 sps:$4 sm:$0xff]  }
 0x507   :  { %v3127_v20 = vpop.f32.mrb[99].mxu0  ;;  %12319 = vmatprep.subr.bf16.mxu0 %v13634_v15  ;;  %4597 = vmatprep.subr.bf16.mxu1 %v13637_v13  ;;  %v3362_v44 = vrot.slane %v15737_v16, 1  ;;  %v13701_v15 = vld [vmem:[%s17772_s3 + $0x7c] ss:$20 sps:$4 sm:$0xff]   ;;  %v13704_v13 = vld [vmem:[%s17772_s3 + $0x214] ss:$20 sps:$4 sm:$0xff]  }
 0x508   :  { %v15739_v7 = vpack.c.bf16 %v3127_v20, %v3124_v3  ;;  %v13702_v3 = vld [vmem:[%s17772_s3 + $0x210] ss:$20 sps:$4 sm:$0xff]  }
 0x509   :  { %v13707_v49 = vld [vmem:[%s17772_s3 + $0xa4] ss:$20 sps:$4 sm:$0xff]   ;;  %v13710_v20 = vld [vmem:[%s17772_s3 + $0x23c] ss:$20 sps:$4 sm:$0xff]  }
 0x50a   :  { %v3361_v17 = vrot.slane %v15739_v7, 1 }
 0x50c   :  { %v15750_v24 = vsel %vm713_vm5, %v3361_v17, %v3362_v44  ;;  %v13705_v44 = vld [vmem:[%s17772_s3 + $0xa0] ss:$20 sps:$4 sm:$0xff]   ;;  %v13708_v17 = vld [vmem:[%s17772_s3 + $0x238] ss:$20 sps:$4 sm:$0xff]  }
 0x510   :  { %10827 = vmatmul.mubr.msk.bf16.vlgmr.msra.gmra.mrb[100].mxu0 %vm3808_vm9, %v15750_v24  ;;  %10828 = vmatmul.mubr.msk.bf16.vlgmr.msra.gmra.mrb[28].mxu1 %vm3808_vm9, %v15750_v24 }
 0x511   :  { %12320 = vmatpush3.bf16.msra.mxu0 %v13638_v18  ;;  %4598 = vmatpush1.bf16.msra.mxu1 %v13635_v28  ;;  %v13713_v28 = vld [vmem:[%s17772_s3 + $0xcc] ss:$20 sps:$4 sm:$0xff]   ;;  %v13716_v18 = vld [vmem:[%s17772_s3 + $0x264] ss:$20 sps:$4 sm:$0xff]  }
 0x512   :  { %4016 = vmatprep.mubr.bf16.mxu0 %v3360_v33  ;;  %4629 = vmatprep.mubr.bf16.mxu1 %v15707_v1  ;;  %v13693_v33 = vld [vmem:[%s17772_s3 + $0x50] ss:$20 sps:$4 sm:$0xff]  }
 0x513   :  { %12321 = vmatprep.subr.bf16.mxu0 %v13639_v39  ;;  %4599 = vmatprep.subr.bf16.mxu1 %v13642_v25  ;;  %v13714_v39 = vld [vmem:[%s17772_s3 + $0x260] ss:$20 sps:$4 sm:$0xff]  }
 0x514   :  { %v13719_v25 = vld [vmem:[%s17772_s3 + $0xf4] ss:$20 sps:$4 sm:$0xff]  }
 0x515   :  { %12322 = vmatpush3.bf16.msra.mxu0 %v13643_v23  ;;  %4600 = vmatpush1.bf16.msra.mxu1 %v13640_v61  ;;  %v13728_v61 = vld [vmem:[%s17772_s3 + $0x28c] ss:$20 sps:$4 sm:$0xff]   ;;  %v13717_v23 = vld [vmem:[%s17772_s3 + $0xf0] ss:$20 sps:$4 sm:$0xff]  }
 0x516   :  { %12323 = vmatprep.subr.bf16.mxu0 %v13644_v26  ;;  %4601 = vmatprep.subr.bf16.mxu1 %v13647_v27  ;;  %v13722_v26 = vld [vmem:[%s17772_s3 + $0x11c] ss:$20 sps:$4 sm:$0xff]  }
 0x517   :  { %v13726_v27 = vld [vmem:[%s17772_s3 + $0x288] ss:$20 sps:$4 sm:$0xff]  }
 0x519   :  { %12324 = vmatpush3.bf16.msra.mxu0 %v13648_v30  ;;  %4602 = vmatpush1.bf16.msra.mxu1 %v13645_v29  ;;  %v13734_v29 = vld [vmem:[%s17772_s3 + $0x55c] ss:$20 sps:$4 sm:$0xff]   ;;  %v13720_v30 = vld [vmem:[%s17772_s3 + $0x118] ss:$20 sps:$4 sm:$0xff]  }
 0x51a   :  { %12325 = vmatprep.subr.bf16.mxu0 %v13649_v31  ;;  %4603 = vmatprep.subr.bf16.mxu1 %v13652_v32  ;;  %v13725_v31 = vld [vmem:[%s17772_s3 + $0x144] ss:$20 sps:$4 sm:$0xff]   ;;  %v13723_v32 = vld [vmem:[%s17772_s3 + $0x140] ss:$20 sps:$4 sm:$0xff]  }
 0x51d   :  { %12326 = vmatpush3.bf16.msra.mxu0 %v13653_v36  ;;  %4604 = vmatpush1.bf16.msra.mxu1 %v13650_v34  ;;  %v13731_v34 = vld [vmem:[%s17772_s3 + $0x16c] ss:$20 sps:$4 sm:$0xff]   ;;  %v4872_v36 = vrot.slane %v15711_v54, 2 }
 0x51e   :  { %12327 = vmatprep.subr.bf16.mxu0 %v13654_v40  ;;  %4605 = vmatprep.subr.bf16.mxu1 %v13657_v21  ;;  %v13729_v40 = vld [vmem:[%s17772_s3 + $0x168] ss:$20 sps:$4 sm:$0xff]   ;;  %v13732_v21 = vld [vmem:[%s17772_s3 + $0x558] ss:$20 sps:$4 sm:$0xff]  }
 0x521   :  { %12328 = vmatpush3.bf16.msra.mxu0 %v13658_v42  ;;  %4606 = vmatpush1.bf16.msra.mxu1 %v13655_v41  ;;  %v4871_v41 = vrot.slane %v15707_v1, 2  ;;  %v13737_v42 = vld [vmem:[%s17772_s3 + $0x194] ss:$20 sps:$4 sm:$0xff]  }
 0x522   :  { %12329 = vmatprep.subr.bf16.mxu0 %v13659_v43  ;;  %4607 = vmatprep.subr.bf16.mxu1 %v13662_v45  ;;  %v13740_v43 = vld [vmem:[%s17772_s3 + $0x584] ss:$20 sps:$4 sm:$0xff]  }
 0x523   :  { %v15984_v45 = vsel %vm990_vm4, %v4871_v41, %v4872_v36  ;;  %v13805_v36 = vld [vmem:[%s17772_s3 + $0x788] ss:$20 sps:$4 sm:$0xff]   ;;  %v13809_v41 = vld [vmem:[%s17772_s3 + $0xd8] ss:$20 sps:$4 sm:$0xff]  }
 0x525   :  { %12330 = vmatpush3.bf16.msra.mxu0 %v13663_v48  ;;  %4608 = vmatpush1.bf16.msra.mxu1 %v13660_v46  ;;  %v13735_v46 = vld [vmem:[%s17772_s3 + $0x190] ss:$20 sps:$4 sm:$0xff]   ;;  %v13738_v48 = vld [vmem:[%s17772_s3 + $0x580] ss:$20 sps:$4 sm:$0xff]  }
 0x526   :  { %12331 = vmatprep.subr.bf16.mxu0 %v13664_v50  ;;  %4609 = vmatprep.subr.bf16.mxu1 %v13667_v52  ;;  %v13743_v50 = vld [vmem:[%s17772_s3 + $0x1bc] ss:$20 sps:$4 sm:$0xff]   ;;  %v13746_v52 = vld [vmem:[%s17772_s3 + $0x5ac] ss:$20 sps:$4 sm:$0xff]  }
 0x529   :  { %12332 = vmatpush3.bf16.msra.mxu0 %v13668_v51  ;;  %4610 = vmatpush1.bf16.msra.mxu1 %v13665_v53  ;;  %v13741_v53 = vld [vmem:[%s17772_s3 + $0x1b8] ss:$20 sps:$4 sm:$0xff]   ;;  %v13744_v51 = vld [vmem:[%s17772_s3 + $0x5a8] ss:$20 sps:$4 sm:$0xff]  }
 0x52a   :  { %12333 = vmatprep.subr.bf16.mxu0 %v13669_v56  ;;  %4611 = vmatprep.subr.bf16.mxu1 %v13672_v58  ;;  %v13749_v56 = vld [vmem:[%s17772_s3 + $0x1e4] ss:$20 sps:$4 sm:$0xff]   ;;  %v13752_v58 = vld [vmem:[%s17772_s3 + $0x5d4] ss:$20 sps:$4 sm:$0xff]  }
 0x52d   :  { %12334 = vmatpush3.bf16.msra.mxu0 %v13673_v19  ;;  %4612 = vmatpush1.bf16.msra.mxu1 %v13670_v59  ;;  %v13747_v59 = vld [vmem:[%s17772_s3 + $0x1e0] ss:$20 sps:$4 sm:$0xff]   ;;  %v13750_v19 = vld [vmem:[%s17772_s3 + $0x5d0] ss:$20 sps:$4 sm:$0xff]  }
 0x52e   :  { %4613 = vmatprep.subr.bf16.mxu1 %v13676_v22  ;;  %12840 = vmatprep.subr.bf16.mxu0 %v14343_v37  ;;  %v13755_v22 = vld [vmem:[%s17772_s3 + $0x20c] ss:$20 sps:$4 sm:$0xff]  }
 0x530   :  { %4017 = vmatmul.mubr.bf16.vlgmr.msra.gmra.mrb[104].mxu0 %v15725_v35  ;;  %v13696_v35 = vld [vmem:[%s17772_s3 + $0x1e8] ss:$20 sps:$4 sm:$0xff]  }
 0x531   :  { %4614 = vmatpush1.bf16.msra.mxu1 %v13674_v60  ;;  %12841 = vmatpush3.bf16.msra.mxu0 %v13677_v62  ;;  %v13758_v60 = vld [vmem:[%s17772_s3 + $0x5fc] ss:$20 sps:$4 sm:$0xff]  }
 0x532   :  { %4615 = vmatprep.subr.bf16.mxu1 %v13680_v38  ;;  %12842 = vmatprep.mubr.msk.bf16.mxu0 %vm14344_vm10, %v14343_v37  ;;  %v13753_v62 = vld [vmem:[%s17772_s3 + $0x208] ss:$20 sps:$4 sm:$0xff]   ;;  %v13756_v38 = vld [vmem:[%s17772_s3 + $0x5f8] ss:$20 sps:$4 sm:$0xff]  }
 0x533   :  { %4511 = vmatprep.subr.bf16.mxu0 %v13683_v0  ;;  %v13761_v0 = vld [vmem:[%s17772_s3 + $0x234] ss:$20 sps:$4 sm:$0xff]  }
 0x535   :  { %4616 = vmatpush1.bf16.msra.mxu1 %v13678_v2  ;;  %v13764_v2 = vld [vmem:[%s17772_s3 + $0x624] ss:$20 sps:$4 sm:$0xff]  }
 0x536   :  { %4617 = vmatprep.subr.bf16.mxu1 %v13686_v12  ;;  %v13759_v12 = vld [vmem:[%s17772_s3 + $0x230] ss:$20 sps:$4 sm:$0xff]  }
 0x538   :  { %12843 = vmatmul.mubr.msk.bf16.vlgmr.msra.gmra.mrb[108].mxu0 %vm3808_vm9, %v15750_v24  ;;  %v13711_v24 = vld [vmem:[%s17772_s3 + $0xc8] ss:$20 sps:$4 sm:$0xff]  }
 0x539   :  { %4512 = vmatpush1.bf16.msra.mxu0 %v13681_v57  ;;  %4543 = vmatprep.mubr.bf16.mxu0 %v15707_v1  ;;  %v13762_v57 = vld [vmem:[%s17772_s3 + $0x620] ss:$20 sps:$4 sm:$0xff]  }
 0x53a   :  { %4618 = vmatpush1.bf16.msra.mxu1 %v13684_v55  ;;  %4513 = vmatprep.subr.bf16.mxu0 %v13689_v5  ;;  %v13767_v55 = vld [vmem:[%s17772_s3 + $0x25c] ss:$20 sps:$4 sm:$0xff]   ;;  %v13770_v5 = vld [vmem:[%s17772_s3 + $0x64c] ss:$20 sps:$4 sm:$0xff]  }
 0x53b   :  { %4619 = vmatprep.subr.bf16.mxu1 %v13692_v6  ;;  %v13765_v6 = vld [vmem:[%s17772_s3 + $0x258] ss:$20 sps:$4 sm:$0xff]  }
 0x53d   :  { %4514 = vmatpush1.bf16.msra.mxu0 %v13687_v8  ;;  %v13768_v8 = vld [vmem:[%s17772_s3 + $0x648] ss:$20 sps:$4 sm:$0xff]  }
 0x53e   :  { %4620 = vmatpush1.bf16.msra.mxu1 %v13690_v9  ;;  %4515 = vmatprep.subr.bf16.mxu0 %v13695_v10  ;;  %v13776_v9 = vld [vmem:[%s17772_s3 + $0x284] ss:$20 sps:$4 sm:$0xff]   ;;  %v13773_v10 = vld [vmem:[%s17772_s3 + $0x674] ss:$20 sps:$4 sm:$0xff]  }
 0x53f   :  { %4621 = vmatprep.subr.bf16.mxu1 %v13698_v11  ;;  %v13774_v11 = vld [vmem:[%s17772_s3 + $0x280] ss:$20 sps:$4 sm:$0xff]  }
 0x541   :  { %4516 = vmatpush1.bf16.msra.mxu0 %v13693_v33  ;;  %v13771_v33 = vld [vmem:[%s17772_s3 + $0x670] ss:$20 sps:$4 sm:$0xff]  }
 0x542   :  { %4622 = vmatpush1.bf16.msra.mxu1 %v13696_v35  ;;  %4517 = vmatprep.subr.bf16.mxu0 %v13701_v15  ;;  %v13783_v35 = vld [vmem:[%s17772_s3 + $0x150] ss:$20 sps:$4 sm:$0xff]  }
 0x543   :  { %4623 = vmatprep.subr.bf16.mxu1 %v13704_v13  ;;  %v13779_v15 = vld [vmem:[%s17772_s3 + $0x69c] ss:$20 sps:$4 sm:$0xff]   ;;  %v13777_v13 = vld [vmem:[%s17772_s3 + $0x698] ss:$20 sps:$4 sm:$0xff]  }
 0x545   :  { %4518 = vmatpush1.bf16.msra.mxu0 %v13699_v14  ;;  %v13782_v14 = vld [vmem:[%s17772_s3 + $0x6c4] ss:$20 sps:$4 sm:$0xff]  }
 0x546   :  { %4624 = vmatpush1.bf16.msra.mxu1 %v13702_v3  ;;  %4519 = vmatprep.subr.bf16.mxu0 %v13707_v49  ;;  %v13780_v3 = vld [vmem:[%s17772_s3 + $0x6c0] ss:$20 sps:$4 sm:$0xff]  }
 0x547   :  { %4625 = vmatprep.subr.bf16.mxu1 %v13710_v20  ;;  %v13787_v49 = vld [vmem:[%s17772_s3 + $0x6ec] ss:$20 sps:$4 sm:$0xff]   ;;  %v13784_v20 = vld [vmem:[%s17772_s3 + $0x10] ss:$20 sps:$4 sm:$0xff]  }
 0x549   :  { %4520 = vmatpush1.bf16.msra.mxu0 %v13705_v44  ;;  %v13785_v44 = vld [vmem:[%s17772_s3 + $0x6e8] ss:$20 sps:$4 sm:$0xff]  }
 0x54a   :  { %4626 = vmatpush1.bf16.msra.mxu1 %v13708_v17  ;;  %4521 = vmatprep.subr.bf16.mxu0 %v13713_v28  ;;  %v13788_v17 = vld [vmem:[%s17772_s3 + $0x178] ss:$20 sps:$4 sm:$0xff]   ;;  %v13792_v28 = vld [vmem:[%s17772_s3 + $0x714] ss:$20 sps:$4 sm:$0xff]  }
 0x54b   :  { %4627 = vmatprep.subr.bf16.mxu1 %v13716_v18  ;;  %v13789_v18 = vld [vmem:[%s17772_s3 + $0x38] ss:$20 sps:$4 sm:$0xff]  }
 0x54d   :  { %4522 = vmatpush1.bf16.msra.mxu0 %v13711_v24  ;;  %v13790_v24 = vld [vmem:[%s17772_s3 + $0x710] ss:$20 sps:$4 sm:$0xff]  }
 0x54e   :  { %4628 = vmatpush1.bf16.msra.mxu1 %v13714_v39  ;;  %4523 = vmatprep.subr.bf16.mxu0 %v13719_v25  ;;  %v13793_v39 = vld [vmem:[%s17772_s3 + $0x1a0] ss:$20 sps:$4 sm:$0xff]   ;;  %v13797_v25 = vld [vmem:[%s17772_s3 + $0x73c] ss:$20 sps:$4 sm:$0xff]  }
 0x54f   :  { %4640 = vmatprep.subr.bf16.mxu1 %v13728_v61  ;;  %v13794_v61 = vld [vmem:[%s17772_s3 + $0x60] ss:$20 sps:$4 sm:$0xff]  }
 0x551   :  { %4524 = vmatpush1.bf16.msra.mxu0 %v13717_v23  ;;  %4630 = vmatmul.mubr.bf16.vlgmr.msra.gmra.mrb[28].mxu1 %v15705_v63  ;;  %v13795_v23 = vld [vmem:[%s17772_s3 + $0x738] ss:$20 sps:$4 sm:$0xff]  }
 0x552   :  { %4525 = vmatprep.subr.bf16.mxu0 %v13722_v26  ;;  %4641 = vmatpush1.bf16.msra.mxu1 %v13726_v27  ;;  %v13798_v26 = vld [vmem:[%s17772_s3 + $0x1c8] ss:$20 sps:$4 sm:$0xff]   ;;  %v13802_v27 = vld [vmem:[%s17772_s3 + $0x764] ss:$20 sps:$4 sm:$0xff]  }
 0x553   :  { %4672 = vmatprep.mubr.bf16.mxu1 %v14342_v47  ;;  %5410 = vmatprep.subr.bf16.mxu1 %v13734_v29  ;;  %v13799_v29 = vld [vmem:[%s17772_s3 + $0x88] ss:$20 sps:$4 sm:$0xff]  }
 0x555   :  { %4526 = vmatpush1.bf16.msra.mxu0 %v13720_v30  ;;  %v13800_v30 = vld [vmem:[%s17772_s3 + $0x760] ss:$20 sps:$4 sm:$0xff]  }
 0x556   :  { %4527 = vmatprep.subr.bf16.mxu0 %v13725_v31  ;;  %v13803_v31 = vld [vmem:[%s17772_s3 + $0x1f0] ss:$20 sps:$4 sm:$0xff]  }
 0x559   :  { %4528 = vmatpush1.bf16.msra.mxu0 %v13723_v32  ;;  %v13807_v32 = vld [vmem:[%s17772_s3 + $0x78c] ss:$20 sps:$4 sm:$0xff]  }
 0x55a   :  { %4529 = vmatprep.subr.bf16.mxu0 %v13731_v34  ;;  %v13804_v34 = vld [vmem:[%s17772_s3 + $0xb0] ss:$20 sps:$4 sm:$0xff]  }
 0x55d   :  { %4530 = vmatpush1.bf16.msra.mxu0 %v13729_v40  ;;  %10916 = vmatmul.mubr.msk.bf16.vlgmr.msra.gmra.mrb[28].mxu1 %vm3808_vm9, %v15739_v7  ;;  %v13808_v40 = vld [vmem:[%s17772_s3 + $0x218] ss:$20 sps:$4 sm:$0xff]  }
 0x55e   :  { %5411 = vmatpush1.bf16.msra.mxu1 %v13732_v21  ;;  %5442 = vmatprep.mubr.bf16.mxu1 %v15984_v45  ;;  %v13812_v21 = vld [vmem:[%s17772_s3 + $0x7b4] ss:$20 sps:$4 sm:$0xff]  }
 0x55f   :  { %4531 = vmatprep.subr.bf16.mxu0 %v13737_v42  ;;  %5412 = vmatprep.subr.bf16.mxu1 %v13740_v43  ;;  %v13810_v42 = vld [vmem:[%s17772_s3 + $0x7b0] ss:$20 sps:$4 sm:$0xff]   ;;  %v13813_v43 = vld [vmem:[%s17772_s3 + $0x240] ss:$20 sps:$4 sm:$0xff]  }
 0x561   :  { %4532 = vmatpush1.bf16.msra.mxu0 %v13735_v46  ;;  %v13819_v46 = vld [vmem:[%s17772_s3 + $0x7dc] ss:$20 sps:$4 sm:$0xff]  }
 0x562   :  { %5413 = vmatpush1.bf16.msra.mxu1 %v13738_v48  ;;  %4533 = vmatprep.subr.bf16.mxu0 %v13743_v50  ;;  %v4869_v48 = vrot.slane %v15709_v4, 2  ;;  %v13814_v50 = vld [vmem:[%s17772_s3 + $0x100] ss:$20 sps:$4 sm:$0xff]  }
 0x563   :  { %5414 = vmatprep.subr.bf16.mxu1 %v13746_v52  ;;  %v4868_v52 = vrot.slane %v15705_v63, 2 }
 0x565   :  { %4534 = vmatpush1.bf16.msra.mxu0 %v13741_v53  ;;  %v13815_v53 = vld [vmem:[%s17772_s3 + $0x268] ss:$20 sps:$4 sm:$0xff]  }
 0x566   :  { %5415 = vmatpush1.bf16.msra.mxu1 %v13744_v51  ;;  %4535 = vmatprep.subr.bf16.mxu0 %v13749_v56  ;;  %v13817_v51 = vld [vmem:[%s17772_s3 + $0x7d8] ss:$20 sps:$4 sm:$0xff]   ;;  %v13821_v56 = vld [vmem:[%s17772_s3 + $0x6a0] ss:$20 sps:$4 sm:$0xff]  }
 0x567   :  { %5416 = vmatprep.subr.bf16.mxu1 %v13752_v58  ;;  %v16175_v58 = vsel %vm990_vm4, %v4868_v52, %v4869_v48  ;;  %v13876_v48 = vld [vmem:[%s17772_s3 + $0x6e0] ss:$20 sps:$4 sm:$0xff]  }
 0x568   :  { %v13884_v52 = vld [vmem:[%s17772_s3 + $0x70c] ss:$20 sps:$4 sm:$0xff]  }
 0x569   :  { %4536 = vmatpush1.bf16.msra.mxu0 %v13747_v59  ;;  %v13816_v59 = vld [vmem:[%s17772_s3 + $0x128] ss:$20 sps:$4 sm:$0xff]  }
 0x56a   :  { %5417 = vmatpush1.bf16.msra.mxu1 %v13750_v19  ;;  %4537 = vmatprep.subr.bf16.mxu0 %v13755_v22  ;;  %v13820_v19 = vld [vmem:[%s17772_s3 + $0x290] ss:$20 sps:$4 sm:$0xff]   ;;  %v13825_v22 = vld [vmem:[%s17772_s3 + $0x554] ss:$20 sps:$4 sm:$0xff]  }
 0x56b   :  { %5418 = vmatprep.subr.bf16.mxu1 %v13758_v60  ;;  %v4875_v60 = vrot.slane %v15737_v16, 2 }
 0x56d   :  { %4538 = vmatpush1.bf16.msra.mxu0 %v13753_v62  ;;  %v4874_v62 = vrot.slane %v15739_v7, 2 }
 0x56e   :  { %5419 = vmatpush1.bf16.msra.mxu1 %v13756_v38  ;;  %4539 = vmatprep.subr.bf16.mxu0 %v13761_v0  ;;  %v13822_v38 = vld [vmem:[%s17772_s3 + $0x560] ss:$20 sps:$4 sm:$0xff]   ;;  %v13826_v0 = vld [vmem:[%s17772_s3 + $0x6c8] ss:$20 sps:$4 sm:$0xff]  }
 0x56f   :  { %5420 = vmatprep.subr.bf16.mxu1 %v13764_v2  ;;  %v16201_v2 = vsel %vm990_vm4, %v4874_v62, %v4875_v60  ;;  %v13891_v60 = vld [vmem:[%s17772_s3 + $0x8c8] ss:$20 sps:$4 sm:$0xff]  }
 0x570   :  { %v13896_v62 = vld [vmem:[%s17772_s3 + $0x75c] ss:$20 sps:$4 sm:$0xff]  }
 0x571   :  { %4540 = vmatpush1.bf16.msra.mxu0 %v13759_v12  ;;  %v13823_v12 = vld [vmem:[%s17772_s3 + $0x550] ss:$20 sps:$4 sm:$0xff]  }
 0x572   :  { %5421 = vmatpush1.bf16.msra.mxu1 %v13762_v57  ;;  %4541 = vmatprep.subr.bf16.mxu0 %v13767_v55  ;;  %v13827_v57 = vld [vmem:[%s17772_s3 + $0x588] ss:$20 sps:$4 sm:$0xff]  }
 0x573   :  { %5422 = vmatprep.subr.bf16.mxu1 %v13770_v5  ;;  %v13830_v55 = vld [vmem:[%s17772_s3 + $0x57c] ss:$20 sps:$4 sm:$0xff]  }
 0x574   :  { %v13831_v5 = vld [vmem:[%s17772_s3 + $0x6f0] ss:$20 sps:$4 sm:$0xff]  }
 0x575   :  { %4542 = vmatpush1.bf16.msra.mxu0 %v13765_v6  ;;  %v13828_v6 = vld [vmem:[%s17772_s3 + $0x578] ss:$20 sps:$4 sm:$0xff]  }
 0x576   :  { %5423 = vmatpush1.bf16.msra.mxu1 %v13768_v8  ;;  %4554 = vmatprep.subr.bf16.mxu0 %v13776_v9  ;;  %v13832_v8 = vld [vmem:[%s17772_s3 + $0x5b0] ss:$20 sps:$4 sm:$0xff]  }
 0x577   :  { %5424 = vmatprep.subr.bf16.mxu1 %v13773_v10  ;;  %v13835_v9 = vld [vmem:[%s17772_s3 + $0x5a4] ss:$20 sps:$4 sm:$0xff]  }
 0x578   :  { %4544 = vmatmul.mubr.bf16.vlgmr.msra.gmra.mrb[100].mxu0 %v15705_v63  ;;  %v13836_v10 = vld [vmem:[%s17772_s3 + $0x718] ss:$20 sps:$4 sm:$0xff]  }
 0x579   :  { %4555 = vmatpush1.bf16.msra.mxu0 %v13774_v11  ;;  %4586 = vmatprep.mubr.bf16.mxu0 %v14342_v47  ;;  %v13837_v11 = vld [vmem:[%s17772_s3 + $0x5d8] ss:$20 sps:$4 sm:$0xff]  }
 0x57a   :  { %5425 = vmatpush1.bf16.msra.mxu1 %v13771_v33  ;;  %12343 = vmatprep.subr.bf16.mxu0 %v13783_v35  ;;  %v13840_v33 = vld [vmem:[%s17772_s3 + $0x5cc] ss:$20 sps:$4 sm:$0xff]  }
 0x57b   :  { %5426 = vmatprep.subr.bf16.mxu1 %v13779_v15  ;;  %v13841_v35 = vld [vmem:[%s17772_s3 + $0x740] ss:$20 sps:$4 sm:$0xff]   ;;  %v13838_v15 = vld [vmem:[%s17772_s3 + $0x5c8] ss:$20 sps:$4 sm:$0xff]  }
 0x57e   :  { %5427 = vmatpush1.bf16.msra.mxu1 %v13777_v13  ;;  %v13842_v13 = vld [vmem:[%s17772_s3 + $0x600] ss:$20 sps:$4 sm:$0xff]  }
 0x57f   :  { %5428 = vmatprep.subr.bf16.mxu1 %v13782_v14  ;;  %v13845_v14 = vld [vmem:[%s17772_s3 + $0x5f4] ss:$20 sps:$4 sm:$0xff]  }
 0x582   :  { %5429 = vmatpush1.bf16.msra.mxu1 %v13780_v3  ;;  %v13846_v3 = vld [vmem:[%s17772_s3 + $0x768] ss:$20 sps:$4 sm:$0xff]  }
 0x583   :  { %5430 = vmatprep.subr.bf16.mxu1 %v13787_v49  ;;  %v13843_v49 = vld [vmem:[%s17772_s3 + $0x5f0] ss:$20 sps:$4 sm:$0xff]  }
 0x584   :  { %10915 = vmatmul.mubr.msk.bf16.vlgmr.msra.gmra.mrb[100].mxu0 %vm3808_vm9, %v15739_v7 }
 0x585   :  { %12344 = vmatpush3.bf16.msra.mxu0 %v13784_v20  ;;  %4715 = vmatprep.mubr.bf16.mxu0 %v15707_v1  ;;  %v13847_v20 = vld [vmem:[%s17772_s3 + $0x628] ss:$20 sps:$4 sm:$0xff]  }
 0x586   :  { %5431 = vmatpush1.bf16.msra.mxu1 %v13785_v44  ;;  %12345 = vmatprep.subr.bf16.mxu0 %v13788_v17  ;;  %v13850_v44 = vld [vmem:[%s17772_s3 + $0x61c] ss:$20 sps:$4 sm:$0xff]  }
 0x587   :  { %5432 = vmatprep.subr.bf16.mxu1 %v13792_v28  ;;  %v13851_v17 = vld [vmem:[%s17772_s3 + $0x790] ss:$20 sps:$4 sm:$0xff]   ;;  %v13848_v28 = vld [vmem:[%s17772_s3 + $0x618] ss:$20 sps:$4 sm:$0xff]  }
 0x589   :  { %12346 = vmatpush3.bf16.msra.mxu0 %v13789_v18  ;;  %v13852_v18 = vld [vmem:[%s17772_s3 + $0x650] ss:$20 sps:$4 sm:$0xff]  }
 0x58a   :  { %5433 = vmatpush1.bf16.msra.mxu1 %v13790_v24  ;;  %12347 = vmatprep.subr.bf16.mxu0 %v13793_v39  ;;  %v13855_v24 = vld [vmem:[%s17772_s3 + $0x644] ss:$20 sps:$4 sm:$0xff]  }
 0x58b   :  { %5434 = vmatprep.subr.bf16.mxu1 %v13797_v25  ;;  %v13856_v39 = vld [vmem:[%s17772_s3 + $0x7b8] ss:$20 sps:$4 sm:$0xff]   ;;  %v13853_v25 = vld [vmem:[%s17772_s3 + $0x640] ss:$20 sps:$4 sm:$0xff]  }
 0x58d   :  { %12348 = vmatpush3.bf16.msra.mxu0 %v13794_v61  ;;  %v13857_v61 = vld [vmem:[%s17772_s3 + $0x678] ss:$20 sps:$4 sm:$0xff]  }
 0x58e   :  { %5435 = vmatpush1.bf16.msra.mxu1 %v13795_v23  ;;  %12349 = vmatprep.subr.bf16.mxu0 %v13798_v26  ;;  %v13860_v23 = vld [vmem:[%s17772_s3 + $0x66c] ss:$20 sps:$4 sm:$0xff]   ;;  %v13863_v26 = vld [vmem:[%s17772_s3 + $0x804] ss:$20 sps:$4 sm:$0xff]  }
 0x58f   :  { %5436 = vmatprep.subr.bf16.mxu1 %v13802_v27  ;;  %v5695_v27 = vrot.slane %v15711_v54, 3  ;;  %v13869_v54 = vld [vmem:[%s17772_s3 + $0x82c] ss:$20 sps:$4 sm:$0xff]  }
 0x591   :  { %12350 = vmatpush3.bf16.msra.mxu0 %v13799_v29  ;;  %v13858_v29 = vld [vmem:[%s17772_s3 + $0x668] ss:$20 sps:$4 sm:$0xff]  }
 0x592   :  { %5437 = vmatpush1.bf16.msra.mxu1 %v13800_v30  ;;  %12351 = vmatprep.subr.bf16.mxu0 %v13803_v31  ;;  %v13861_v30 = vld [vmem:[%s17772_s3 + $0x800] ss:$20 sps:$4 sm:$0xff]   ;;  %v5694_v31 = vrot.slane %v15707_v1, 3  ;;  %v13867_v1 = vld [vmem:[%s17772_s3 + $0x828] ss:$20 sps:$4 sm:$0xff]  }
 0x593   :  { %5438 = vmatprep.subr.bf16.mxu1 %v13807_v32  ;;  %v13866_v32 = vld [vmem:[%s17772_s3 + $0x694] ss:$20 sps:$4 sm:$0xff]  }
 0x595   :  { %12352 = vmatpush3.bf16.msra.mxu0 %v13804_v34  ;;  %v16309_v34 = vsel %vm2066_vm7, %v5694_v31, %v5695_v27  ;;  %v13940_v27 = vld [vmem:[%s17772_s3 + $0xa58] ss:$20 sps:$4 sm:$0xff]   ;;  %v5692_v31 = vrot.slane %v15709_v4, 3  ;;  %v13952_v4 = vld [vmem:[%s17772_s3 + $0xa80] ss:$20 sps:$4 sm:$0xff]  }
 0x596   :  { %5439 = vmatpush1.bf16.msra.mxu1 %v13805_v36  ;;  %12353 = vmatprep.subr.bf16.mxu0 %v13808_v40  ;;  %v13864_v36 = vld [vmem:[%s17772_s3 + $0x690] ss:$20 sps:$4 sm:$0xff]  }
 0x597   :  { %5440 = vmatprep.subr.bf16.mxu1 %v13812_v21  ;;  %v13872_v40 = vld [vmem:[%s17772_s3 + $0x6bc] ss:$20 sps:$4 sm:$0xff]   ;;  %v13875_v21 = vld [vmem:[%s17772_s3 + $0x854] ss:$20 sps:$4 sm:$0xff]  }
 0x599   :  { %12354 = vmatpush3.bf16.msra.mxu0 %v13809_v41  ;;  %v13870_v41 = vld [vmem:[%s17772_s3 + $0x6b8] ss:$20 sps:$4 sm:$0xff]  }
 0x59a   :  { %5441 = vmatpush1.bf16.msra.mxu1 %v13810_v42  ;;  %12355 = vmatprep.subr.bf16.mxu0 %v13813_v43  ;;  %v13873_v42 = vld [vmem:[%s17772_s3 + $0x850] ss:$20 sps:$4 sm:$0xff]  }
 0x59b   :  { %5453 = vmatprep.subr.bf16.mxu1 %v13819_v46  ;;  %v13878_v43 = vld [vmem:[%s17772_s3 + $0x6e4] ss:$20 sps:$4 sm:$0xff]   ;;  %v13881_v46 = vld [vmem:[%s17772_s3 + $0x87c] ss:$20 sps:$4 sm:$0xff]  }
 0x59d   :  { %12356 = vmatpush3.bf16.msra.mxu0 %v13814_v50  ;;  %5443 = vmatmul.mubr.bf16.vlgmr.msra.gmra.mrb[28].mxu1 %v16175_v58  ;;  %v13879_v50 = vld [vmem:[%s17772_s3 + $0x878] ss:$20 sps:$4 sm:$0xff]  }
 0x59e   :  { %12357 = vmatprep.subr.bf16.mxu0 %v13815_v53  ;;  %5454 = vmatpush1.bf16.msra.mxu1 %v13817_v51  ;;  %v13887_v53 = vld [vmem:[%s17772_s3 + $0x8a4] ss:$20 sps:$4 sm:$0xff]   ;;  %v13882_v51 = vld [vmem:[%s17772_s3 + $0x708] ss:$20 sps:$4 sm:$0xff]  }
 0x59f   :  { %5485 = vmatprep.mubr.bf16.mxu1 %v14342_v47  ;;  %12367 = vmatprep.subr.bf16.mxu1 %v13821_v56  ;;  %v13885_v56 = vld [vmem:[%s17772_s3 + $0x8a0] ss:$20 sps:$4 sm:$0xff]  }
 0x5a1   :  { %12358 = vmatpush3.bf16.msra.mxu0 %v13816_v59  ;;  %v13890_v59 = vld [vmem:[%s17772_s3 + $0x734] ss:$20 sps:$4 sm:$0xff]  }
 0x5a2   :  { %12846 = vmatprep.subr.bf16.mxu0 %v14343_v37 }
 0x5a4   :  { %4716 = vmatmul.mubr.bf16.vlgmr.msra.gmra.mrb[112].mxu0 %v15705_v63 }
 0x5a5   :  { %12847 = vmatpush3.bf16.msra.mxu0 %v13820_v19  ;;  %12848 = vmatprep.mubr.msk.bf16.mxu0 %vm14344_vm10, %v14343_v37  ;;  %v13893_v19 = vld [vmem:[%s17772_s3 + $0x8cc] ss:$20 sps:$4 sm:$0xff]  }
 0x5a6   :  { %5324 = vmatprep.subr.bf16.mxu0 %v13825_v22  ;;  %v13888_v22 = vld [vmem:[%s17772_s3 + $0x730] ss:$20 sps:$4 sm:$0xff]  }
 0x5a9   :  { %11106 = vmatmul.mubr.msk.bf16.vlgmr.msra.gmra.mrb[28].mxu1 %vm3808_vm9, %v16201_v2 }
 0x5aa   :  { %12368 = vmatpush3.bf16.msra.mxu1 %v13822_v38  ;;  %5528 = vmatprep.mubr.bf16.mxu1 %v15984_v45  ;;  %v13899_v38 = vld [vmem:[%s17772_s3 + $0x8f4] ss:$20 sps:$4 sm:$0xff]  }
 0x5ab   :  { %12369 = vmatprep.subr.bf16.mxu1 %v13826_v0  ;;  %v13894_v0 = vld [vmem:[%s17772_s3 + $0x758] ss:$20 sps:$4 sm:$0xff]  }
 0x5ac   :  { %12849 = vmatmul.mubr.msk.bf16.vlgmr.msra.gmra.mrb[108].mxu0 %vm3808_vm9, %v15739_v7 }
 0x5ad   :  { %5325 = vmatpush1.bf16.msra.mxu0 %v13823_v12  ;;  %5356 = vmatprep.mubr.bf16.mxu0 %v15984_v45  ;;  %v13833_v45 = vld [vmem:[%s17772_s3 + $0x5a0] ss:$20 sps:$4 sm:$0xff]   ;;  %v13897_v12 = vld [vmem:[%s17772_s3 + $0x8f0] ss:$20 sps:$4 sm:$0xff]  }
 0x5ae   :  { %12370 = vmatpush3.bf16.msra.mxu1 %v13827_v57  ;;  %5326 = vmatprep.subr.bf16.mxu0 %v13830_v55  ;;  %v13902_v57 = vld [vmem:[%s17772_s3 + $0x784] ss:$20 sps:$4 sm:$0xff]   ;;  %v13905_v55 = vld [vmem:[%s17772_s3 + $0x91c] ss:$20 sps:$4 sm:$0xff]  }
 0x5af   :  { %12371 = vmatprep.subr.bf16.mxu1 %v13831_v5  ;;  %v13900_v5 = vld [vmem:[%s17772_s3 + $0x780] ss:$20 sps:$4 sm:$0xff]  }
 0x5b1   :  { %5327 = vmatpush1.bf16.msra.mxu0 %v13828_v6  ;;  %v13903_v6 = vld [vmem:[%s17772_s3 + $0x918] ss:$20 sps:$4 sm:$0xff]  }
 0x5b2   :  { %12372 = vmatpush3.bf16.msra.mxu1 %v13832_v8  ;;  %5328 = vmatprep.subr.bf16.mxu0 %v13835_v9  ;;  %v13908_v8 = vld [vmem:[%s17772_s3 + $0x7ac] ss:$20 sps:$4 sm:$0xff]   ;;  %v13911_v9 = vld [vmem:[%s17772_s3 + $0x944] ss:$20 sps:$4 sm:$0xff]  }
 0x5b3   :  { %12373 = vmatprep.subr.bf16.mxu1 %v13836_v10  ;;  %v13906_v10 = vld [vmem:[%s17772_s3 + $0x7a8] ss:$20 sps:$4 sm:$0xff]  }
 0x5b5   :  { %5329 = vmatpush1.bf16.msra.mxu0 %v13833_v45  ;;  %v13909_v45 = vld [vmem:[%s17772_s3 + $0x940] ss:$20 sps:$4 sm:$0xff]  }
 0x5b6   :  { %12374 = vmatpush3.bf16.msra.mxu1 %v13837_v11  ;;  %5330 = vmatprep.subr.bf16.mxu0 %v13840_v33  ;;  %v13917_v11 = vld [vmem:[%s17772_s3 + $0x7d4] ss:$20 sps:$4 sm:$0xff]   ;;  %v13914_v33 = vld [vmem:[%s17772_s3 + $0x96c] ss:$20 sps:$4 sm:$0xff]  }
 0x5b7   :  { %12375 = vmatprep.subr.bf16.mxu1 %v13841_v35  ;;  %v13915_v35 = vld [vmem:[%s17772_s3 + $0x7d0] ss:$20 sps:$4 sm:$0xff]  }
 0x5b9   :  { %5331 = vmatpush1.bf16.msra.mxu0 %v13838_v15  ;;  %v13912_v15 = vld [vmem:[%s17772_s3 + $0x968] ss:$20 sps:$4 sm:$0xff]  }
 0x5ba   :  { %12376 = vmatpush3.bf16.msra.mxu1 %v13842_v13  ;;  %5332 = vmatprep.subr.bf16.mxu0 %v13845_v14  ;;  %v13920_v13 = vld [vmem:[%s17772_s3 + $0x994] ss:$20 sps:$4 sm:$0xff]   ;;  %v13918_v14 = vld [vmem:[%s17772_s3 + $0x990] ss:$20 sps:$4 sm:$0xff]  }
 0x5bb   :  { %12377 = vmatprep.subr.bf16.mxu1 %v13846_v3  ;;  %v13923_v3 = vld [vmem:[%s17772_s3 + $0x9bc] ss:$20 sps:$4 sm:$0xff]  }
 0x5bd   :  { %5333 = vmatpush1.bf16.msra.mxu0 %v13843_v49  ;;  %v13926_v49 = vld [vmem:[%s17772_s3 + $0x9e4] ss:$20 sps:$4 sm:$0xff]  }
 0x5be   :  { %12378 = vmatpush3.bf16.msra.mxu1 %v13847_v20  ;;  %5334 = vmatprep.subr.bf16.mxu0 %v13850_v44  ;;  %v13927_v20 = vld [vmem:[%s17772_s3 + $0x7e0] ss:$20 sps:$4 sm:$0xff]  }
 0x5bf   :  { %12379 = vmatprep.subr.bf16.mxu1 %v13851_v17  ;;  %v13924_v44 = vld [vmem:[%s17772_s3 + $0x9e0] ss:$20 sps:$4 sm:$0xff]   ;;  %v13933_v17 = vld [vmem:[%s17772_s3 + $0x7fc] ss:$20 sps:$4 sm:$0xff]  }
 0x5c1   :  { %5335 = vmatpush1.bf16.msra.mxu0 %v13848_v28  ;;  %v13930_v28 = vld [vmem:[%s17772_s3 + $0xa0c] ss:$20 sps:$4 sm:$0xff]  }
 0x5c2   :  { %12380 = vmatpush3.bf16.msra.mxu1 %v13852_v18  ;;  %5336 = vmatprep.subr.bf16.mxu0 %v13855_v24  ;;  %v13928_v18 = vld [vmem:[%s17772_s3 + $0xa08] ss:$20 sps:$4 sm:$0xff]  }
 0x5c3   :  { %12381 = vmatprep.subr.bf16.mxu1 %v13856_v39  ;;  %v13936_v24 = vld [vmem:[%s17772_s3 + $0xa34] ss:$20 sps:$4 sm:$0xff]   ;;  %v13931_v39 = vld [vmem:[%s17772_s3 + $0x7f8] ss:$20 sps:$4 sm:$0xff]  }
 0x5c5   :  { %5337 = vmatpush1.bf16.msra.mxu0 %v13853_v25  ;;  %v13934_v25 = vld [vmem:[%s17772_s3 + $0xa30] ss:$20 sps:$4 sm:$0xff]  }
 0x5c6   :  { %12382 = vmatpush3.bf16.msra.mxu1 %v13857_v61  ;;  %5338 = vmatprep.subr.bf16.mxu0 %v13860_v23  ;;  %v13939_v61 = vld [vmem:[%s17772_s3 + $0x824] ss:$20 sps:$4 sm:$0xff]   ;;  %v13942_v23 = vld [vmem:[%s17772_s3 + $0xa5c] ss:$20 sps:$4 sm:$0xff]  }
 0x5c7   :  { %6233 = vmatprep.subr.bf16.mxu1 %v13863_v26  ;;  %v13937_v26 = vld [vmem:[%s17772_s3 + $0x820] ss:$20 sps:$4 sm:$0xff]  }
 0x5c9   :  { %5339 = vmatpush1.bf16.msra.mxu0 %v13858_v29  ;;  %5529 = vmatmul.mubr.bf16.vlgmr.msra.gmra.mrb[32].mxu1 %v16175_v58  ;;  %v13945_v29 = vld [vmem:[%s17772_s3 + $0x84c] ss:$20 sps:$4 sm:$0xff]  }
 0x5ca   :  { %6234 = vmatpush1.bf16.msra.mxu1 %v13861_v30  ;;  %6265 = vmatprep.mubr.bf16.mxu1 %v16309_v34 }
 0x5cb   :  { %5340 = vmatprep.subr.bf16.mxu0 %v13866_v32  ;;  %6235 = vmatprep.subr.bf16.mxu1 %v13869_v54 }
 0x5cd   :  { %5341 = vmatpush1.bf16.msra.mxu0 %v13864_v36  ;;  %v13943_v36 = vld [vmem:[%s17772_s3 + $0x848] ss:$20 sps:$4 sm:$0xff]  }
 0x5ce   :  { %6236 = vmatpush1.bf16.msra.mxu1 %v13867_v1  ;;  %5342 = vmatprep.subr.bf16.mxu0 %v13872_v40 }
 0x5cf   :  { %6237 = vmatprep.subr.bf16.mxu1 %v13875_v21  ;;  %v5691_v21 = vrot.slane %v15705_v63, 3  ;;  %v13946_v63 = vld [vmem:[%s17772_s3 + $0x870] ss:$20 sps:$4 sm:$0xff]  }
 0x5d1   :  { %5343 = vmatpush1.bf16.msra.mxu0 %v13870_v41  ;;  %v13948_v41 = vld [vmem:[%s17772_s3 + $0x874] ss:$20 sps:$4 sm:$0xff]  }
 0x5d2   :  { %6238 = vmatpush1.bf16.msra.mxu1 %v13873_v42  ;;  %5344 = vmatprep.subr.bf16.mxu0 %v13878_v43  ;;  %v16497_v43 = vsel %vm2066_vm7, %v5691_v21, %v5692_v31 }
 0x5d3   :  { %6239 = vmatprep.subr.bf16.mxu1 %v13881_v46  ;;  %v13951_v46 = vld [vmem:[%s17772_s3 + $0x89c] ss:$20 sps:$4 sm:$0xff]  }
 0x5d5   :  { %5345 = vmatpush1.bf16.msra.mxu0 %v13876_v48  ;;  %v13949_v48 = vld [vmem:[%s17772_s3 + $0x898] ss:$20 sps:$4 sm:$0xff]  }
 0x5d6   :  { %6240 = vmatpush1.bf16.msra.mxu1 %v13879_v50  ;;  %5346 = vmatprep.subr.bf16.mxu0 %v13884_v52  ;;  %v13957_v50 = vld [vmem:[%s17772_s3 + $0x8c4] ss:$20 sps:$4 sm:$0xff]   ;;  %v5698_v52 = vrot.slane %v15737_v16, 3  ;;  %v13958_v16 = vld [vmem:[%s17772_s3 + $0x8e8] ss:$20 sps:$4 sm:$0xff]  }
 0x5d7   :  { %6241 = vmatprep.subr.bf16.mxu1 %v13887_v53  ;;  %v5697_v53 = vrot.slane %v15739_v7, 3  ;;  %v13963_v7 = vld [vmem:[%s17772_s3 + $0x914] ss:$20 sps:$4 sm:$0xff]  }
 0x5d9   :  { %5347 = vmatpush1.bf16.msra.mxu0 %v13882_v51  ;;  %v13955_v51 = vld [vmem:[%s17772_s3 + $0x8c0] ss:$20 sps:$4 sm:$0xff]  }
 0x5da   :  { %6242 = vmatpush1.bf16.msra.mxu1 %v13885_v56  ;;  %5348 = vmatprep.subr.bf16.mxu0 %v13890_v59  ;;  %v13960_v56 = vld [vmem:[%s17772_s3 + $0x8ec] ss:$20 sps:$4 sm:$0xff]   ;;  %v16522_v59 = vsel %vm2066_vm7, %v5697_v53, %v5698_v52 }
 0x5db   :  { %6243 = vmatprep.subr.bf16.mxu1 %v13893_v19  ;;  %v13961_v19 = vld [vmem:[%s17772_s3 + $0x910] ss:$20 sps:$4 sm:$0xff]   ;;  %v14020_v52 = vld [vmem:[%s17775_s6 + $0x21c] sm:$0xff]  }
 0x5dc   :  { %v14036_v53 = vld [vmem:[%s17775_s6 + $0x16c] sm:$0xff]  }
 0x5dd   :  { %5349 = vmatpush1.bf16.msra.mxu0 %v13888_v22  ;;  %v13966_v22 = vld [vmem:[%s17772_s3 + $0x93c] ss:$20 sps:$4 sm:$0xff]  }
 0x5de   :  { %6244 = vmatpush1.bf16.msra.mxu1 %v13891_v60  ;;  %5350 = vmatprep.subr.bf16.mxu0 %v13896_v62  ;;  %v13964_v60 = vld [vmem:[%s17772_s3 + $0x938] ss:$20 sps:$4 sm:$0xff]  }
 0x5df   :  { %6245 = vmatprep.subr.bf16.mxu1 %v13899_v38  ;;  %v13969_v62 = vld [vmem:[%s17772_s3 + $0x964] ss:$20 sps:$4 sm:$0xff]   ;;  %v13967_v38 = vld [vmem:[%s17772_s3 + $0x960] ss:$20 sps:$4 sm:$0xff]  }
 0x5e1   :  { %5351 = vmatpush1.bf16.msra.mxu0 %v13894_v0  ;;  %v13972_v0 = vld [vmem:[%s17772_s3 + $0x98c] ss:$20 sps:$4 sm:$0xff]  }
 0x5e2   :  { %6246 = vmatpush1.bf16.msra.mxu1 %v13897_v12  ;;  %5352 = vmatprep.subr.bf16.mxu0 %v13902_v57  ;;  %v13970_v12 = vld [vmem:[%s17772_s3 + $0x988] ss:$20 sps:$4 sm:$0xff]  }
 0x5e3   :  { %6247 = vmatprep.subr.bf16.mxu1 %v13905_v55  ;;  %v13975_v57 = vld [vmem:[%s17772_s3 + $0x9b4] ss:$20 sps:$4 sm:$0xff]   ;;  %v13973_v55 = vld [vmem:[%s17772_s3 + $0x9b0] ss:$20 sps:$4 sm:$0xff]  }
 0x5e5   :  { %5353 = vmatpush1.bf16.msra.mxu0 %v13900_v5  ;;  %v13978_v5 = vld [vmem:[%s17772_s3 + $0x9dc] ss:$20 sps:$4 sm:$0xff]  }
 0x5e6   :  { %6248 = vmatpush1.bf16.msra.mxu1 %v13903_v6  ;;  %5354 = vmatprep.subr.bf16.mxu0 %v13908_v8  ;;  %v13976_v6 = vld [vmem:[%s17772_s3 + $0x9d8] ss:$20 sps:$4 sm:$0xff]  }
 0x5e7   :  { %6249 = vmatprep.subr.bf16.mxu1 %v13911_v9  ;;  %v13981_v8 = vld [vmem:[%s17772_s3 + $0xa04] ss:$20 sps:$4 sm:$0xff]   ;;  %v13979_v9 = vld [vmem:[%s17772_s3 + $0xa00] ss:$20 sps:$4 sm:$0xff]  }
 0x5e9   :  { %5355 = vmatpush1.bf16.msra.mxu0 %v13906_v10  ;;  %v13984_v10 = vld [vmem:[%s17772_s3 + $0xa2c] ss:$20 sps:$4 sm:$0xff]  }
 0x5ea   :  { %6250 = vmatpush1.bf16.msra.mxu1 %v13909_v45  ;;  %5367 = vmatprep.subr.bf16.mxu0 %v13917_v11  ;;  %v13982_v45 = vld [vmem:[%s17772_s3 + $0xa28] ss:$20 sps:$4 sm:$0xff]  }
 0x5eb   :  { %6251 = vmatprep.subr.bf16.mxu1 %v13914_v33  ;;  %v13987_v11 = vld [vmem:[%s17772_s3 + $0xa54] ss:$20 sps:$4 sm:$0xff]   ;;  %v13985_v33 = vld [vmem:[%s17772_s3 + $0xa50] ss:$20 sps:$4 sm:$0xff]  }
 0x5ec   :  { %5357 = vmatmul.mubr.bf16.vlgmr.msra.gmra.mrb[100].mxu0 %v16175_v58  ;;  %v13921_v58 = vld [vmem:[%s17772_s3 + $0x9b8] ss:$20 sps:$4 sm:$0xff]  }
 0x5ed   :  { %5368 = vmatpush1.bf16.msra.mxu0 %v13915_v35  ;;  %5399 = vmatprep.mubr.bf16.mxu0 %v14342_v47  ;;  %v13990_v35 = vld [vmem:[%s17772_s3 + $0xa7c] ss:$20 sps:$4 sm:$0xff]  }
 0x5ee   :  { %6252 = vmatpush1.bf16.msra.mxu1 %v13912_v15  ;;  %12852 = vmatprep.subr.bf16.mxu0 %v14343_v37  ;;  %v13988_v15 = vld [vmem:[%s17772_s3 + $0xa78] ss:$20 sps:$4 sm:$0xff]  }
 0x5ef   :  { %6253 = vmatprep.subr.bf16.mxu1 %v13920_v13  ;;  %v13991_v13 = vld [vmem:[%s17772_s3 + $0x948] ss:$20 sps:$4 sm:$0xff]  }
 0x5f2   :  { %6254 = vmatpush1.bf16.msra.mxu1 %v13918_v14  ;;  %v13992_v14 = vld [vmem:[%s17772_s3 + $0x808] ss:$20 sps:$4 sm:$0xff]  }
 0x5f3   :  { %6255 = vmatprep.subr.bf16.mxu1 %v13923_v3  ;;  %v13993_v3 = vld [vmem:[%s17772_s3 + $0x970] ss:$20 sps:$4 sm:$0xff]  }
 0x5f6   :  { %6256 = vmatpush1.bf16.msra.mxu1 %v13921_v58  ;;  %v13994_v58 = vld [vmem:[%s17772_s3 + $0x830] ss:$20 sps:$4 sm:$0xff]  }
 0x5f7   :  { %6257 = vmatprep.subr.bf16.mxu1 %v13926_v49  ;;  %v13996_v49 = vld [vmem:[%s17772_s3 + $0x858] ss:$20 sps:$4 sm:$0xff]  }
 0x5f8   :  { %11105 = vmatmul.mubr.msk.bf16.vlgmr.msra.gmra.mrb[100].mxu0 %vm3808_vm9, %v16201_v2 }
 0x5f9   :  { %12853 = vmatpush3.bf16.msra.mxu0 %v13927_v20  ;;  %12854 = vmatprep.mubr.msk.bf16.mxu0 %vm14344_vm10, %v14343_v37  ;;  %v13997_v20 = vld [vmem:[%s17772_s3 + $0x9c0] ss:$20 sps:$4 sm:$0xff]  }
 0x5fa   :  { %6258 = vmatpush1.bf16.msra.mxu1 %v13924_v44  ;;  %6147 = vmatprep.subr.bf16.mxu0 %v13933_v17  ;;  %v13999_v44 = vld [vmem:[%s17772_s3 + $0x9e8] ss:$20 sps:$4 sm:$0xff]  }
 0x5fb   :  { %6259 = vmatprep.subr.bf16.mxu1 %v13930_v28  ;;  %v14000_v17 = vld [vmem:[%s17772_s3 + $0x8a8] ss:$20 sps:$4 sm:$0xff]   ;;  %v14001_v28 = vld [vmem:[%s17772_s3 + $0xa10] ss:$20 sps:$4 sm:$0xff]  }
 0x5fe   :  { %6260 = vmatpush1.bf16.msra.mxu1 %v13928_v18  ;;  %v14002_v18 = vld [vmem:[%s17772_s3 + $0x8d0] ss:$20 sps:$4 sm:$0xff]  }
 0x5ff   :  { %6261 = vmatprep.subr.bf16.mxu1 %v13936_v24  ;;  %v14003_v24 = vld [vmem:[%s17772_s3 + $0xa38] ss:$20 sps:$4 sm:$0xff]  }
 0x600   :  { %12855 = vmatmul.mubr.msk.bf16.vlgmr.msra.gmra.mrb[108].mxu0 %vm3808_vm9, %v16201_v2  ;;  %v13954_v2 = vld [vmem:[%s17772_s3 + $0xa84] ss:$20 sps:$4 sm:$0xff]  }
 0x601   :  { %6148 = vmatpush1.bf16.msra.mxu0 %v13931_v39  ;;  %6179 = vmatprep.mubr.bf16.mxu0 %v16309_v34  ;;  %v14004_v39 = vld [vmem:[%s17772_s3 + $0x8f8] ss:$20 sps:$4 sm:$0xff]  }
 0x602   :  { %6262 = vmatpush1.bf16.msra.mxu1 %v13934_v25  ;;  %6149 = vmatprep.subr.bf16.mxu0 %v13939_v61  ;;  %v14005_v25 = vld [vmem:[%s17772_s3 + $0xa60] ss:$20 sps:$4 sm:$0xff]  }
 0x603   :  { %6263 = vmatprep.subr.bf16.mxu1 %v13942_v23  ;;  %v12335_v30 = vpop.f32.mrb[104].mxu0  ;;  %v14006_v61 = vld [vmem:[%s17772_s3 + $0x920] ss:$20 sps:$4 sm:$0xff]   ;;  %v14007_v23 = vld [vmem:[%s17772_s3 + $0xa88] ss:$20 sps:$4 sm:$0xff]  }
 0x604   :  { %v12336_v32 = vpop.f32.mrb[105].mxu0 }
 0x605   :  { %6150 = vmatpush1.bf16.msra.mxu0 %v13937_v26  ;;  %v16482_v54 = vadd.f32 %v12336_v32, %v12335_v30  ;;  %v12338_v1 = vpop.f32.mrb[106].mxu0  ;;  %v14008_v26 = vld [vmem:[%s17775_s6 + $0x1ec] sm:$0xff]   ;;  %v14011_v30 = vld [vmem:[%s17775_s6 + $0x1b4] sm:$0xff]  }
 0x606   :  { %6264 = vmatpush1.bf16.msra.mxu1 %v13940_v27  ;;  %6151 = vmatprep.subr.bf16.mxu0 %v13945_v29  ;;  %v12339_v40 = vpop.f32.mrb[107].mxu0  ;;  %v14009_v27 = vld [vmem:[%s17775_s6 + $0x1ac] sm:$0xff]   ;;  %v14010_v29 = vld [vmem:[%s17775_s6 + $0x1f4] sm:$0xff]  }
 0x607   :  { %v16494_v42 = vadd.f32 %v12339_v40, %v12338_v1  ;;  %6276 = vmatprep.subr.bf16.mxu1 %v13954_v2  ;;  %v14012_v2 = vld [vmem:[%s17775_s6 + $0x1fc] sm:$0xff]  }
 0x608   :  { %v14013_v40 = vld [vmem:[%s17775_s6 + $0x1bc] sm:$0xff]  }
 0x609   :  { %6152 = vmatpush1.bf16.msra.mxu0 %v13943_v36  ;;  %6266 = vmatmul.mubr.bf16.vlgmr.msra.gmra.mrb[28].mxu1 %v16497_v43 }
 0x60a   :  { %6153 = vmatprep.subr.bf16.mxu0 %v13948_v41  ;;  %6277 = vmatpush1.bf16.msra.mxu1 %v13952_v4  ;;  %v14014_v41 = vld [vmem:[%s17775_s6 + $0x204] sm:$0xff]  }
 0x60b   :  { %6308 = vmatprep.mubr.bf16.mxu1 %v14342_v47  ;;  %12415 = vmatprep.subr.bf16.mxu1 %v14036_v53  ;;  %v14062_v53 = vld [vmem:[%s17775_s6 + $0x2b8] sm:$0xff]  }
 0x60d   :  { %6154 = vmatpush1.bf16.msra.mxu0 %v13946_v63 }
 0x60e   :  { %6155 = vmatprep.subr.bf16.mxu0 %v13951_v46  ;;  %v14015_v46 = vld [vmem:[%s17775_s6 + $0x1c4] sm:$0xff]  }
 0x611   :  { %6156 = vmatpush1.bf16.msra.mxu0 %v13949_v48  ;;  %v14016_v48 = vld [vmem:[%s17775_s6 + $0x20c] sm:$0xff]  }
 0x612   :  { %6157 = vmatprep.subr.bf16.mxu0 %v13957_v50  ;;  %v14017_v50 = vld [vmem:[%s17775_s6 + $0x1cc] sm:$0xff]  }
 0x615   :  { %6158 = vmatpush1.bf16.msra.mxu0 %v13955_v51  ;;  %11296 = vmatmul.mubr.msk.bf16.vlgmr.msra.gmra.mrb[28].mxu1 %vm3808_vm9, %v16522_v59  ;;  %v14037_v51 = vld [vmem:[%s17775_s6 + $0x12c] sm:$0xff]  }
 0x616   :  { %6159 = vmatprep.subr.bf16.mxu0 %v13960_v56  ;;  %v14021_v56 = vld [vmem:[%s17775_s6 + $0x1dc] sm:$0xff]   ;;  %12416 = vmatpush3.bf16.msra.mxu1 %v14037_v51 }
 0x619   :  { %6160 = vmatpush1.bf16.msra.mxu0 %v13958_v16  ;;  %v14040_v16 = vld [vmem:[%s17775_s6 + $0x174] sm:$0xff]  }
 0x61a   :  { %6161 = vmatprep.subr.bf16.mxu0 %v13963_v7  ;;  %v14041_v7 = vld [vmem:[%s17775_s6 + $0x134] sm:$0xff]   ;;  %12417 = vmatprep.subr.bf16.mxu1 %v14040_v16 }
 0x61b   :  { %12418 = vmatpush3.bf16.msra.mxu1 %v14041_v7  ;;  %v14066_v7 = vld [vmem:[%s17775_s6 + $0x2c0] sm:$0xff]  }
 0x61d   :  { %6162 = vmatpush1.bf16.msra.mxu0 %v13961_v19  ;;  %v14023_v19 = vld [vmem:[%s17775_s6 + $0x1e4] sm:$0xff]  }
 0x61e   :  { %6163 = vmatprep.subr.bf16.mxu0 %v13966_v22  ;;  %v14024_v22 = vld [vmem:[%s17775_s6 + $0xc0] sm:$0xff]  }
 0x621   :  { %6164 = vmatpush1.bf16.msra.mxu0 %v13964_v60  ;;  %v14044_v60 = vld [vmem:[%s17775_s6 + $0x17c] sm:$0xff]  }
 0x622   :  { %6165 = vmatprep.subr.bf16.mxu0 %v13969_v62  ;;  %v14045_v62 = vld [vmem:[%s17775_s6 + $0x13c] sm:$0xff]   ;;  %12419 = vmatprep.subr.bf16.mxu1 %v14044_v60 }
 0x623   :  { %12420 = vmatpush3.bf16.msra.mxu1 %v14045_v62 }
 0x625   :  { %6166 = vmatpush1.bf16.msra.mxu0 %v13967_v38  ;;  %v14048_v38 = vld [vmem:[%s17775_s6 + $0x184] sm:$0xff]  }
 0x626   :  { %6167 = vmatprep.subr.bf16.mxu0 %v13972_v0  ;;  %v14049_v0 = vld [vmem:[%s17775_s6 + $0x144] sm:$0xff]   ;;  %12421 = vmatprep.subr.bf16.mxu1 %v14048_v38 }
 0x627   :  { %12422 = vmatpush3.bf16.msra.mxu1 %v14049_v0 }
 0x629   :  { %6168 = vmatpush1.bf16.msra.mxu0 %v13970_v12  ;;  %v14052_v12 = vld [vmem:[%s17775_s6 + $0x18c] sm:$0xff]  }
 0x62a   :  { %6169 = vmatprep.subr.bf16.mxu0 %v13975_v57  ;;  %v14053_v57 = vld [vmem:[%s17775_s6 + $0x14c] sm:$0xff]   ;;  %12423 = vmatprep.subr.bf16.mxu1 %v14052_v12  ;;  %v14067_v12 = vld [vmem:[%s17775_s6 + $0x280] sm:$0xff]  }
 0x62b   :  { %12424 = vmatpush3.bf16.msra.mxu1 %v14053_v57 }
 0x62d   :  { %6170 = vmatpush1.bf16.msra.mxu0 %v13973_v55 }
 0x62e   :  { %6171 = vmatprep.subr.bf16.mxu0 %v13978_v5  ;;  %v14056_v5 = vld [vmem:[%s17775_s6 + $0x194] sm:$0xff]  }
 0x62f   :  { %12425 = vmatprep.subr.bf16.mxu1 %v14056_v5 }
 0x631   :  { %6172 = vmatpush1.bf16.msra.mxu0 %v13976_v6 }
 0x632   :  { %6173 = vmatprep.subr.bf16.mxu0 %v13981_v8 }
 0x635   :  { %6174 = vmatpush1.bf16.msra.mxu0 %v13979_v9 }
 0x636   :  { %6175 = vmatprep.subr.bf16.mxu0 %v13984_v10  ;;  %v14057_v10 = vld [vmem:[%s17775_s6 + $0x154] sm:$0xff]  }
 0x637   :  { %12426 = vmatpush3.bf16.msra.mxu1 %v14057_v10  ;;  %v14069_v10 = vld [vmem:[%s17775_s6 + $0x288] sm:$0xff]  }
 0x639   :  { %6176 = vmatpush1.bf16.msra.mxu0 %v13982_v45 }
 0x63a   :  { %6177 = vmatprep.subr.bf16.mxu0 %v13987_v11 }
 0x63d   :  { %6178 = vmatpush1.bf16.msra.mxu0 %v13985_v33 }
 0x63e   :  { %6190 = vmatprep.subr.bf16.mxu0 %v13990_v35  ;;  %v14060_v35 = vld [vmem:[%s17775_s6 + $0x19c] sm:$0xff]  }
 0x63f   :  { %12427 = vmatprep.subr.bf16.mxu1 %v14060_v35  ;;  %v14071_v35 = vld [vmem:[%s17775_s6 + $0x290] sm:$0xff]  }
 0x640   :  { %6180 = vmatmul.mubr.bf16.vlgmr.msra.gmra.mrb[100].mxu0 %v16497_v43 }
 0x641   :  { %6191 = vmatpush1.bf16.msra.mxu0 %v13988_v15  ;;  %6222 = vmatprep.mubr.bf16.mxu0 %v14342_v47  ;;  %v13995_v47 = vld [vmem:[%s17772_s3 + $0x998] ss:$20 sps:$4 sm:$0xff]  }
 0x642   :  { %12391 = vmatprep.subr.bf16.mxu0 %v13991_v13  ;;  %v14061_v13 = vld [vmem:[%s17775_s6 + $0x15c] sm:$0xff]  }
 0x643   :  { %12428 = vmatpush3.bf16.msra.mxu1 %v14061_v13  ;;  %v14076_v13 = vld [vmem:[%s17775_s6 + $0x23c] sm:$0xff]  }
 0x64c   :  { %11295 = vmatmul.mubr.msk.bf16.vlgmr.msra.gmra.mrb[100].mxu0 %vm3808_vm9, %v16522_v59 }
 0x64d   :  { %12392 = vmatpush3.bf16.msra.mxu0 %v13992_v14  ;;  %6351 = vmatprep.mubr.bf16.mxu0 %v16309_v34  ;;  %v13998_v34 = vld [vmem:[%s17772_s3 + $0x880] ss:$20 sps:$4 sm:$0xff]   ;;  %v14064_v14 = vld [vmem:[%s17775_s6 + $0x1a4] sm:$0xff]  }
 0x64e   :  { %12393 = vmatprep.subr.bf16.mxu0 %v13993_v3  ;;  %v14065_v3 = vld [vmem:[%s17775_s6 + $0x164] sm:$0xff]   ;;  %12429 = vmatprep.subr.bf16.mxu1 %v14064_v14  ;;  %v14073_v14 = vld [vmem:[%s17775_s6 + $0x358] sm:$0xff]  }
 0x64f   :  { %12430 = vmatpush3.bf16.msra.mxu1 %v14065_v3 }
 0x650   :  { %12864 = vmatprep.subr.bf16.mxu1 %v14343_v37 }
 0x651   :  { %12394 = vmatpush3.bf16.msra.mxu0 %v13994_v58 }
 0x652   :  { %12395 = vmatprep.subr.bf16.mxu0 %v13995_v47 }
 0x655   :  { %12396 = vmatpush3.bf16.msra.mxu0 %v13996_v49 }
 0x656   :  { %12397 = vmatprep.subr.bf16.mxu0 %v13997_v20 }
 0x659   :  { %12398 = vmatpush3.bf16.msra.mxu0 %v13998_v34 }
 0x65a   :  { %12399 = vmatprep.subr.bf16.mxu0 %v13999_v44 }
 0x65d   :  { %12400 = vmatpush3.bf16.msra.mxu0 %v14000_v17 }
 0x65e   :  { %12401 = vmatprep.subr.bf16.mxu0 %v14001_v28 }
 0x661   :  { %12402 = vmatpush3.bf16.msra.mxu0 %v14002_v18 }
 0x662   :  { %12403 = vmatprep.subr.bf16.mxu0 %v14003_v24 }
 0x665   :  { %12404 = vmatpush3.bf16.msra.mxu0 %v14004_v39 }
 0x666   :  { %12405 = vmatprep.subr.bf16.mxu0 %v14005_v25  ;;  %v14025_v25 = vld [vmem:[%s17775_s6 + $0x80] sm:$0xff]  }
 0x669   :  { %12406 = vmatpush3.bf16.msra.mxu0 %v14006_v61 }
 0x66a   :  { %12858 = vmatprep.subr.bf16.mxu0 %v14343_v37 }
 0x66c   :  { %6352 = vmatmul.mubr.bf16.vlgmr.msra.gmra.mrb[116].mxu0 %v16497_v43 }
 0x66d   :  { %12859 = vmatpush3.bf16.msra.mxu0 %v14007_v23  ;;  %12860 = vmatprep.mubr.msk.bf16.mxu0 %vm14344_vm10, %v14343_v37  ;;  %v14026_v23 = vld [vmem:[%s17775_s6 + $0xc8] sm:$0xff]  }
 0x66e   :  { %12437 = vmatprep.subr.bf16.mxu0 %v14008_v26  ;;  %v14027_v26 = vld [vmem:[%s17775_s6 + $0x88] sm:$0xff]  }
 0x674   :  { %12861 = vmatmul.mubr.msk.bf16.vlgmr.msra.gmra.mrb[108].mxu0 %vm3808_vm9, %v16522_v59  ;;  %v14022_v59 = vld [vmem:[%s17775_s6 + $0x224] sm:$0xff]  }
 0x675   :  { %12438 = vmatpush3.bf16.msra.mxu0 %v14009_v27  ;;  %v14028_v27 = vld [vmem:[%s17775_s6 + $0xd0] sm:$0xff]  }
 0x676   :  { %12439 = vmatprep.subr.bf16.mxu0 %v14010_v29  ;;  %v14029_v29 = vld [vmem:[%s17775_s6 + $0x90] sm:$0xff]  }
 0x677   :  { %v12359_v31 = vpop.f32.mrb[112].mxu0 }
 0x678   :  { %v12360_v32 = vpop.f32.mrb[113].mxu0 }
 0x679   :  { %v12361_v36 = vadd.f32 %v12360_v32, %v12359_v31  ;;  %v12362_v1 = vpop.f32.mrb[114].mxu0  ;;  %12440 = vmatpush3.bf16.msra.mxu0 %v14011_v30  ;;  %v14030_v30 = vld [vmem:[%s17775_s6 + $0xd8] sm:$0xff]   ;;  %v14032_v31 = vld [vmem:[%s17775_s6 + $0xe0] sm:$0xff]  }
 0x67a   :  { %v12363_v21 = vpop.f32.mrb[115].mxu0  ;;  %12441 = vmatprep.subr.bf16.mxu0 %v14012_v2  ;;  %v14031_v2 = vld [vmem:[%s17775_s6 + $0x98] sm:$0xff]   ;;  %v14033_v32 = vld [vmem:[%s17775_s6 + $0xa0] sm:$0xff]  }
 0x67b   :  { %v13008_v4 = vadd.f32 %v12361_v36, %v16482_v54  ;;  %v12364_v43 = vadd.f32 %v12363_v21, %v12362_v1  ;;  %v14018_v54 = vld [vmem:[%s17775_s6 + $0x214] sm:$0xff]   ;;  %v14034_v36 = vld [vmem:[%s17775_s6 + $0xe8] sm:$0xff]  }
 0x67c   :  { %v14035_v1 = vld [vmem:[%s17775_s6 + $0xa8] sm:$0xff]   ;;  %v14039_v21 = vld [vmem:[%s17775_s6 + $0xb0] sm:$0xff]  }
 0x67d   :  { %v13012_v63 = vadd.f32 %v12364_v43, %v16494_v42  ;;  %12442 = vmatpush3.bf16.msra.mxu0 %v14013_v40  ;;  %v14019_v42 = vld [vmem:[%s17775_s6 + $0x1d4] sm:$0xff]  }
 0x67e   :  { %12443 = vmatprep.subr.bf16.mxu0 %v14014_v41  ;;  %v14038_v40 = vld [vmem:[%s17775_s6 + $0xf0] sm:$0xff]   ;;  %v14042_v41 = vld [vmem:[%s17775_s6 + $0xf8] sm:$0xff]  }
 0x67f   :  { %v14046_v43 = vld [vmem:[%s17775_s6 + $0x298] sm:$0xff]  }
 0x681   :  { %12444 = vmatpush3.bf16.msra.mxu0 %v14015_v46  ;;  %v14050_v46 = vld [vmem:[%s17775_s6 + $0x2a0] sm:$0xff]  }
 0x682   :  { %12445 = vmatprep.subr.bf16.mxu0 %v14016_v48  ;;  %v14051_v48 = vld [vmem:[%s17775_s6 + $0x260] sm:$0xff]  }
 0x685   :  { %12446 = vmatpush3.bf16.msra.mxu0 %v14017_v50  ;;  %v14054_v50 = vld [vmem:[%s17775_s6 + $0x2a8] sm:$0xff]  }
 0x686   :  { %12447 = vmatprep.subr.bf16.mxu0 %v14018_v54  ;;  %v14055_v54 = vld [vmem:[%s17775_s6 + $0x268] sm:$0xff]  }
 0x689   :  { %12448 = vmatpush3.bf16.msra.mxu0 %v14019_v42  ;;  %v14058_v42 = vld [vmem:[%s17775_s6 + $0x2b0] sm:$0xff]  }
 0x68a   :  { %12449 = vmatprep.subr.bf16.mxu0 %v14020_v52  ;;  %v14059_v52 = vld [vmem:[%s17775_s6 + $0x270] sm:$0xff]  }
 0x68d   :  { %12450 = vmatpush3.bf16.msra.mxu0 %v14021_v56 }
 0x68e   :  { %12451 = vmatprep.subr.bf16.mxu0 %v14022_v59  ;;  %v14063_v59 = vld [vmem:[%s17775_s6 + $0x278] sm:$0xff]  }
 0x691   :  { %12452 = vmatpush3.bf16.msra.mxu0 %v14023_v19 }
 0x692   :  { %12488 = vmatprep.subr.bf16.mxu0 %v14024_v22 }
 0x69c   :  { %v12383_v55 = vpop.f32.mrb[32].mxu1 }
 0x69d   :  { %v12384_v6 = vpop.f32.mrb[33].mxu1 }
 0x69e   :  { %v12385_v8 = vadd.f32 %v12384_v6, %v12383_v55  ;;  %v12386_v9 = vpop.f32.mrb[34].mxu1  ;;  %v14068_v55 = vld [vmem:[%s17775_s6 + $0x2c8] sm:$0xff]  }
 0x69f   :  { %v12387_v45 = vpop.f32.mrb[35].mxu1 }
 0x6a0   :  { %v16740_v11 = vadd.f32 %v13008_v4, %v12385_v8  ;;  %v12388_v33 = vadd.f32 %v12387_v45, %v12386_v9  ;;  %v14043_v4 = vld [vmem:[%s17775_s6 + $0xb8] sm:$0xff]   ;;  %v14072_v8 = vld [vmem:[%s17775_s6 + $0x22c] sm:$0xff]  }
 0x6a1   :  { %v14070_v45 = vld [vmem:[%s17775_s6 + $0x2d0] sm:$0xff]  }
 0x6a2   :  { %v16745_v15 = vadd.f32 %v13012_v63, %v12388_v33  ;;  %v14047_v63 = vld [vmem:[%s17775_s6 + $0x258] sm:$0xff]  }
 0x6a3   :  { %v14074_v33 = vld [vmem:[%s17775_s6 + $0x234] sm:$0xff]  }
 0x6e8   :  { %v6310_v58 = vpop.f32.mrb[28].mxu1 }
 0x6e9   :  { %v6312_v47 = vpop.f32.mrb[29].mxu1  ;;  %v6413_v20 = vmax.f32 %v6310_v58, 0.0  ;;  %v14078_v58 = vld [vmem:[%s17775_s6 + $0x244] sm:$0xff]  }
 0x6ea   :  { %v6314_v49 = vpop.f32.mrb[30].mxu1  ;;  %v6414_v17 = vmax.f32 %v6312_v47, 0.0  ;;  %v14075_v47 = vld [vmem:[%s17775_s6 + $0x360] sm:$0xff]  }
 0x6eb   :  { %v6418_v34 = vmax.f32 %v6314_v49, 0.0  ;;  %v6316_v44 = vpop.f32.mrb[31].mxu1  ;;  %v14080_v49 = vld [vmem:[%s17775_s6 + $0x24c] sm:$0xff]  }
 0x6ec   :  { %v6419_v28 = vmax.f32 %v6316_v44, 0.0  ;;  %v14079_v44 = vld [vmem:[%s17775_s6 + $0x370] sm:$0xff]  }
 0x6ed   :  { %v16757_v18 = vpack.c.bf16 %v6418_v34, %v6413_v20  ;;  %v14077_v20 = vld [vmem:[%s17775_s6 + $0x368] sm:$0xff]   ;;  %v14082_v34 = vld [vmem:[%s17775_s6 + $0x254] ss:$0 sps:$4 sm:$0xff]  }
 0x6ee   :  { %v16759_v24 = vpack.c.bf16 %v6419_v28, %v6414_v17  ;;  %v6821_v17 = vsel %vm492_vm2, %v14082_v34, 0  ;;  %v14084_v28 = vld [vmem:[%s17775_s6 + $0x40] sm:$0xff]  }
 0x6ef   :  { %v6584_v61 = vrot.slane %v16757_v18, 1  ;;  %v14117_v34 = vld [vmem:[%s17775_s6 + $0x100] sm:$0xff]  }
 0x6f0   :  { %v6585_v39 = vrot.slane %v16759_v24, 1 }
 0x6f2   :  { %6895 = vmatprep.mubr.bf16.mxu0 %v6585_v39 }
 0x6f3   :  { %6896 = vmatmul.mubr.bf16.vlgmr.msra.gmra.mrb[120].mxu0 %v6584_v61  ;;  %v14081_v61 = vld [vmem:[%s17775_s6 + $0x378] sm:$0xff]  }
 0x6f4   :  { %12489 = vmatpush3.bf16.msra.mxu0 %v14025_v25  ;;  %7246 = vmatprep.mubr.bf16.mxu0 %v16759_v24 }
 0x6f5   :  { %12490 = vmatprep.subr.bf16.mxu0 %v14026_v23 }
 0x6f8   :  { %12491 = vmatpush3.bf16.msra.mxu0 %v14027_v26 }
 0x6f9   :  { %12492 = vmatprep.subr.bf16.mxu0 %v14028_v27  ;;  %v14083_v27 = vld [vmem:[%s17775_s6 + $0x380] ss:$0 sps:$4 sm:$0xff]  }
 0x6fc   :  { %12493 = vmatpush3.bf16.msra.mxu0 %v14029_v29 }
 0x6fd   :  { %12494 = vmatprep.subr.bf16.mxu0 %v14030_v30 }
 0x700   :  { %12495 = vmatpush3.bf16.msra.mxu0 %v14031_v2 }
 0x701   :  { %12496 = vmatprep.subr.bf16.mxu0 %v14032_v31 }
 0x704   :  { %12497 = vmatpush3.bf16.msra.mxu0 %v14033_v32  ;;  %v7608_v32 = vsel %vm492_vm2, %v14083_v27, 0  ;;  %v14124_v27 = vld [vmem:[%s17775_s6 + $0x4c0] sm:$0xff]  }
 0x705   :  { %12498 = vmatprep.subr.bf16.mxu0 %v14034_v36  ;;  %v14085_v36 = vld [vmem:[%s17775_s6 + $0x444] sm:$0xff]  }
 0x708   :  { %12499 = vmatpush3.bf16.msra.mxu0 %v14035_v1 }
 0x709   :  { %12500 = vmatprep.subr.bf16.mxu0 %v14038_v40 }
 0x70c   :  { %12501 = vmatpush3.bf16.msra.mxu0 %v14039_v21 }
 0x70d   :  { %12502 = vmatprep.subr.bf16.mxu0 %v14042_v41 }
 0x710   :  { %12503 = vmatpush3.bf16.msra.mxu0 %v14043_v4 }
 0x711   :  { %12517 = vmatprep.subr.bf16.mxu0 %v14046_v43 }
 0x713   :  { %7247 = vmatmul.mubr.bf16.vlgmr.msra.gmra.mrb[124].mxu0 %v16757_v18 }
 0x714   :  { %12518 = vmatpush3.bf16.msra.mxu0 %v14047_v63 }
 0x715   :  { %12519 = vmatprep.subr.bf16.mxu0 %v14050_v46 }
 0x718   :  { %12520 = vmatpush3.bf16.msra.mxu0 %v14051_v48  ;;  %v14087_v48 = vld [vmem:[%s17775_s6 + $0x404] sm:$0xff]  }
 0x719   :  { %12521 = vmatprep.subr.bf16.mxu0 %v14054_v50 }
 0x71c   :  { %12522 = vmatpush3.bf16.msra.mxu0 %v14055_v54 }
 0x71d   :  { %12523 = vmatprep.subr.bf16.mxu0 %v14058_v42  ;;  %v14088_v42 = vld [vmem:[%s17775_s6 + $0x48] sm:$0xff]  }
 0x71f   :  { %v6224_v51 = vpop.f32.mrb[100].mxu0 }
 0x720   :  { %v6226_v56 = vpop.f32.mrb[101].mxu0  ;;  %12524 = vmatpush3.bf16.msra.mxu0 %v14059_v52  ;;  %v6411_v19 = vmax.f32 %v6224_v51, 0.0  ;;  %v14089_v52 = vld [vmem:[%s17775_s6 + $0x44c] sm:$0xff]  }
 0x721   :  { %v6228_v16 = vpop.f32.mrb[102].mxu0  ;;  %12525 = vmatprep.subr.bf16.mxu0 %v14062_v53  ;;  %v6412_v62 = vmax.f32 %v6226_v56, 0.0  ;;  %v7810_v53 = vrot.slane %v16759_v24, 3  ;;  %v14090_v51 = vld [vmem:[%s17775_s6 + $0x8] sm:$0xff]  }
 0x722   :  { %v6416_v22 = vmax.f32 %v6228_v16, 0.0  ;;  %v6230_v60 = vpop.f32.mrb[103].mxu0  ;;  %v14091_v56 = vld [vmem:[%s17775_s6 + $0x40c] sm:$0xff]   ;;  %v14093_v16 = vld [vmem:[%s17775_s6 + $0x454] sm:$0xff]  }
 0x723   :  { %v6417_v38 = vmax.f32 %v6230_v60, 0.0  ;;  %v14097_v60 = vld [vmem:[%s17775_s6 + $0x45c] sm:$0xff]  }
 0x724   :  { %v16843_v0 = vpack.c.bf16 %v6416_v22, %v6411_v19  ;;  %12526 = vmatpush3.bf16.msra.mxu0 %v14063_v59  ;;  %v14092_v59 = vld [vmem:[%s17775_s6 + $0x50] sm:$0xff]   ;;  %v14096_v22 = vld [vmem:[%s17775_s6 + $0x58] sm:$0xff]  }
 0x725   :  { %v16848_v57 = vpack.c.bf16 %v6417_v38, %v6412_v62  ;;  %12527 = vmatprep.subr.bf16.mxu0 %v14066_v7  ;;  %v14094_v7 = vld [vmem:[%s17775_s6 + $0x10] sm:$0xff]   ;;  %v14098_v62 = vld [vmem:[%s17775_s6 + $0x18] sm:$0xff]  }
 0x726   :  { %v6582_v9 = vrot.slane %v16843_v0, 1  ;;  %v7370_v3 = vrot.slane %v16843_v0, 2  ;;  %v14095_v19 = vld [vmem:[%s17775_s6 + $0x414] sm:$0xff]   ;;  %v14099_v38 = vld [vmem:[%s17775_s6 + $0x41c] sm:$0xff]  }
 0x727   :  { %v6583_v5 = vrot.slane %v16848_v57, 1  ;;  %v7371_v6 = vrot.slane %v16848_v57, 2 }
 0x728   :  { %12528 = vmatpush3.bf16.msra.mxu0 %v14067_v12  ;;  %v14100_v12 = vld [vmem:[%s17775_s6 + $0x60] sm:$0xff]  }
 0x729   :  { %6855 = vmatprep.mubr.bf16.mxu1 %v6583_v5  ;;  %7642 = vmatprep.mubr.bf16.mxu0 %v7371_v6  ;;  %v14102_v5 = vld [vmem:[%s17775_s6 + $0x20] sm:$0xff]  }
 0x72a   :  { %6856 = vmatmul.mubr.bf16.vlgmr.msra.gmra.mrb[36].mxu1 %v6582_v9  ;;  %12529 = vmatprep.subr.bf16.mxu0 %v14068_v55  ;;  %v14101_v55 = vld [vmem:[%s17775_s6 + $0x464] sm:$0xff]   ;;  %v14105_v9 = vld [vmem:[%s17775_s6 + $0x46c] sm:$0xff]  }
 0x72b   :  { %12865 = vmatpush3.bf16.msra.mxu1 %v14072_v8  ;;  %12876 = vmatprep.mubr.msk.bf16.mxu1 %vm14344_vm10, %v14343_v37  ;;  %v14103_v6 = vld [vmem:[%s17775_s6 + $0x424] sm:$0xff]  }
 0x72c   :  { %12530 = vmatpush3.bf16.msra.mxu0 %v14069_v10  ;;  %12866 = vmatprep.subr.bf16.mxu1 %v14343_v37  ;;  %v14104_v8 = vld [vmem:[%s17775_s6 + $0x68] sm:$0xff]  }
 0x72d   :  { %12531 = vmatprep.subr.bf16.mxu0 %v14070_v45  ;;  %v14106_v10 = vld [vmem:[%s17775_s6 + $0x28] sm:$0xff]  }
 0x72e   :  { %v14107_v45 = vld [vmem:[%s17775_s6 + $0x42c] sm:$0xff]  }
 0x72f   :  { %12867 = vmatpush3.bf16.msra.mxu1 %v14074_v33  ;;  %v14108_v33 = vld [vmem:[%s17775_s6 + $0x70] sm:$0xff]  }
 0x730   :  { %12532 = vmatpush3.bf16.msra.mxu0 %v14071_v35  ;;  %12868 = vmatprep.subr.bf16.mxu1 %v14343_v37  ;;  %v14109_v35 = vld [vmem:[%s17775_s6 + $0x474] sm:$0xff]  }
 0x731   :  { %12896 = vmatprep.subr.bf16.mxu0 %v14343_v37 }
 0x733   :  { %7643 = vmatmul.mubr.bf16.vlgmr.msra.gmra.mrb[128].mxu0 %v7370_v3  ;;  %12869 = vmatpush3.bf16.msra.mxu1 %v14076_v13  ;;  %v14110_v13 = vld [vmem:[%s17775_s6 + $0x30] sm:$0xff]   ;;  %v14112_v3 = vld [vmem:[%s17775_s6 + $0x78] sm:$0xff]  }
 0x734   :  { %12897 = vmatpush3.bf16.msra.mxu0 %v14073_v14  ;;  %12870 = vmatprep.subr.bf16.mxu1 %v14343_v37  ;;  %v14111_v14 = vld [vmem:[%s17775_s6 + $0x434] sm:$0xff]  }
 0x735   :  { %12898 = vmatprep.subr.bf16.mxu0 %v14343_v37  ;;  %12908 = vmatprep.mubr.msk.bf16.mxu0 %vm14344_vm10, %v14343_v37 }
 0x737   :  { %12871 = vmatpush3.bf16.msra.mxu1 %v14078_v58  ;;  %v14113_v58 = vld [vmem:[%s17775_s6 + $0x47c] sm:$0xff]  }
 0x738   :  { %12899 = vmatpush3.bf16.msra.mxu0 %v14075_v47  ;;  %12872 = vmatprep.subr.bf16.mxu1 %v14343_v37  ;;  %v14114_v47 = vld [vmem:[%s17775_s6 + $0x38] sm:$0xff]  }
 0x739   :  { %12900 = vmatprep.subr.bf16.mxu0 %v14343_v37 }
 0x73b   :  { %12873 = vmatpush3.bf16.msra.mxu1 %v14080_v49  ;;  %v14115_v49 = vld [vmem:[%s17775_s6 + $0x43c] sm:$0xff]  }
 0x73c   :  { %12901 = vmatpush3.bf16.msra.mxu0 %v14077_v20  ;;  %12874 = vmatprep.subr.bf16.mxu1 %v14343_v37  ;;  %v14116_v20 = vld [vmem:[%s17775_s6 + $0x4f0] sm:$0xff]  }
 0x73d   :  { %12902 = vmatprep.subr.bf16.mxu0 %v14343_v37 }
 0x73f   :  { %v12407_v39 = vpop.f32.mrb[116].mxu0  ;;  %12875 = vmatpush3.bf16.msra.mxu1 %v6821_v17  ;;  %v7809_v17 = vrot.slane %v16757_v18, 3 }
 0x740   :  { %v12408_v25 = vpop.f32.mrb[117].mxu0  ;;  %12903 = vmatpush3.bf16.msra.mxu0 %v14079_v44  ;;  %12466 = vmatprep.subr.bf16.mxu1 %v14084_v28  ;;  %v14118_v44 = vld [vmem:[%s17775_s6 + $0x4b0] sm:$0xff]   ;;  %v14119_v28 = vld [vmem:[%s17775_s6 + $0x4f8] sm:$0xff]  }
 0x741   :  { %v12409_v23 = vadd.f32 %v12408_v25, %v12407_v39  ;;  %v12410_v26 = vpop.f32.mrb[118].mxu0  ;;  %12904 = vmatprep.subr.bf16.mxu0 %v14343_v37  ;;  %v8245_v39 = vrot.slane %v16848_v57, 4  ;;  %v14120_v25 = vld [vmem:[%s17775_s6 + $0x108] sm:$0xff]  }
 0x742   :  { %v12411_v29 = vpop.f32.mrb[119].mxu0 }
 0x743   :  { %v12412_v30 = vadd.f32 %v12411_v29, %v12410_v26  ;;  %v13010_v2 = vadd.f32 %v16740_v11, %v12409_v23  ;;  %v14122_v23 = vld [vmem:[%s17775_s6 + $0x500] sm:$0xff]   ;;  %v14123_v26 = vld [vmem:[%s17775_s6 + $0x110] sm:$0xff]   ;;  %v14125_v29 = vld [vmem:[%s17775_s6 + $0x508] sm:$0xff]  }
 0x744   :  { %12905 = vmatpush3.bf16.msra.mxu0 %v14081_v61  ;;  %v14121_v61 = vld [vmem:[%s17775_s6 + $0x4b8] sm:$0xff]  }
 0x745   :  { %v13014_v31 = vadd.f32 %v16745_v15, %v12412_v30  ;;  %12906 = vmatprep.subr.bf16.mxu0 %v14343_v37  ;;  %v14086_v15 = vld [vmem:[%s17775_s6] sm:$0xff]   ;;  %v14126_v30 = vld [vmem:[%s17775_s6 + $0x118] sm:$0xff]  }
 0x747   :  { %v6394_v1 = vpop.f32.mrb[108].mxu0 }
 0x748   :  { %v13011_v40 = vadd.f32 %v13010_v2, %v6394_v1  ;;  %v12862_v21 = vpop.f32.mrb[109].mxu0  ;;  %12907 = vmatpush3.bf16.msra.mxu0 %v7608_v32  ;;  %v14127_v2 = vld [vmem:[%s17775_s6 + $0x4c8] sm:$0xff]   ;;  %v14129_v32 = vld [vmem:[%s17775_s6 + $0x120] sm:$0xff]   ;;  %v14131_v1 = vld [vmem:[%s17775_s6 + $0x518] sm:$0xff]  }
 0x749   :  { %v6397_v41 = vpop.f32.mrb[110].mxu0  ;;  %12590 = vmatprep.subr.bf16.mxu0 %v14085_v36  ;;  %v14130_v36 = vld [vmem:[%s17775_s6 + $0x4d0] sm:$0xff]   ;;  %v14133_v21 = vld [vmem:[%s17775_s6 + $0x4d8] sm:$0xff]  }
 0x74a   :  { %v13015_v4 = vadd.f32 %v13014_v31, %v6397_v41  ;;  %v12863_v43 = vpop.f32.mrb[111].mxu0  ;;  %v6415_v11 = vmax.f32 %v13011_v40, 0.0  ;;  %v14128_v31 = vld [vmem:[%s17775_s6 + $0x510] sm:$0xff]   ;;  %v14132_v40 = vld [vmem:[%s17775_s6 + $0x128] ss:$0 sps:$4 sm:$0xff]  }
 0x74b   :  { %v7172_v41 = vsel %vm492_vm2, %v14132_v40, 0  ;;  %v14135_v43 = vld [vmem:[%s17775_s6 + $0x520] sm:$0xff]   ;;  %v14182_v40 = vld [vmem:[%s17775_s6 + $0x3ac] sm:$0xff]  }
 0x74c   :  { %v6420_v63 = vmax.f32 %v13015_v4, 0.0  ;;  %v14134_v4 = vld [vmem:[%s17775_s6 + $0x318] sm:$0xff]  }
 0x74e   :  { %v16927_v46 = vpack.c.bf16 %v6420_v63, %v6415_v11  ;;  %v14136_v11 = vld [vmem:[%s17775_s6 + $0x2d8] sm:$0xff]   ;;  %v14137_v63 = vld [vmem:[%s17775_s6 + $0x4e0] sm:$0xff]  }
 0x750   :  { %v6586_v50 = vrot.slane %v16927_v46, 1  ;;  %v7374_v54 = vrot.slane %v16927_v46, 2 }
 0x752   :  { %12877 = vmatmul.mubr.msk.bf16.vlgmr.msra.gmra.mrb[40].mxu1 %vm6816_vm11, %v6586_v50  ;;  %12909 = vmatmul.mubr.msk.bf16.vlgmr.msra.gmra.mrb[132].mxu0 %vm6816_vm11, %v7374_v54  ;;  %v14139_v50 = vld [vmem:[%s17775_s6 + $0x528] sm:$0xff]   ;;  %v14140_v54 = vld [vmem:[%s17775_s6 + $0x2e0] sm:$0xff]  }
 0x753   :  { %12467 = vmatpush3.bf16.msra.mxu1 %v14086_v15  ;;  %12591 = vmatpush3.bf16.msra.mxu0 %v14087_v48  ;;  %v14138_v15 = vld [vmem:[%s17775_s6 + $0x320] sm:$0xff]   ;;  %v7373_v48 = vrot.slane %v16759_v24, 2 }
 0x754   :  { %7206 = vmatprep.mubr.bf16.mxu1 %v16848_v57  ;;  %8119 = vmatprep.mubr.bf16.mxu0 %v7810_v53  ;;  %v14143_v53 = vld [vmem:[%s17775_s6 + $0x2e8] sm:$0xff]  }
 0x755   :  { %12468 = vmatprep.subr.bf16.mxu1 %v14088_v42  ;;  %12592 = vmatprep.subr.bf16.mxu0 %v14089_v52  ;;  %v14141_v42 = vld [vmem:[%s17775_s6 + $0x4e8] sm:$0xff]  }
 0x756   :  { %v14142_v52 = vld [vmem:[%s17775_s6 + $0x328] sm:$0xff]  }
 0x757   :  { %12469 = vmatpush3.bf16.msra.mxu1 %v14090_v51  ;;  %12593 = vmatpush3.bf16.msra.mxu0 %v14091_v56  ;;  %v14144_v51 = vld [vmem:[%s17775_s6 + $0x5b0] sm:$0xff]  }
 0x758   :  { %12470 = vmatprep.subr.bf16.mxu1 %v14092_v59  ;;  %12594 = vmatprep.subr.bf16.mxu0 %v14093_v16  ;;  %v14145_v56 = vld [vmem:[%s17775_s6 + $0x330] sm:$0xff]   ;;  %v8244_v59 = vrot.slane %v16843_v0, 4 }
 0x759   :  { %v14146_v16 = vld [vmem:[%s17775_s6 + $0x2f0] sm:$0xff]  }
 0x75b   :  { %12471 = vmatpush3.bf16.msra.mxu1 %v14094_v7  ;;  %12595 = vmatpush3.bf16.msra.mxu0 %v14095_v19  ;;  %v14147_v7 = vld [vmem:[%s17775_s6 + $0x5b8] sm:$0xff]  }
 0x75c   :  { %12472 = vmatprep.subr.bf16.mxu1 %v14096_v22  ;;  %12596 = vmatprep.subr.bf16.mxu0 %v14097_v60  ;;  %v14148_v19 = vld [vmem:[%s17775_s6 + $0x338] sm:$0xff]   ;;  %v14150_v60 = vld [vmem:[%s17775_s6 + $0x5c0] sm:$0xff]  }
 0x75d   :  { %v14149_v22 = vld [vmem:[%s17775_s6 + $0x2f8] sm:$0xff]  }
 0x75f   :  { %12473 = vmatpush3.bf16.msra.mxu1 %v14098_v62  ;;  %12597 = vmatpush3.bf16.msra.mxu0 %v14099_v38  ;;  %v14151_v62 = vld [vmem:[%s17775_s6 + $0x340] sm:$0xff]  }
 0x760   :  { %12474 = vmatprep.subr.bf16.mxu1 %v14100_v12  ;;  %12598 = vmatprep.subr.bf16.mxu0 %v14101_v55  ;;  %v14152_v38 = vld [vmem:[%s17775_s6 + $0x300] sm:$0xff]   ;;  %v14153_v12 = vld [vmem:[%s17775_s6 + $0x5c8] sm:$0xff]  }
 0x761   :  { %v14154_v55 = vld [vmem:[%s17775_s6 + $0x348] sm:$0xff]  }
 0x763   :  { %12475 = vmatpush3.bf16.msra.mxu1 %v14102_v5  ;;  %12599 = vmatpush3.bf16.msra.mxu0 %v14103_v6  ;;  %v14155_v5 = vld [vmem:[%s17775_s6 + $0x308] sm:$0xff]   ;;  %v14156_v6 = vld [vmem:[%s17775_s6 + $0x5d0] sm:$0xff]  }
 0x764   :  { %12476 = vmatprep.subr.bf16.mxu1 %v14104_v8  ;;  %12600 = vmatprep.subr.bf16.mxu0 %v14105_v9  ;;  %v14157_v8 = vld [vmem:[%s17775_s6 + $0x350] sm:$0xff]   ;;  %v14159_v9 = vld [vmem:[%s17775_s6 + $0x5d8] ss:$0 sps:$4 sm:$0xff]  }
 0x767   :  { %12477 = vmatpush3.bf16.msra.mxu1 %v14106_v10  ;;  %12601 = vmatpush3.bf16.msra.mxu0 %v14107_v45  ;;  %v14158_v10 = vld [vmem:[%s17775_s6 + $0x310] sm:$0xff]   ;;  %v14160_v45 = vld [vmem:[%s17775_s6 + $0x3c4] sm:$0xff]  }
 0x768   :  { %12478 = vmatprep.subr.bf16.mxu1 %v14108_v33  ;;  %12602 = vmatprep.subr.bf16.mxu0 %v14109_v35  ;;  %v8482_v33 = vsel %vm492_vm2, %v14159_v9, 0  ;;  %v14161_v35 = vld [vmem:[%s17775_s6 + $0x69c] sm:$0xff]  }
 0x769   :  { %v14203_v9 = vld [vmem:[%s17775_s6 + $0x720] sm:$0xff]  }
 0x76b   :  { %12479 = vmatpush3.bf16.msra.mxu1 %v14110_v13  ;;  %12603 = vmatpush3.bf16.msra.mxu0 %v14111_v14  ;;  %v14162_v13 = vld [vmem:[%s17775_s6 + $0x384] sm:$0xff]   ;;  %v7372_v14 = vrot.slane %v16757_v18, 2 }
 0x76c   :  { %12480 = vmatprep.subr.bf16.mxu1 %v14112_v3  ;;  %12604 = vmatprep.subr.bf16.mxu0 %v14113_v58  ;;  %v14163_v3 = vld [vmem:[%s17775_s6 + $0x65c] sm:$0xff]   ;;  %v8248_v58 = vrot.slane %v16927_v46, 4 }
 0x76f   :  { %12481 = vmatpush3.bf16.msra.mxu1 %v14114_v47  ;;  %12605 = vmatpush3.bf16.msra.mxu0 %v14115_v49  ;;  %v14164_v47 = vld [vmem:[%s17775_s6 + $0x3cc] sm:$0xff]   ;;  %v7808_v49 = vrot.slane %v16848_v57, 3 }
 0x770   :  { %12880 = vmatprep.subr.bf16.mxu1 %v14343_v37  ;;  %12619 = vmatprep.subr.bf16.mxu0 %v14116_v20  ;;  %v14165_v20 = vld [vmem:[%s17775_s6 + $0x6a4] sm:$0xff]  }
 0x772   :  { %7207 = vmatmul.mubr.bf16.vlgmr.msra.gmra.mrb[44].mxu1 %v16843_v0  ;;  %8120 = vmatmul.mubr.bf16.vlgmr.msra.gmra.mrb[136].mxu0 %v7809_v17  ;;  %v14167_v17 = vld [vmem:[%s17775_s6 + $0x664] sm:$0xff]  }
 0x773   :  { %12881 = vmatpush3.bf16.msra.mxu1 %v14117_v34  ;;  %12620 = vmatpush3.bf16.msra.mxu0 %v14118_v44  ;;  %v8684_v34 = vrot.slane %v16759_v24, 5  ;;  %v14166_v44 = vld [vmem:[%s17775_s6 + $0x38c] sm:$0xff]  }
 0x774   :  { %8516 = vmatprep.mubr.bf16.mxu0 %v8245_v39  ;;  %12882 = vmatprep.subr.bf16.mxu1 %v14343_v37  ;;  %v14169_v39 = vld [vmem:[%s17775_s6 + $0x6ac] sm:$0xff]  }
 0x775   :  { %12621 = vmatprep.subr.bf16.mxu0 %v14119_v28  ;;  %12892 = vmatprep.mubr.msk.bf16.mxu1 %vm14344_vm10, %v14343_v37  ;;  %v14168_v28 = vld [vmem:[%s17775_s6 + $0x3d4] sm:$0xff]  }
 0x777   :  { %12883 = vmatpush3.bf16.msra.mxu1 %v14120_v25  ;;  %12622 = vmatpush3.bf16.msra.mxu0 %v14121_v61  ;;  %v14170_v25 = vld [vmem:[%s17775_s6 + $0x394] sm:$0xff]   ;;  %v14171_v61 = vld [vmem:[%s17775_s6 + $0x66c] sm:$0xff]  }
 0x778   :  { %12884 = vmatprep.subr.bf16.mxu1 %v14343_v37  ;;  %12623 = vmatprep.subr.bf16.mxu0 %v14122_v23  ;;  %v14172_v23 = vld [vmem:[%s17775_s6 + $0x3dc] sm:$0xff]  }
 0x77b   :  { %12885 = vmatpush3.bf16.msra.mxu1 %v14123_v26  ;;  %12624 = vmatpush3.bf16.msra.mxu0 %v14124_v27  ;;  %v14173_v26 = vld [vmem:[%s17775_s6 + $0x6b4] sm:$0xff]   ;;  %v14174_v27 = vld [vmem:[%s17775_s6 + $0x39c] sm:$0xff]  }
 0x77c   :  { %12886 = vmatprep.subr.bf16.mxu1 %v14343_v37  ;;  %12625 = vmatprep.subr.bf16.mxu0 %v14125_v29  ;;  %v14175_v29 = vld [vmem:[%s17775_s6 + $0x674] sm:$0xff]  }
 0x77f   :  { %12887 = vmatpush3.bf16.msra.mxu1 %v14126_v30  ;;  %12626 = vmatpush3.bf16.msra.mxu0 %v14127_v2  ;;  %v14176_v30 = vld [vmem:[%s17775_s6 + $0x3e4] sm:$0xff]   ;;  %v14177_v2 = vld [vmem:[%s17775_s6 + $0x6bc] sm:$0xff]  }
 0x780   :  { %12888 = vmatprep.subr.bf16.mxu1 %v14343_v37  ;;  %12627 = vmatprep.subr.bf16.mxu0 %v14128_v31  ;;  %v14178_v31 = vld [vmem:[%s17775_s6 + $0x3a4] sm:$0xff]  }
 0x783   :  { %12889 = vmatpush3.bf16.msra.mxu1 %v14129_v32  ;;  %12628 = vmatpush3.bf16.msra.mxu0 %v14130_v36  ;;  %v14179_v32 = vld [vmem:[%s17775_s6 + $0x67c] sm:$0xff]   ;;  %v14180_v36 = vld [vmem:[%s17775_s6 + $0x3ec] sm:$0xff]  }
 0x784   :  { %12890 = vmatprep.subr.bf16.mxu1 %v14343_v37  ;;  %12629 = vmatprep.subr.bf16.mxu0 %v14131_v1  ;;  %v14181_v1 = vld [vmem:[%s17775_s6 + $0x6c4] sm:$0xff]  }
 0x787   :  { %12891 = vmatpush3.bf16.msra.mxu1 %v7172_v41  ;;  %12630 = vmatpush3.bf16.msra.mxu0 %v14133_v21  ;;  %v14183_v21 = vld [vmem:[%s17775_s6 + $0x684] sm:$0xff]   ;;  %v14184_v41 = vld [vmem:[%s17775_s6 + $0x3f4] sm:$0xff]  }
 0x788   :  { %12539 = vmatprep.subr.bf16.mxu1 %v14134_v4  ;;  %12631 = vmatprep.subr.bf16.mxu0 %v14135_v43  ;;  %v14185_v4 = vld [vmem:[%s17775_s6 + $0x6cc] sm:$0xff]   ;;  %v14186_v43 = vld [vmem:[%s17775_s6 + $0x3b4] sm:$0xff]  }
 0x78a   :  { %12893 = vmatmul.mubr.msk.bf16.vlgmr.msra.gmra.mrb[48].mxu1 %vm6816_vm11, %v16927_v46 }
 0x78b   :  { %12540 = vmatpush3.bf16.msra.mxu1 %v14136_v11  ;;  %7682 = vmatprep.mubr.bf16.mxu1 %v7373_v48  ;;  %v14187_v11 = vld [vmem:[%s17775_s6 + $0x68c] sm:$0xff]   ;;  %v14190_v48 = vld [vmem:[%s17775_s6 + $0x3bc] sm:$0xff]  }
 0x78c   :  { %12632 = vmatpush3.bf16.msra.mxu0 %v14137_v63  ;;  %12541 = vmatprep.subr.bf16.mxu1 %v14138_v15  ;;  %v14188_v63 = vld [vmem:[%s17775_s6 + $0x3fc] sm:$0xff]   ;;  %v14189_v15 = vld [vmem:[%s17775_s6 + $0x6d4] sm:$0xff]  }
 0x78d   :  { %12633 = vmatprep.subr.bf16.mxu0 %v14139_v50  ;;  %v14191_v50 = vld [vmem:[%s17775_s6 + $0x694] sm:$0xff]  }
 0x78f   :  { %12542 = vmatpush3.bf16.msra.mxu1 %v14140_v54  ;;  %v14192_v54 = vld [vmem:[%s17775_s6 + $0x748] sm:$0xff]  }
 0x790   :  { %12634 = vmatpush3.bf16.msra.mxu0 %v14141_v42  ;;  %12543 = vmatprep.subr.bf16.mxu1 %v14142_v52 }
 0x791   :  { %12928 = vmatprep.subr.bf16.mxu0 %v14343_v37 }
 0x793   :  { %8517 = vmatmul.mubr.bf16.vlgmr.msra.gmra.mrb[140].mxu0 %v8244_v59  ;;  %12544 = vmatpush3.bf16.msra.mxu1 %v14143_v53  ;;  %v14193_v53 = vld [vmem:[%s17775_s6 + $0x484] sm:$0xff]  }
 0x794   :  { %12929 = vmatpush3.bf16.msra.mxu0 %v14144_v51  ;;  %12545 = vmatprep.subr.bf16.mxu1 %v14145_v56  ;;  %v7807_v56 = vrot.slane %v16843_v0, 3 }
 0x795   :  { %12930 = vmatprep.subr.bf16.mxu0 %v14343_v37  ;;  %12940 = vmatprep.mubr.msk.bf16.mxu0 %vm14344_vm10, %v14343_v37 }
 0x797   :  { %12546 = vmatpush3.bf16.msra.mxu1 %v14146_v16  ;;  %v14194_v16 = vld [vmem:[%s17775_s6 + $0x708] sm:$0xff]  }
 0x798   :  { %12931 = vmatpush3.bf16.msra.mxu0 %v14147_v7  ;;  %12547 = vmatprep.subr.bf16.mxu1 %v14148_v19  ;;  %v8683_v7 = vrot.slane %v16757_v18, 5 }
 0x799   :  { %12932 = vmatprep.subr.bf16.mxu0 %v14343_v37 }
 0x79b   :  { %12548 = vmatpush3.bf16.msra.mxu1 %v14149_v22  ;;  %v14195_v22 = vld [vmem:[%s17775_s6 + $0x750] sm:$0xff]  }
 0x79c   :  { %12933 = vmatpush3.bf16.msra.mxu0 %v14150_v60  ;;  %12549 = vmatprep.subr.bf16.mxu1 %v14151_v62  ;;  %v9119_v60 = vrot.slane %v16848_v57, 6  ;;  %v14196_v62 = vld [vmem:[%s17775_s6 + $0x48c] sm:$0xff]  }
 0x79d   :  { %12934 = vmatprep.subr.bf16.mxu0 %v14343_v37 }
 0x79f   :  { %12550 = vmatpush3.bf16.msra.mxu1 %v14152_v38  ;;  %v14197_v38 = vld [vmem:[%s17775_s6 + $0x710] sm:$0xff]  }
 0x7a0   :  { %12935 = vmatpush3.bf16.msra.mxu0 %v14153_v12  ;;  %12551 = vmatprep.subr.bf16.mxu1 %v14154_v55  ;;  %v14198_v12 = vld [vmem:[%s17775_s6 + $0x758] sm:$0xff]  }
 0x7a1   :  { %12936 = vmatprep.subr.bf16.mxu0 %v14343_v37  ;;  %v14199_v55 = vld [vmem:[%s17775_s6 + $0x494] sm:$0xff]  }
 0x7a3   :  { %12552 = vmatpush3.bf16.msra.mxu1 %v14155_v5  ;;  %v14200_v5 = vld [vmem:[%s17775_s6 + $0x718] sm:$0xff]  }
 0x7a4   :  { %12937 = vmatpush3.bf16.msra.mxu0 %v14156_v6  ;;  %12553 = vmatprep.subr.bf16.mxu1 %v14157_v8  ;;  %v14201_v6 = vld [vmem:[%s17775_s6 + $0x760] sm:$0xff]  }
 0x7a5   :  { %12938 = vmatprep.subr.bf16.mxu0 %v14343_v37  ;;  %v14202_v8 = vld [vmem:[%s17775_s6 + $0x49c] sm:$0xff]  }
 0x7a7   :  { %12554 = vmatpush3.bf16.msra.mxu1 %v14158_v10  ;;  %v14204_v10 = vld [vmem:[%s17775_s6 + $0x768] sm:$0xff]  }
 0x7a8   :  { %12939 = vmatpush3.bf16.msra.mxu0 %v8482_v33  ;;  %12568 = vmatprep.subr.bf16.mxu1 %v14160_v45  ;;  %v14205_v45 = vld [vmem:[%s17775_s6 + $0x4a4] sm:$0xff]  }
 0x7a9   :  { %12692 = vmatprep.subr.bf16.mxu0 %v14161_v35  ;;  %v14206_v33 = vld [vmem:[%s17775_s6 + $0x728] sm:$0xff]  }
 0x7aa   :  { %7683 = vmatmul.mubr.bf16.vlgmr.msra.gmra.mrb[52].mxu1 %v7372_v14  ;;  %v14208_v35 = vld [vmem:[%s17775_s6 + $0x4ac] ss:$0 sps:$4 sm:$0xff]  }
 0x7ab   :  { %12941 = vmatmul.mubr.msk.bf16.vlgmr.msra.gmra.mrb[144].mxu0 %vm6816_vm11, %v8248_v58  ;;  %12569 = vmatpush3.bf16.msra.mxu1 %v14162_v13  ;;  %v14207_v13 = vld [vmem:[%s17775_s6 + $0x770] sm:$0xff]   ;;  %v8045_v14 = vsel %vm492_vm2, %v14208_v35, 0  ;;  %v14245_v35 = vld [vmem:[%s17775_s6 + $0x904] sm:$0xff]  }
 0x7ac   :  { %8079 = vmatprep.mubr.bf16.mxu1 %v7808_v49  ;;  %12693 = vmatpush3.bf16.msra.mxu0 %v14163_v3  ;;  %v14209_v3 = vld [vmem:[%s17775_s6 + $0x730] sm:$0xff]  }
 0x7ad   :  { %8993 = vmatprep.mubr.bf16.mxu0 %v8684_v34  ;;  %12570 = vmatprep.subr.bf16.mxu1 %v14164_v47  ;;  %v14210_v58 = vld [vmem:[%s17775_s6 + $0x570] sm:$0xff]   ;;  %v14211_v47 = vld [vmem:[%s17775_s6 + $0x778] sm:$0xff]  }
 0x7ae   :  { %12694 = vmatprep.subr.bf16.mxu0 %v14165_v20  ;;  %v14212_v49 = vld [vmem:[%s17775_s6 + $0x530] sm:$0xff]   ;;  %v7811_v20 = vrot.slane %v16927_v46, 3  ;;  %v14213_v34 = vld [vmem:[%s17775_s6 + $0x738] sm:$0xff]  }
 0x7af   :  { %12571 = vmatpush3.bf16.msra.mxu1 %v14166_v44  ;;  %v14214_v44 = vld [vmem:[%s17775_s6 + $0x578] sm:$0xff]  }
 0x7b0   :  { %12695 = vmatpush3.bf16.msra.mxu0 %v14167_v17  ;;  %12572 = vmatprep.subr.bf16.mxu1 %v14168_v28  ;;  %v8247_v17 = vrot.slane %v16759_v24, 4  ;;  %v14215_v28 = vld [vmem:[%s17775_s6 + $0x780] sm:$0xff]  }
 0x7b1   :  { %12696 = vmatprep.subr.bf16.mxu0 %v14169_v39  ;;  %v14216_v39 = vld [vmem:[%s17775_s6 + $0x538] sm:$0xff]  }
 0x7b3   :  { %12573 = vmatpush3.bf16.msra.mxu1 %v14170_v25  ;;  %v14217_v25 = vld [vmem:[%s17775_s6 + $0x740] sm:$0xff]  }
 0x7b4   :  { %12697 = vmatpush3.bf16.msra.mxu0 %v14171_v61  ;;  %12574 = vmatprep.subr.bf16.mxu1 %v14172_v23  ;;  %v14218_v61 = vld [vmem:[%s17775_s6 + $0x580] sm:$0xff]  }
 0x7b5   :  { %12698 = vmatprep.subr.bf16.mxu0 %v14173_v26 }
 0x7b7   :  { %12575 = vmatpush3.bf16.msra.mxu1 %v14174_v27  ;;  %v14219_v27 = vld [vmem:[%s17775_s6 + $0x540] sm:$0xff]  }
 0x7b8   :  { %12699 = vmatpush3.bf16.msra.mxu0 %v14175_v29  ;;  %12576 = vmatprep.subr.bf16.mxu1 %v14176_v30 }
 0x7b9   :  { %12700 = vmatprep.subr.bf16.mxu0 %v14177_v2  ;;  %v14220_v2 = vld [vmem:[%s17775_s6 + $0x808] sm:$0xff]  }
 0x7bb   :  { %12577 = vmatpush3.bf16.msra.mxu1 %v14178_v31  ;;  %v14221_v31 = vld [vmem:[%s17775_s6 + $0x588] sm:$0xff]  }
 0x7bc   :  { %12701 = vmatpush3.bf16.msra.mxu0 %v14179_v32  ;;  %12578 = vmatprep.subr.bf16.mxu1 %v14180_v36  ;;  %v9118_v32 = vrot.slane %v16843_v0, 6 }
 0x7bd   :  { %12702 = vmatprep.subr.bf16.mxu0 %v14181_v1  ;;  %v14222_v1 = vld [vmem:[%s17775_s6 + $0x548] sm:$0xff]  }
 0x7bf   :  { %12579 = vmatpush3.bf16.msra.mxu1 %v14182_v40  ;;  %v14223_v40 = vld [vmem:[%s17775_s6 + $0x810] sm:$0xff]  }
 0x7c0   :  { %12703 = vmatpush3.bf16.msra.mxu0 %v14183_v21  ;;  %12580 = vmatprep.subr.bf16.mxu1 %v14184_v41  ;;  %v14224_v21 = vld [vmem:[%s17775_s6 + $0x590] sm:$0xff]  }
 0x7c1   :  { %12704 = vmatprep.subr.bf16.mxu0 %v14185_v4  ;;  %v14225_v41 = vld [vmem:[%s17775_s6 + $0x550] sm:$0xff]   ;;  %v14226_v4 = vld [vmem:[%s17775_s6 + $0x818] sm:$0xff]  }
 0x7c3   :  { %12581 = vmatpush3.bf16.msra.mxu1 %v14186_v43  ;;  %v14227_v43 = vld [vmem:[%s17775_s6 + $0x598] sm:$0xff]  }
 0x7c4   :  { %12705 = vmatpush3.bf16.msra.mxu0 %v14187_v11  ;;  %12582 = vmatprep.subr.bf16.mxu1 %v14188_v63  ;;  %v14228_v11 = vld [vmem:[%s17775_s6 + $0x558] sm:$0xff]   ;;  %v14229_v63 = vld [vmem:[%s17775_s6 + $0x820] sm:$0xff]  }
 0x7c5   :  { %12706 = vmatprep.subr.bf16.mxu0 %v14189_v15  ;;  %v14230_v15 = vld [vmem:[%s17775_s6 + $0x5a0] sm:$0xff]  }
 0x7c6   :  { %v12453_v42 = vpop.f32.mrb[120].mxu0 }
 0x7c7   :  { %12583 = vmatpush3.bf16.msra.mxu1 %v14190_v48  ;;  %v12454_v52 = vpop.f32.mrb[121].mxu0  ;;  %v14231_v48 = vld [vmem:[%s17775_s6 + $0x560] sm:$0xff]  }
 0x7c8   :  { %12707 = vmatpush3.bf16.msra.mxu0 %v14191_v50  ;;  %v17289_v51 = vadd.f32 %v12454_v52, %v12453_v42  ;;  %12912 = vmatprep.subr.bf16.mxu1 %v14343_v37  ;;  %v12456_v59 = vpop.f32.mrb[122].mxu0  ;;  %v14232_v50 = vld [vmem:[%s17775_s6 + $0x828] sm:$0xff]   ;;  %v14235_v42 = vld [vmem:[%s17775_s6 + $0x830] ss:$0 sps:$4 sm:$0xff]  }
 0x7c9   :  { %12721 = vmatprep.subr.bf16.mxu0 %v14192_v54  ;;  %v12457_v19 = vpop.f32.mrb[123].mxu0  ;;  %v14233_v54 = vld [vmem:[%s17775_s6 + $0x5a8] sm:$0xff]   ;;  %v9356_v59 = vsel %vm492_vm2, %v14235_v42, 0 }
 0x7ca   :  { %8080 = vmatmul.mubr.bf16.vlgmr.msra.gmra.mrb[56].mxu1 %v7807_v56  ;;  %v14234_v52 = vld [vmem:[%s17775_s6 + $0x568] sm:$0xff]  }
 0x7cb   :  { %8994 = vmatmul.mubr.bf16.vlgmr.msra.gmra.mrb[148].mxu0 %v8683_v7  ;;  %12913 = vmatpush3.bf16.msra.mxu1 %v14193_v53  ;;  %v14236_v53 = vld [vmem:[%s17775_s6 + $0x61c] sm:$0xff]  }
 0x7cc   :  { %12722 = vmatpush3.bf16.msra.mxu0 %v14194_v16  ;;  %9390 = vmatprep.mubr.bf16.mxu0 %v9119_v60  ;;  %v14237_v16 = vld [vmem:[%s17775_s6 + $0x8f4] sm:$0xff]   ;;  %v14238_v60 = vld [vmem:[%s17775_s6 + $0x5dc] sm:$0xff]  }
 0x7cd   :  { %12914 = vmatprep.subr.bf16.mxu1 %v14343_v37  ;;  %12723 = vmatprep.subr.bf16.mxu0 %v14195_v22 }
 0x7ce   :  { %12924 = vmatprep.mubr.msk.bf16.mxu1 %vm14344_vm10, %v14343_v37 }
 0x7cf   :  { %12915 = vmatpush3.bf16.msra.mxu1 %v14196_v62 }
 0x7d0   :  { %12724 = vmatpush3.bf16.msra.mxu0 %v14197_v38  ;;  %12916 = vmatprep.subr.bf16.mxu1 %v14343_v37  ;;  %v8246_v38 = vrot.slane %v16757_v18, 4 }
 0x7d1   :  { %12725 = vmatprep.subr.bf16.mxu0 %v14198_v12  ;;  %v14239_v12 = vld [vmem:[%s17775_s6 + $0x8b4] sm:$0xff]  }
 0x7d3   :  { %12917 = vmatpush3.bf16.msra.mxu1 %v14199_v55  ;;  %v9122_v55 = vrot.slane %v16927_v46, 6 }
 0x7d4   :  { %12726 = vmatpush3.bf16.msra.mxu0 %v14200_v5  ;;  %12918 = vmatprep.subr.bf16.mxu1 %v14343_v37  ;;  %v14240_v5 = vld [vmem:[%s17775_s6 + $0x624] sm:$0xff]  }
 0x7d5   :  { %12727 = vmatprep.subr.bf16.mxu0 %v14201_v6 }
 0x7d7   :  { %12919 = vmatpush3.bf16.msra.mxu1 %v14202_v8  ;;  %v8682_v8 = vrot.slane %v16848_v57, 5 }
 0x7d8   :  { %12728 = vmatpush3.bf16.msra.mxu0 %v14203_v9  ;;  %12920 = vmatprep.subr.bf16.mxu1 %v14343_v37  ;;  %v14241_v9 = vld [vmem:[%s17775_s6 + $0x8fc] sm:$0xff]  }
 0x7d9   :  { %12729 = vmatprep.subr.bf16.mxu0 %v14204_v10  ;;  %v9558_v10 = vrot.slane %v16759_v24, 7 }
 0x7db   :  { %12921 = vmatpush3.bf16.msra.mxu1 %v14205_v45  ;;  %v14242_v45 = vld [vmem:[%s17775_s6 + $0x5e4] sm:$0xff]  }
 0x7dc   :  { %12730 = vmatpush3.bf16.msra.mxu0 %v14206_v33  ;;  %12922 = vmatprep.subr.bf16.mxu1 %v14343_v37  ;;  %v14244_v33 = vld [vmem:[%s17775_s6 + $0x62c] sm:$0xff]  }
 0x7dd   :  { %12731 = vmatprep.subr.bf16.mxu0 %v14207_v13 }
 0x7df   :  { %12923 = vmatpush3.bf16.msra.mxu1 %v8045_v14 }
 0x7e0   :  { %12732 = vmatpush3.bf16.msra.mxu0 %v14209_v3  ;;  %12641 = vmatprep.subr.bf16.mxu1 %v14210_v58  ;;  %v14246_v3 = vld [vmem:[%s17775_s6 + $0x5ec] sm:$0xff]  }
 0x7e1   :  { %12733 = vmatprep.subr.bf16.mxu0 %v14211_v47 }
 0x7e2   :  { %12925 = vmatmul.mubr.msk.bf16.vlgmr.msra.gmra.mrb[60].mxu1 %vm6816_vm11, %v7811_v20  ;;  %v14248_v20 = vld [vmem:[%s17775_s6 + $0x634] sm:$0xff]  }
 0x7e3   :  { %12642 = vmatpush3.bf16.msra.mxu1 %v14212_v49  ;;  %8556 = vmatprep.mubr.bf16.mxu1 %v8247_v17  ;;  %v14247_v49 = vld [vmem:[%s17775_s6 + $0x8c4] sm:$0xff]   ;;  %v14250_v17 = vld [vmem:[%s17775_s6 + $0x5f4] sm:$0xff]  }
 0x7e4   :  { %12734 = vmatpush3.bf16.msra.mxu0 %v14213_v34  ;;  %12643 = vmatprep.subr.bf16.mxu1 %v14214_v44  ;;  %v14249_v44 = vld [vmem:[%s17775_s6 + $0x90c] sm:$0xff]  }
 0x7e5   :  { %12735 = vmatprep.subr.bf16.mxu0 %v14215_v28  ;;  %v14251_v28 = vld [vmem:[%s17775_s6 + $0x8cc] sm:$0xff]  }
 0x7e6   :  { %v12504_v23 = vpop.f32.mrb[124].mxu0 }
 0x7e7   :  { %12644 = vmatpush3.bf16.msra.mxu1 %v14216_v39  ;;  %v12505_v26 = vpop.f32.mrb[125].mxu0  ;;  %v14252_v39 = vld [vmem:[%s17775_s6 + $0x63c] sm:$0xff]  }
 0x7e8   :  { %12736 = vmatpush3.bf16.msra.mxu0 %v14217_v25  ;;  %v17384_v29 = vadd.f32 %v12505_v26, %v12504_v23  ;;  %v12507_v30 = vpop.f32.mrb[126].mxu0  ;;  %12645 = vmatprep.subr.bf16.mxu1 %v14218_v61  ;;  %v14253_v25 = vld [vmem:[%s17775_s6 + $0x914] sm:$0xff]   ;;  %v14254_v61 = vld [vmem:[%s17775_s6 + $0x5fc] sm:$0xff]   ;;  %v14256_v26 = vld [vmem:[%s17775_s6 + $0x644] sm:$0xff]  }
 0x7e9   :  { %12960 = vmatprep.subr.bf16.mxu0 %v14343_v37  ;;  %v12508_v36 = vpop.f32.mrb[127].mxu0  ;;  %v14255_v23 = vld [vmem:[%s17775_s6 + $0x8d4] sm:$0xff]   ;;  %v14258_v30 = vld [vmem:[%s17775_s6 + $0x604] sm:$0xff]  }
 0x7ea   :  { %v14262_v36 = vld [vmem:[%s17775_s6 + $0x60c] sm:$0xff]  }
 0x7eb   :  { %9391 = vmatmul.mubr.bf16.vlgmr.msra.gmra.mrb[152].mxu0 %v9118_v32  ;;  %12646 = vmatpush3.bf16.msra.mxu1 %v14219_v27  ;;  %v14257_v27 = vld [vmem:[%s17775_s6 + $0x91c] sm:$0xff]   ;;  %v14261_v32 = vld [vmem:[%s17775_s6 + $0x924] sm:$0xff]  }
 0x7ec   :  { %12961 = vmatpush3.bf16.msra.mxu0 %v14220_v2  ;;  %12647 = vmatprep.subr.bf16.mxu1 %v14221_v31  ;;  %v14259_v2 = vld [vmem:[%s17775_s6 + $0x8dc] sm:$0xff]   ;;  %v14260_v31 = vld [vmem:[%s17775_s6 + $0x64c] sm:$0xff]  }
 0x7ed   :  { %12962 = vmatprep.subr.bf16.mxu0 %v14343_v37  ;;  %12972 = vmatprep.mubr.msk.bf16.mxu0 %vm14344_vm10, %v14343_v37 }
 0x7ef   :  { %12648 = vmatpush3.bf16.msra.mxu1 %v14222_v1  ;;  %v14263_v1 = vld [vmem:[%s17775_s6 + $0x8e4] sm:$0xff]  }
 0x7f0   :  { %12963 = vmatpush3.bf16.msra.mxu0 %v14223_v40  ;;  %12649 = vmatprep.subr.bf16.mxu1 %v14224_v21  ;;  %v14264_v40 = vld [vmem:[%s17775_s6 + $0x654] sm:$0xff]   ;;  %v14265_v21 = vld [vmem:[%s17775_s6 + $0x92c] sm:$0xff]  }
 0x7f1   :  { %12964 = vmatprep.subr.bf16.mxu0 %v14343_v37 }
 0x7f3   :  { %12650 = vmatpush3.bf16.msra.mxu1 %v14225_v41  ;;  %v14266_v41 = vld [vmem:[%s17775_s6 + $0x614] sm:$0xff]  }
 0x7f4   :  { %12965 = vmatpush3.bf16.msra.mxu0 %v14226_v4  ;;  %12651 = vmatprep.subr.bf16.mxu1 %v14227_v43  ;;  %v14267_v4 = vld [vmem:[%s17775_s6 + $0x8ec] sm:$0xff]   ;;  %v14268_v43 = vld [vmem:[%s17775_s6 + $0x6dc] sm:$0xff]  }
 0x7f5   :  { %12966 = vmatprep.subr.bf16.mxu0 %v14343_v37 }
 0x7f7   :  { %12652 = vmatpush3.bf16.msra.mxu1 %v14228_v11  ;;  %v8681_v11 = vrot.slane %v16843_v0, 5 }
 0x7f8   :  { %12967 = vmatpush3.bf16.msra.mxu0 %v14229_v63  ;;  %12653 = vmatprep.subr.bf16.mxu1 %v14230_v15  ;;  %v9557_v63 = vrot.slane %v16757_v18, 7  ;;  %v14269_v15 = vld [vmem:[%s17775_s6 + $0x6e4] sm:$0xff]  }
 0x7f9   :  { %12968 = vmatprep.subr.bf16.mxu0 %v14343_v37 }
 0x7fb   :  { %12654 = vmatpush3.bf16.msra.mxu1 %v14231_v48 }
 0x7fc   :  { %12969 = vmatpush3.bf16.msra.mxu0 %v14232_v50  ;;  %12655 = vmatprep.subr.bf16.mxu1 %v14233_v54 }
 0x7fd   :  { %12970 = vmatprep.subr.bf16.mxu0 %v14343_v37  ;;  %v12431_v56 = vpop.f32.mrb[36].mxu1 }
 0x7fe   :  { %v12432_v7 = vpop.f32.mrb[37].mxu1 }
 0x7ff   :  { %12656 = vmatpush3.bf16.msra.mxu1 %v14234_v52  ;;  %v12433_v19 = vadd.f32 %v12432_v7, %v12431_v56  ;;  %v12434_v22 = vpop.f32.mrb[38].mxu1 }
 0x800   :  { %12971 = vmatpush3.bf16.msra.mxu0 %v9356_v59  ;;  %v12435_v62 = vpop.f32.mrb[39].mxu1  ;;  %12670 = vmatprep.subr.bf16.mxu1 %v14236_v53  ;;  %v14270_v59 = vld [vmem:[%s17775_s6 + $0x6ec] sm:$0xff]   ;;  %v14272_v22 = vld [vmem:[%s17775_s6 + $0x6fc] sm:$0xff]  }
 0x801   :  { %12794 = vmatprep.subr.bf16.mxu0 %v14237_v16  ;;  %v17462_v6 = vadd.f32 %v17289_v51, %v12433_v19  ;;  %v14243_v51 = vld [vmem:[%s17775_s6 + $0x8bc] sm:$0xff]   ;;  %v14271_v19 = vld [vmem:[%s17775_s6 + $0x6f4] sm:$0xff]  }
 0x802   :  { %8557 = vmatmul.mubr.bf16.vlgmr.msra.gmra.mrb[64].mxu1 %v8246_v38  ;;  %v14274_v38 = vld [vmem:[%s17775_s6 + $0x7c8] sm:$0xff]  }
 0x803   :  { %12973 = vmatmul.mubr.msk.bf16.vlgmr.msra.gmra.mrb[156].mxu0 %vm6816_vm11, %v9122_v55  ;;  %12671 = vmatpush3.bf16.msra.mxu1 %v14238_v60  ;;  %v14273_v60 = vld [vmem:[%s17775_s6 + $0x704] ss:$0 sps:$4 sm:$0xff]   ;;  %v8685_v55 = vrot.slane %v16927_v46, 5 }
 0x804   :  { %8953 = vmatprep.mubr.bf16.mxu1 %v8682_v8  ;;  %12795 = vmatpush3.bf16.msra.mxu0 %v14239_v12  ;;  %v8919_v62 = vsel %vm492_vm2, %v14273_v60, 0  ;;  %v14275_v12 = vld [vmem:[%s17775_s6 + $0x788] sm:$0xff]   ;;  %v14277_v8 = vld [vmem:[%s17775_s6 + $0x790] sm:$0xff]  }
 0x805   :  { %9867 = vmatprep.mubr.bf16.mxu0 %v9558_v10  ;;  %12672 = vmatprep.subr.bf16.mxu1 %v14240_v5  ;;  %v14276_v5 = vld [vmem:[%s17775_s6 + $0x7d0] sm:$0xff]   ;;  %v14279_v10 = vld [vmem:[%s17775_s6 + $0x798] sm:$0xff]  }
 0x806   :  { %12796 = vmatprep.subr.bf16.mxu0 %v14241_v9  ;;  %v12533_v13 = vpop.f32.mrb[128].mxu0  ;;  %v14278_v9 = vld [vmem:[%s17775_s6 + $0x7d8] sm:$0xff]   ;;  %v14305_v60 = vld [vmem:[%s17775_s6 + $0x86c] sm:$0xff]  }
 0x807   :  { %12673 = vmatpush3.bf16.msra.mxu1 %v14242_v45  ;;  %v12534_v14 = vpop.f32.mrb[129].mxu0  ;;  %v14281_v45 = vld [vmem:[%s17775_s6 + $0x7a0] sm:$0xff]  }
 0x808   :  { %12797 = vmatpush3.bf16.msra.mxu0 %v14243_v51  ;;  %v17485_v58 = vadd.f32 %v12534_v14, %v12533_v13  ;;  %v12536_v47 = vpop.f32.mrb[130].mxu0  ;;  %12674 = vmatprep.subr.bf16.mxu1 %v14244_v33  ;;  %v14282_v51 = vld [vmem:[%s17775_s6 + $0x7e8] sm:$0xff]  }
 0x809   :  { %12798 = vmatprep.subr.bf16.mxu0 %v14245_v35  ;;  %v12537_v34 = vpop.f32.mrb[131].mxu0 }
 0x80a   :  { %v14283_v34 = vld [vmem:[%s17775_s6 + $0x7a8] sm:$0xff]  }
 0x80b   :  { %12675 = vmatpush3.bf16.msra.mxu1 %v14246_v3 }
 0x80c   :  { %12799 = vmatpush3.bf16.msra.mxu0 %v14247_v49  ;;  %12676 = vmatprep.subr.bf16.mxu1 %v14248_v20 }
 0x80d   :  { %12800 = vmatprep.subr.bf16.mxu0 %v14249_v44 }
 0x80f   :  { %12677 = vmatpush3.bf16.msra.mxu1 %v14250_v17 }
 0x810   :  { %12801 = vmatpush3.bf16.msra.mxu0 %v14251_v28  ;;  %12678 = vmatprep.subr.bf16.mxu1 %v14252_v39  ;;  %v14284_v28 = vld [vmem:[%s17775_s6 + $0x7f0] sm:$0xff]  }
 0x811   :  { %12802 = vmatprep.subr.bf16.mxu0 %v14253_v25  ;;  %v14285_v25 = vld [vmem:[%s17775_s6 + $0x7b0] sm:$0xff]  }
 0x813   :  { %12679 = vmatpush3.bf16.msra.mxu1 %v14254_v61 }
 0x814   :  { %12803 = vmatpush3.bf16.msra.mxu0 %v14255_v23  ;;  %12680 = vmatprep.subr.bf16.mxu1 %v14256_v26  ;;  %v14286_v23 = vld [vmem:[%s17775_s6 + $0x7f8] sm:$0xff]  }
 0x815   :  { %12804 = vmatprep.subr.bf16.mxu0 %v14257_v27  ;;  %v14287_v26 = vld [vmem:[%s17775_s6 + $0x7b8] sm:$0xff]   ;;  %v14288_v27 = vld [vmem:[%s17775_s6 + $0x800] sm:$0xff]  }
 0x817   :  { %12681 = vmatpush3.bf16.msra.mxu1 %v14258_v30  ;;  %v14290_v30 = vld [vmem:[%s17775_s6 + $0x874] sm:$0xff]  }
 0x818   :  { %12805 = vmatpush3.bf16.msra.mxu0 %v14259_v2  ;;  %12682 = vmatprep.subr.bf16.mxu1 %v14260_v31  ;;  %v14291_v2 = vld [vmem:[%s17775_s6 + $0x834] sm:$0xff]   ;;  %v9120_v31 = vrot.slane %v16757_v18, 6 }
 0x819   :  { %12806 = vmatprep.subr.bf16.mxu0 %v14261_v32  ;;  %v14292_v32 = vld [vmem:[%s17775_s6 + $0x87c] sm:$0xff]  }
 0x81b   :  { %12683 = vmatpush3.bf16.msra.mxu1 %v14262_v36  ;;  %v9556_v36 = vrot.slane %v16848_v57, 7  ;;  %v14295_v57 = vld [vmem:[%s17775_s6 + $0x844] sm:$0xff]  }
 0x81c   :  { %12807 = vmatpush3.bf16.msra.mxu0 %v14263_v1  ;;  %12684 = vmatprep.subr.bf16.mxu1 %v14264_v40  ;;  %v14293_v1 = vld [vmem:[%s17775_s6 + $0x83c] sm:$0xff]   ;;  %v14294_v40 = vld [vmem:[%s17775_s6 + $0x884] sm:$0xff]  }
 0x81d   :  { %12808 = vmatprep.subr.bf16.mxu0 %v14265_v21 }
 0x81f   :  { %12685 = vmatpush3.bf16.msra.mxu1 %v14266_v41 }
 0x820   :  { %12809 = vmatpush3.bf16.msra.mxu0 %v14267_v4  ;;  %12944 = vmatprep.subr.bf16.mxu1 %v14343_v37 }
 0x821   :  { %12992 = vmatprep.subr.bf16.mxu0 %v14343_v37 }
 0x822   :  { %8954 = vmatmul.mubr.bf16.vlgmr.msra.gmra.mrb[68].mxu1 %v8681_v11  ;;  %v14296_v11 = vld [vmem:[%s17775_s6 + $0x88c] sm:$0xff]  }
 0x823   :  { %9868 = vmatmul.mubr.bf16.vlgmr.msra.gmra.mrb[160].mxu0 %v9557_v63  ;;  %12945 = vmatpush3.bf16.msra.mxu1 %v14268_v43  ;;  %v14297_v63 = vld [vmem:[%s17775_s6 + $0x84c] sm:$0xff]  }
 0x824   :  { %12946 = vmatprep.subr.bf16.mxu1 %v14343_v37  ;;  %12956 = vmatprep.mubr.msk.bf16.mxu1 %vm14344_vm10, %v14343_v37 }
 0x825   :  { %v6937_v48 = vpop.f32.mrb[40].mxu1  ;;  %v17563_v50 = vpop.f32.mrb[132].mxu0  ;;  %13004 = vmatprep.mubr.msk.bf16.mxu0 %vm14344_vm10, %v14343_v37 }
 0x826   :  { %v6938_v54 = vadd.f32 %v6937_v48, %v17462_v6  ;;  %v12878_v42 = vpop.f32.mrb[41].mxu1  ;;  %v12910_v52 = vpop.f32.mrb[133].mxu0  ;;  %v9121_v6 = vrot.slane %v16759_v24, 6  ;;  %v14280_v24 = vld [vmem:[%s17775_s6 + $0x7e0] sm:$0xff]  }
 0x827   :  { %12947 = vmatpush3.bf16.msra.mxu1 %v14269_v15  ;;  %v6940_v53 = vpop.f32.mrb[42].mxu1  ;;  %v7727_v56 = vpop.f32.mrb[134].mxu0  ;;  %v14298_v15 = vld [vmem:[%s17775_s6 + $0x894] sm:$0xff]  }
 0x828   :  { %v12879_v16 = vpop.f32.mrb[43].mxu1  ;;  %v12911_v7 = vpop.f32.mrb[135].mxu0  ;;  %12948 = vmatprep.subr.bf16.mxu1 %v14343_v37  ;;  %v14299_v42 = vld [vmem:[%s17775_s6 + $0x854] sm:$0xff]   ;;  %v14300_v56 = vld [vmem:[%s17775_s6 + $0x89c] sm:$0xff]  }
 0x829   :  { %v14301_v16 = vld [vmem:[%s17775_s6 + $0x85c] sm:$0xff]   ;;  %v14302_v7 = vld [vmem:[%s17775_s6 + $0x8a4] sm:$0xff]  }
 0x82b   :  { %12949 = vmatpush3.bf16.msra.mxu1 %v14270_v59 }
 0x82c   :  { %12950 = vmatprep.subr.bf16.mxu1 %v14343_v37 }
 0x82f   :  { %12951 = vmatpush3.bf16.msra.mxu1 %v14271_v19  ;;  %v14303_v19 = vld [vmem:[%s17775_s6 + $0x864] sm:$0xff]  }
 0x830   :  { %12952 = vmatprep.subr.bf16.mxu1 %v14343_v37 }
 0x833   :  { %12953 = vmatpush3.bf16.msra.mxu1 %v14272_v22  ;;  %v14304_v22 = vld [vmem:[%s17775_s6 + $0x8ac] sm:$0xff]  }
 0x834   :  { %12954 = vmatprep.subr.bf16.mxu1 %v14343_v37 }
 0x837   :  { %12955 = vmatpush3.bf16.msra.mxu1 %v8919_v62  ;;  %v14306_v62 = vld [vmem:[%s17775_s6 + $0x934] sm:$0xff]  }
 0x838   :  { %12743 = vmatprep.subr.bf16.mxu1 %v14274_v38  ;;  %v9555_v38 = vrot.slane %v16843_v0, 7 }
 0x83a   :  { %12957 = vmatmul.mubr.msk.bf16.vlgmr.msra.gmra.mrb[72].mxu1 %vm6816_vm11, %v8685_v55 }
 0x83b   :  { %12744 = vmatpush3.bf16.msra.mxu1 %v14275_v12  ;;  %9430 = vmatprep.mubr.bf16.mxu1 %v9121_v6  ;;  %v14307_v12 = vld [vmem:[%s17775_s6 + $0x93c] sm:$0xff]  }
 0x83c   :  { %12745 = vmatprep.subr.bf16.mxu1 %v14276_v5 }
 0x83f   :  { %12746 = vmatpush3.bf16.msra.mxu1 %v14277_v8 }
 0x840   :  { %12747 = vmatprep.subr.bf16.mxu1 %v14278_v9 }
 0x843   :  { %12748 = vmatpush3.bf16.msra.mxu1 %v14279_v10  ;;  %v14308_v10 = vld [vmem:[%s17775_s6 + $0x944] sm:$0xff]  }
 0x844   :  { %12749 = vmatprep.subr.bf16.mxu1 %v14280_v24 }
 0x845   :  { %v12482_v33 = vpop.f32.mrb[44].mxu1  ;;  %v12606_v35 = vpop.f32.mrb[136].mxu0 }
 0x846   :  { %v12483_v13 = vpop.f32.mrb[45].mxu1  ;;  %v12607_v14 = vpop.f32.mrb[137].mxu0 }
 0x847   :  { %v12484_v3 = vadd.f32 %v12483_v13, %v12482_v33  ;;  %v17615_v47 = vadd.f32 %v12607_v14, %v12606_v35  ;;  %v12485_v49 = vpop.f32.mrb[46].mxu1  ;;  %v12609_v20 = vpop.f32.mrb[138].mxu0  ;;  %12750 = vmatpush3.bf16.msra.mxu1 %v14281_v45  ;;  %v14309_v13 = vld [vmem:[%s17775_s6 + $0x94c] sm:$0xff]  }
 0x848   :  { %v12486_v44 = vpop.f32.mrb[47].mxu1  ;;  %v12610_v17 = vpop.f32.mrb[139].mxu0  ;;  %12751 = vmatprep.subr.bf16.mxu1 %v14282_v51  ;;  %v9559_v49 = vrot.slane %v16927_v46, 7 }
 0x849   :  { %v7209_v39 = vadd.f32 %v12484_v3, %v6938_v54  ;;  %v14310_v3 = vld [vmem:[%s17775_s6 + $0x954] sm:$0xff]  }
 0x84b   :  { %12752 = vmatpush3.bf16.msra.mxu1 %v14283_v34  ;;  %v7249_v61 = vadd.f32 %v17384_v29, %v7209_v39  ;;  %v14289_v29 = vld [vmem:[%s17775_s6 + $0x7c0] sm:$0xff]  }
 0x84c   :  { %12753 = vmatprep.subr.bf16.mxu1 %v14284_v28 }
 0x84f   :  { %12754 = vmatpush3.bf16.msra.mxu1 %v14285_v25 }
 0x850   :  { %12755 = vmatprep.subr.bf16.mxu1 %v14286_v23 }
 0x853   :  { %12756 = vmatpush3.bf16.msra.mxu1 %v14287_v26 }
 0x854   :  { %12757 = vmatprep.subr.bf16.mxu1 %v14288_v27 }
 0x857   :  { %12758 = vmatpush3.bf16.msra.mxu1 %v14289_v29 }
 0x858   :  { %12772 = vmatprep.subr.bf16.mxu1 %v14290_v30 }
 0x85a   :  { %9431 = vmatmul.mubr.bf16.vlgmr.msra.gmra.mrb[76].mxu1 %v9120_v31 }
 0x85b   :  { %12773 = vmatpush3.bf16.msra.mxu1 %v14291_v2  ;;  %9827 = vmatprep.mubr.bf16.mxu1 %v9556_v36 }
 0x85c   :  { %12774 = vmatprep.subr.bf16.mxu1 %v14292_v32 }
 0x85d   :  { %v7288_v18 = vpop.f32.mrb[48].mxu1 }
 0x85e   :  { %v7289_v21 = vadd.f32 %v7288_v18, %v7249_v61  ;;  %v12894_v41 = vpop.f32.mrb[49].mxu1 }
 0x85f   :  { %v7291_v4 = vpop.f32.mrb[50].mxu1  ;;  %12775 = vmatpush3.bf16.msra.mxu1 %v14293_v1  ;;  %v14312_v41 = vld [vmem:[%s17777_s8] sm:$0xff]  }
 0x860   :  { %v12895_v43 = vpop.f32.mrb[51].mxu1  ;;  %12776 = vmatprep.subr.bf16.mxu1 %v14294_v40  ;;  %12993 = vmatpush3.bf16.msra.mxu0 %v14312_v41 }
 0x861   :  { %12994 = vmatprep.subr.bf16.mxu0 %v14343_v37 }
 0x863   :  { %12777 = vmatpush3.bf16.msra.mxu1 %v14295_v57 }
 0x864   :  { %12778 = vmatprep.subr.bf16.mxu1 %v14296_v11  ;;  %v14314_v11 = vld [vmem:[%s17777_s8 + $0x10] sm:$0xff]  }
 0x866   :  { %v12635_v48 = vpop.f32.mrb[140].mxu0 }
 0x867   :  { %v12636_v54 = vpop.f32.mrb[141].mxu0  ;;  %12779 = vmatpush3.bf16.msra.mxu1 %v14297_v63 }
 0x868   :  { %v17671_v52 = vadd.f32 %v12636_v54, %v12635_v48  ;;  %v12638_v53 = vpop.f32.mrb[142].mxu0  ;;  %12780 = vmatprep.subr.bf16.mxu1 %v14298_v15 }
 0x869   :  { %v12639_v59 = vpop.f32.mrb[143].mxu0 }
 0x86b   :  { %12781 = vmatpush3.bf16.msra.mxu1 %v14299_v42 }
 0x86c   :  { %12782 = vmatprep.subr.bf16.mxu1 %v14300_v56 }
 0x86f   :  { %12783 = vmatpush3.bf16.msra.mxu1 %v14301_v16 }
 0x870   :  { %12784 = vmatprep.subr.bf16.mxu1 %v14302_v7  ;;  %v14315_v7 = vld [vmem:[%s17777_s8 + $0x18] sm:$0xff]  }
 0x873   :  { %12785 = vmatpush3.bf16.msra.mxu1 %v14303_v19  ;;  %v14316_v19 = vld [vmem:[%s17777_s8 + $0x20] sm:$0xff]  }
 0x874   :  { %12786 = vmatprep.subr.bf16.mxu1 %v14304_v22 }
 0x877   :  { %12787 = vmatpush3.bf16.msra.mxu1 %v14305_v60 }
 0x878   :  { %12976 = vmatprep.subr.bf16.mxu1 %v14343_v37 }
 0x87a   :  { %9828 = vmatmul.mubr.bf16.vlgmr.msra.gmra.mrb[80].mxu1 %v9555_v38 }
 0x87b   :  { %12977 = vmatpush3.bf16.msra.mxu1 %v14306_v62  ;;  %12988 = vmatprep.mubr.msk.bf16.mxu1 %vm14344_vm10, %v14343_v37 }
 0x87c   :  { %12978 = vmatprep.subr.bf16.mxu1 %v14343_v37 }
 0x87d   :  { %v12555_v55 = vpop.f32.mrb[52].mxu1 }
 0x87e   :  { %v17702_v5 = vpop.f32.mrb[144].mxu0  ;;  %v12556_v6 = vpop.f32.mrb[53].mxu1 }
 0x87f   :  { %v12557_v8 = vadd.f32 %v12556_v6, %v12555_v55  ;;  %v12942_v9 = vpop.f32.mrb[145].mxu0  ;;  %v12558_v0 = vpop.f32.mrb[54].mxu1  ;;  %12979 = vmatpush3.bf16.msra.mxu1 %v14307_v12 }
 0x880   :  { %v8601_v24 = vpop.f32.mrb[146].mxu0  ;;  %v12559_v45 = vpop.f32.mrb[55].mxu1  ;;  %12980 = vmatprep.subr.bf16.mxu1 %v14343_v37 }
 0x881   :  { %v7685_v51 = vadd.f32 %v12557_v8, %v17485_v58  ;;  %v12943_v33 = vpop.f32.mrb[147].mxu0  ;;  %v14311_v58 = vld [vmem:[%s17775_s6 + $0x95c] ss:$0 sps:$4 sm:$0xff]  }
 0x883   :  { %v7725_v35 = vadd.f32 %v17563_v50, %v7685_v51  ;;  %12981 = vmatpush3.bf16.msra.mxu1 %v14308_v10  ;;  %v9793_v50 = vsel %vm492_vm2, %v14311_v58, 0 }
 0x884   :  { %12982 = vmatprep.subr.bf16.mxu1 %v14343_v37 }
 0x885   :  { %v7730_v14 = vadd.f32 %v7725_v35, %v7289_v21 }
 0x887   :  { %12983 = vmatpush3.bf16.msra.mxu1 %v14309_v13 }
 0x888   :  { %12984 = vmatprep.subr.bf16.mxu1 %v14343_v37 }
 0x88b   :  { %12985 = vmatpush3.bf16.msra.mxu1 %v14310_v3 }
 0x88c   :  { %12986 = vmatprep.subr.bf16.mxu1 %v14343_v37 }
 0x88f   :  { %12987 = vmatpush3.bf16.msra.mxu1 %v9793_v50 }
 0x892   :  { %12989 = vmatmul.mubr.msk.bf16.vlgmr.msra.gmra.mrb[84].mxu1 %vm6816_vm11, %v9559_v49 }
 0x89d   :  { %v12584_v20 = vpop.f32.mrb[56].mxu1 }
 0x89e   :  { %v12708_v34 = vpop.f32.mrb[148].mxu0  ;;  %v12585_v44 = vpop.f32.mrb[57].mxu1 }
 0x89f   :  { %v12586_v17 = vadd.f32 %v12585_v44, %v12584_v20  ;;  %v12709_v28 = vpop.f32.mrb[149].mxu0  ;;  %v12587_v39 = vpop.f32.mrb[58].mxu1 }
 0x8a0   :  { %v12710_v25 = vadd.f32 %v12709_v28, %v12708_v34  ;;  %v12711_v61 = vpop.f32.mrb[150].mxu0  ;;  %v12588_v23 = vpop.f32.mrb[59].mxu1 }
 0x8a1   :  { %v12712_v26 = vpop.f32.mrb[151].mxu0  ;;  %v8122_v27 = vadd.f32 %v17615_v47, %v12586_v17  ;;  %v14313_v47 = vld [vmem:[%s17777_s8 + $0x8] sm:$0xff]  }
 0x8a2   :  { %12995 = vmatpush3.bf16.msra.mxu0 %v14313_v47 }
 0x8a3   :  { %12996 = vmatprep.subr.bf16.mxu0 %v14343_v37 }
 0x8a6   :  { %12997 = vmatpush3.bf16.msra.mxu0 %v14314_v11 }
 0x8a7   :  { %12998 = vmatprep.subr.bf16.mxu0 %v14343_v37 }
 0x8aa   :  { %12999 = vmatpush3.bf16.msra.mxu0 %v14315_v7 }
 0x8ab   :  { %13000 = vmatprep.subr.bf16.mxu0 %v14343_v37 }
 0x8ae   :  { %13001 = vmatpush3.bf16.msra.mxu0 %v14316_v19 }
 0x8af   :  { %13002 = vmatprep.subr.bf16.mxu0 %v14343_v37 }
 0x8b5   :  { %v8161_v29 = vpop.f32.mrb[60].mxu1 }
 0x8b6   :  { %v8162_v30 = vadd.f32 %v8161_v29, %v8122_v27  ;;  %v12926_v2 = vpop.f32.mrb[61].mxu1  ;;  %v12135_v29 = vld [vmem:[%s17776_s7] ss:$0 sm:$0xff]  ;;  %s14318_s7 = scalar_lea.vmem %s10034_s29, 32 }
 0x8b7   :  { %v8164_v31 = vpop.f32.mrb[62].mxu1  ;;  %p14319_p0 = scmp.ne.s32.totalorder %s10034_s29, %s14318_s7  ;;  %p14324_p2 = scmp.lt.s32.totalorder %s14318_s7, %s14318_s7 }
 0x8b8   :  { %v8167_v32 = vadd.f32 %v8162_v30, %v7730_v14  ;;  %v12927_v46 = vpop.f32.mrb[63].mxu1 }
 0x8b9   :  { %p14325_p3 = por %p14324_p2, %p14323_p1 }
 0x8bb   :  { %p14326_p4 = pnand %p14325_p3, %p14319_p0 }
 0x8be   :  { %v12737_v36 = vpop.f32.mrb[152].mxu0 }
 0x8bf   :  { %v12738_v1 = vpop.f32.mrb[153].mxu0 }
 0x8c0   :  { %v12739_v40 = vadd.f32 %v12738_v1, %v12737_v36  ;;  %v12740_v18 = vpop.f32.mrb[154].mxu0  ;;  %v12136_v1 = vld [vmem:[%s17778_s9] ss:$0 sm:$0xff] }
 0x8c1   :  { %v12741_v21 = vpop.f32.mrb[155].mxu0 }
 0x8d5   :  { %v12657_v4 = vpop.f32.mrb[64].mxu1 }
 0x8d6   :  { %v9472_v57 = vpop.f32.mrb[156].mxu0  ;;  %v12658_v43 = vpop.f32.mrb[65].mxu1 }
 0x8d7   :  { %v12659_v63 = vadd.f32 %v12658_v43, %v12657_v4  ;;  %v12974_v15 = vpop.f32.mrb[157].mxu0  ;;  %v12660_v48 = vpop.f32.mrb[66].mxu1 }
 0x8d8   :  { %v9475_v54 = vpop.f32.mrb[158].mxu0  ;;  %v12661_v42 = vpop.f32.mrb[67].mxu1 }
 0x8d9   :  { %v8559_v53 = vadd.f32 %v12659_v63, %v17671_v52  ;;  %v12975_v56 = vpop.f32.mrb[159].mxu0  ;;  %v14317_v52 = vld [vmem:[%s17777_s8 + $0x28] ss:$0 sps:$4 sm:$0x33]  }
 0x8da   :  { %v9983_v22 = vsel %vm9981_vm12, %v14317_v52, 0 }
 0x8db   :  { %v8599_v59 = vadd.f32 %v17702_v5, %v8559_v53  ;;  %13003 = vmatpush3.bf16.msra.mxu0 %v9983_v22 }
 0x8dd   :  { %v8604_v16 = vadd.f32 %v8599_v59, %v8167_v32 }
 0x8f5   :  { %v12686_v60 = vpop.f32.mrb[68].mxu1 }
 0x8f6   :  { %v12810_v62 = vpop.f32.mrb[160].mxu0  ;;  %v12687_v38 = vpop.f32.mrb[69].mxu1 }
 0x8f7   :  { %v12688_v12 = vadd.f32 %v12687_v38, %v12686_v60  ;;  %v12811_v55 = vpop.f32.mrb[161].mxu0  ;;  %v12689_v5 = vpop.f32.mrb[70].mxu1 }
 0x8f8   :  { %v12812_v6 = vadd.f32 %v12811_v55, %v12810_v62  ;;  %v12813_v8 = vpop.f32.mrb[162].mxu0  ;;  %v12690_v9 = vpop.f32.mrb[71].mxu1 }
 0x8f9   :  { %v12814_v0 = vpop.f32.mrb[163].mxu0  ;;  %v8996_v10 = vadd.f32 %v12710_v25, %v12688_v12 }
 0x90d   :  { %v9035_v24 = vpop.f32.mrb[72].mxu1 }
 0x90e   :  { %v9036_v37 = vadd.f32 %v9035_v24, %v8996_v10  ;;  %v12958_v45 = vpop.f32.mrb[73].mxu1 }
 0x90f   :  { %v9038_v51 = vpop.f32.mrb[74].mxu1 }
 0x910   :  { %v9041_v33 = vadd.f32 %v9036_v37, %v8604_v16  ;;  %v12959_v35 = vpop.f32.mrb[75].mxu1 }
 0x92d   :  { %v12759_v13 = vpop.f32.mrb[76].mxu1 }
 0x92e   :  { %v12760_v14 = vpop.f32.mrb[77].mxu1 }
 0x92f   :  { %v12761_v3 = vadd.f32 %v12760_v14, %v12759_v13  ;;  %v12762_v58 = vpop.f32.mrb[78].mxu1 }
 0x930   :  { %v12763_v50 = vpop.f32.mrb[79].mxu1 }
 0x931   :  { %v9433_v49 = vadd.f32 %v12761_v3, %v12739_v40 }
 0x933   :  { %v9473_v20 = vadd.f32 %v9472_v57, %v9433_v49 }
 0x935   :  { %v9478_v34 = vadd.f32 %v9473_v20, %v9041_v33 }
 0x94d   :  { %v12788_v44 = vpop.f32.mrb[80].mxu1 }
 0x94e   :  { %v12789_v17 = vpop.f32.mrb[81].mxu1 }
 0x94f   :  { %v12790_v28 = vadd.f32 %v12789_v17, %v12788_v44  ;;  %v12791_v39 = vpop.f32.mrb[82].mxu1 }
 0x950   :  { %v12792_v61 = vpop.f32.mrb[83].mxu1 }
 0x951   :  { %v9870_v25 = vadd.f32 %v12812_v6, %v12790_v28 }
 0x965   :  { %v9909_v23 = vpop.f32.mrb[84].mxu1 }
 0x966   :  { %v9910_v26 = vadd.f32 %v9909_v23, %v9870_v25  ;;  %v12990_v27 = vpop.f32.mrb[85].mxu1 }
 0x967   :  { %v9912_v30 = vpop.f32.mrb[86].mxu1 }
 0x968   :  { %v9915_v2 = vadd.f32 %v9910_v26, %v9478_v34  ;;  %v12991_v31 = vpop.f32.mrb[87].mxu1 }
 0x96a   :  { %v9923_v32 = vadd.f32 %v12135_v29, %v9915_v2 }
 0x96c   :  { %v9924_v46 = vmax.f32 %v9923_v32, 0.0 }
 0x96e   :  { %v9925_v36 = vpack.c.bf16 %v9924_v46, %v9924_v46 }
 0x970   :  { %13005 = vmatmul.mubr.msk.bf16.vlgmr.msra.gmra.mrb[164].mxu0 %vm9977_vm13, %v9925_v36 }
 0xa43   :  { %v10019_v40 = vpop.f32.mrb[164].mxu0 }
 0xa44   :  { %v10020_v18 = vadd.f32 %v12136_v1, %v10019_v40  ;;  %v13006_v21 = vpop.f32.mrb[165].mxu0 }
 0xa45   :  { %v10022_v41 = vpop.f32.mrb[166].mxu0 }
 0xa46   :  { %v13007_v47 = vpop.f32.mrb[167].mxu0  ;;  %10026 = vst.msk [vmem:[#allocation2] sm:$0x3] %vm10025_vm14, %v10020_v18 }
 0xa47   :  { %14329 = shalt.err (!%p14326_p4)
}
 0xa48   :  { %s14330_s9 = scalar_lea.hbm %s17779_s10, 32 }
 0xa49   :  { %p14331_p5 = scmp.ne.s32.totalorder %s17779_s10, %s14330_s9  ;;  %p14334_p6 = scmp.lt.u32.totalorder %s14330_s9, %s17779_s10 }
 0xa4b   :  { %p14336_p7 = pnand %p14334_p6, %p14331_p5 }
 0xa4d   :  { %14339 = shalt.err (!%p14336_p7)
}
 0xa4e   :  { %10036 = dma.vmem_to_hbm [thread:$0]  %s10034_s29, 32, %s17779_s10, [#allocation3]  }
 0xa4f   :  { %14340 = dma.done.wait [#allocation3], 32  }
 0xa50   :  { %14341 = vsyncadd [#allocation3], 4294967264 }
 0xa51   :  { %10040 = vsyncpa [#allocation3], 1 }

</bundles_post_ra>
